<compile_context>
chip_gen: v6e
topology: v6e:2x2x1
jax: 0.10.0
libtpu: 0.0.40
codegen_flags: <defaults>
</compile_context>

<pallas_src>
import jax
import jax.numpy as jnp
from jax.experimental import pallas as pl
from jax.experimental.pallas import tpu as pltpu


# ---------------------------------------------------------------------------
# Kernel A: conv (im2col matmul) + bias + ReLU + 2x2 maxpool
# ---------------------------------------------------------------------------

def _conv_pool_kernel(p0_ref, p1_ref, p2_ref, p3_ref, w_ref, b_ref, o_ref):
    """4 pool-phase im2col matmuls -> elementwise max -> bias -> ReLU."""
    w = w_ref[...]
    r0 = jnp.dot(p0_ref[...], w, preferred_element_type=jnp.float32)
    r1 = jnp.dot(p1_ref[...], w, preferred_element_type=jnp.float32)
    r2 = jnp.dot(p2_ref[...], w, preferred_element_type=jnp.float32)
    r3 = jnp.dot(p3_ref[...], w, preferred_element_type=jnp.float32)
    m = jnp.maximum(jnp.maximum(r0, r1), jnp.maximum(r2, r3))
    o_ref[...] = jnp.maximum(m + b_ref[...], 0.0).astype(o_ref.dtype)


def conv_relu_pool(views, conv_w, conv_b):
    """views: 4 arrays (M, Kpad); conv_w: (Kpad, Cout); conv_b: (1, Cout)."""
    m = views[0].shape[0]
    cout = conv_w.shape[1]
    return pl.pallas_call(
        _conv_pool_kernel,
        out_shape=jax.ShapeDtypeStruct((m, cout), jnp.float32),
    )(*views, conv_w, conv_b)


# ---------------------------------------------------------------------------
# Kernel B: fc1 (K-tiled, bf16 weight stream) + ReLU + fc2 fused in epilogue
# ---------------------------------------------------------------------------

def _fc_fused_kernel(x_ref, w1_ref, b1_ref, w2_ref, b2_ref, o_ref, h_acc):
    k = pl.program_id(0)

    @pl.when(k == 0)
    def _():
        h_acc[...] = jnp.zeros_like(h_acc)

    h_acc[...] += jnp.dot(x_ref[...].astype(jnp.bfloat16), w1_ref[...],
                          preferred_element_type=jnp.float32)

    @pl.when(k == pl.num_programs(0) - 1)
    def _():
        h = jnp.maximum(h_acc[...] + b1_ref[...], 0.0)
        out = jnp.dot(h.astype(jnp.bfloat16), w2_ref[...],
                      preferred_element_type=jnp.float32) + b2_ref[...]
        o_ref[...] = out.astype(o_ref.dtype)


def fc_fused(x, w1, b1, w2, b2, *, tk=1152):
    """y = (relu(x @ w1 + b1)) @ w2 + b2, with w1 streamed K-tiled in bf16."""
    m, k_dim = x.shape
    _, n1 = w1.shape
    _, n2 = w2.shape
    assert k_dim % tk == 0, (k_dim, tk)
    return pl.pallas_call(
        _fc_fused_kernel,
        out_shape=jax.ShapeDtypeStruct((m, n2), jnp.float32),
        grid_spec=pltpu.PrefetchScalarGridSpec(
            num_scalar_prefetch=0,
            grid=(k_dim // tk,),
            in_specs=[
                pl.BlockSpec((m, tk), lambda k: (0, k)),      # activation
                pl.BlockSpec((tk, n1), lambda k: (k, 0)),     # fc1 weight (bf16)
                pl.BlockSpec((1, n1), lambda k: (0, 0)),      # fc1 bias
                pl.BlockSpec((n1, n2), lambda k: (0, 0)),     # fc2 weight (bf16)
                pl.BlockSpec((1, n2), lambda k: (0, 0)),      # fc2 bias
            ],
            out_specs=pl.BlockSpec((m, n2), lambda k: (0, 0)),
            scratch_shapes=[pltpu.VMEM((m, n1), jnp.float32)],
        ),
        compiler_params=pltpu.CompilerParams(
            dimension_semantics=("arbitrary",)),
    )(x, w1, b1, w2, b2)


# ---------------------------------------------------------------------------
# Host-side glue: im2col with pool phases, weight prep, forward
# ---------------------------------------------------------------------------

def im2col_pool_views(x_nhwc, kh=5, kw=5, kpad=32):
    """4 pool-phase patch matrices, each (N*12*12, kpad).
    Patch column order = c*kh*kw + i*kw + j (matches torch weight.reshape)."""
    n, h, w, c = x_nhwc.shape
    oh, ow = h - kh + 1, w - kw + 1
    cols = []
    for ci in range(c):
        for i in range(kh):
            for j in range(kw):
                cols.append(x_nhwc[:, i:i + oh, j:j + ow, ci])
    patches = jnp.stack(cols, axis=-1)                        # (N, oh, ow, c*kh*kw)
    patches = jnp.pad(patches, ((0, 0), (0, 0), (0, 0),
                                (0, kpad - c * kh * kw)))     # K 25 -> 32
    views = []
    for ph in range(2):
        for pw in range(2):
            v = patches[:, ph::2, pw::2, :]                   # (N, 12, 12, kpad)
            views.append(v.reshape(n * (oh // 2) * (ow // 2), kpad))
    return views


def init_params(key):
    """Parameters in the torch module's native layouts (f32)."""
    ks = jax.random.split(key, 6)
    return {
        "conv1_w": 0.05 * jax.random.normal(ks[0], (32, 1, 5, 5), jnp.float32),
        "conv1_b": 0.05 * jax.random.normal(ks[1], (32,), jnp.float32),
        "fc1_w":   0.02 * jax.random.normal(ks[2], (1000, 32 * 12 * 12), jnp.float32),
        "fc1_b":   0.02 * jax.random.normal(ks[3], (1000,), jnp.float32),
        "fc2_w":   0.05 * jax.random.normal(ks[4], (10, 1000), jnp.float32),
        "fc2_b":   0.05 * jax.random.normal(ks[5], (10,), jnp.float32),
    }


def prepare_kernel_params(params):
    """One-time offline repack: pad to lane/sublane-friendly shapes, permute
    fc1 rows to NHWC-flatten order, cast the big fc weights to bf16."""
    # conv: (32,1,5,5) -> (25,32) -> zero-pad K to 32
    cw = params["conv1_w"].reshape(32, 25).T                      # (25, 32)
    cw = jnp.pad(cw, ((0, 7), (0, 0)))                            # (32, 32)
    cb = params["conv1_b"].reshape(1, 32)

    # fc1: torch cols ordered c*144 + h*12 + w (NCHW flatten).  Permute to
    # NHWC-flatten order h*384 + w*32 + c, transpose to (4608, 1000),
    # zero-pad outputs 1000 -> 1024, cast to bf16.
    w1 = params["fc1_w"].reshape(1000, 32, 12, 12)                # (out, c, h, w)
    w1 = jnp.transpose(w1, (2, 3, 1, 0)).reshape(32 * 12 * 12, 1000)
    w1 = jnp.pad(w1, ((0, 0), (0, 24))).astype(jnp.bfloat16)      # (4608, 1024)
    b1 = jnp.pad(params["fc1_b"], (0, 24)).reshape(1, 1024)       # f32

    # fc2: (10, 1000) -> (1000, 10) -> zero-pad to (1024, 128), bf16
    w2 = jnp.pad(params["fc2_w"].T, ((0, 24), (0, 118))).astype(jnp.bfloat16)
    b2 = jnp.pad(params["fc2_b"], (0, 118)).reshape(1, 128)       # f32

    return {"conv_w": cw, "conv_b": cb,
            "fc1_w": w1, "fc1_b": b1, "fc2_w": w2, "fc2_b": b2}


def cnn_forward(kparams, x_nchw):
    n = x_nchw.shape[0]
    x_nhwc = jnp.transpose(x_nchw, (0, 2, 3, 1))                  # NCHW -> NHWC

    # conv1 + bias + ReLU + 2x2 maxpool (one Pallas kernel).
    views = im2col_pool_views(x_nhwc)                             # 4 x (N*144, 32)
    pooled = conv_relu_pool(views, kparams["conv_w"], kparams["conv_b"])
    # pooled rows are (n, h, w)-ordered with channel last -> NHWC flatten is a
    # pure row-major reshape; fc1 weight rows were permuted to match.
    flat = pooled.reshape(n, 32 * 12 * 12)                        # (N, 4608)

    # fc1 + ReLU + fc2 (one Pallas kernel, bf16 weight stream, padded lanes).
    out = fc_fused(flat, kparams["fc1_w"], kparams["fc1_b"],
                   kparams["fc2_w"], kparams["fc2_b"])            # (N, 128)
    return out[:, :10]


# ---------------------------------------------------------------------------
# Pure-JAX f32 reference (mirrors the torch module exactly)
# ---------------------------------------------------------------------------

def reference_forward(params, x_nchw):
    y = jax.lax.conv_general_dilated(
        x_nchw, params["conv1_w"], window_strides=(1, 1), padding="VALID",
        dimension_numbers=("NCHW", "OIHW", "NCHW"))
    y = jnp.maximum(y + params["conv1_b"][None, :, None, None], 0.0)
    n, c, h, w = y.shape
    y = y.reshape(n, c, h // 2, 2, w // 2, 2).max(axis=(3, 5))    # maxpool 2x2
    flat = y.reshape(n, -1)                                       # NCHW flatten
    hid = jnp.maximum(flat @ params["fc1_w"].T + params["fc1_b"], 0.0)
    return hid @ params["fc2_w"].T + params["fc2_b"]


# ---------------------------------------------------------------------------

if __name__ == "__main__":
    key = jax.random.PRNGKey(0)
    pkey, xkey = jax.random.split(key)
    params = init_params(pkey)
    kparams = prepare_kernel_params(params)

    # Input consistent with the module: 1 channel, 28x28 (conv5 -> 24, pool -> 12).
    x = jax.random.normal(xkey, (2, 1, 28, 28), jnp.float32)

    fwd = jax.jit(cnn_forward)
    y = fwd(kparams, x)
    jax.block_until_ready(y)
    assert y.shape == (2, 10) and y.dtype == jnp.float32

    y_ref = reference_forward(params, x)
    err = float(jnp.max(jnp.abs(y - y_ref)))
    assert err < 3e-2, f"max abs err vs f32 reference: {err}"
    print("KERNEL_OK")
</pallas_src>

<mosaic_0001>
module attributes {stable_mosaic.version = 11 : i64} {
  func.func @_conv_pool_kernel(%arg0: memref<288x32xf32, #tpu.memory_space<vmem>>, %arg1: memref<288x32xf32, #tpu.memory_space<vmem>>, %arg2: memref<288x32xf32, #tpu.memory_space<vmem>>, %arg3: memref<288x32xf32, #tpu.memory_space<vmem>>, %arg4: memref<32x32xf32, #tpu.memory_space<vmem>>, %arg5: memref<1x32xf32, #tpu.memory_space<vmem>>, %arg6: memref<288x32xf32, #tpu.memory_space<vmem>>) attributes {dimension_semantics = [], scalar_prefetch = 0 : i64, scratch_operands = 0 : i64, tpu.core_type = #tpu.core_type<tc>} {
    %c0 = arith.constant 0 : index
    %c0_0 = arith.constant 0 : index
    %0 = vector.load %arg4[%c0, %c0_0] : memref<32x32xf32, #tpu.memory_space<vmem>>, vector<32x32xf32>
    %c0_1 = arith.constant 0 : index
    %c0_2 = arith.constant 0 : index
    %1 = vector.load %arg0[%c0_1, %c0_2] : memref<288x32xf32, #tpu.memory_space<vmem>>, vector<288x32xf32>
    %cst = arith.constant dense<0.000000e+00> : vector<288x32xf32>
    %2 = tpu.matmul %1, %0, %cst {dimension_numbers = #tpu.dot_dimension_numbers<[1], [0], [0], [1], [0, 0, 1, 1], [], []>} : vector<288x32xf32>, vector<32x32xf32>, vector<288x32xf32> -> vector<288x32xf32>
    %c0_3 = arith.constant 0 : index
    %c0_4 = arith.constant 0 : index
    %3 = vector.load %arg1[%c0_3, %c0_4] : memref<288x32xf32, #tpu.memory_space<vmem>>, vector<288x32xf32>
    %cst_5 = arith.constant dense<0.000000e+00> : vector<288x32xf32>
    %4 = tpu.matmul %3, %0, %cst_5 {dimension_numbers = #tpu.dot_dimension_numbers<[1], [0], [0], [1], [0, 0, 1, 1], [], []>} : vector<288x32xf32>, vector<32x32xf32>, vector<288x32xf32> -> vector<288x32xf32>
    %c0_6 = arith.constant 0 : index
    %c0_7 = arith.constant 0 : index
    %5 = vector.load %arg2[%c0_6, %c0_7] : memref<288x32xf32, #tpu.memory_space<vmem>>, vector<288x32xf32>
    %cst_8 = arith.constant dense<0.000000e+00> : vector<288x32xf32>
    %6 = tpu.matmul %5, %0, %cst_8 {dimension_numbers = #tpu.dot_dimension_numbers<[1], [0], [0], [1], [0, 0, 1, 1], [], []>} : vector<288x32xf32>, vector<32x32xf32>, vector<288x32xf32> -> vector<288x32xf32>
    %c0_9 = arith.constant 0 : index
    %c0_10 = arith.constant 0 : index
    %7 = vector.load %arg3[%c0_9, %c0_10] : memref<288x32xf32, #tpu.memory_space<vmem>>, vector<288x32xf32>
    %cst_11 = arith.constant dense<0.000000e+00> : vector<288x32xf32>
    %8 = tpu.matmul %7, %0, %cst_11 {dimension_numbers = #tpu.dot_dimension_numbers<[1], [0], [0], [1], [0, 0, 1, 1], [], []>} : vector<288x32xf32>, vector<32x32xf32>, vector<288x32xf32> -> vector<288x32xf32>
    %9 = arith.maximumf %2, %4 : vector<288x32xf32>
    %10 = arith.maximumf %6, %8 : vector<288x32xf32>
    %11 = arith.maximumf %9, %10 : vector<288x32xf32>
    %c0_12 = arith.constant 0 : index
    %c0_13 = arith.constant 0 : index
    %12 = vector.load %arg5[%c0_12, %c0_13] : memref<1x32xf32, #tpu.memory_space<vmem>>, vector<1x32xf32>
    %13 = vector.broadcast %12 : vector<1x32xf32> to vector<288x32xf32>
    %14 = arith.addf %11, %13 : vector<288x32xf32>
    %cst_14 = arith.constant 0.000000e+00 : f32
    %15 = vector.broadcast %cst_14 : f32 to vector<288x32xf32>
    %16 = arith.maximumf %14, %15 : vector<288x32xf32>
    %c0_15 = arith.constant 0 : index
    %c0_16 = arith.constant 0 : index
    %17 = vector.load %arg6[%c0_15, %c0_16] : memref<288x32xf32, #tpu.memory_space<vmem>>, vector<288x32xf32>
    tpu.vector_store %arg6[%c0_15, %c0_16], %16 {strides = array<i32>} : memref<288x32xf32, #tpu.memory_space<vmem>>, vector<288x32xf32>,
    return
  }
}

module attributes {stable_mosaic.version = 11 : i64} {
  func.func @_fc_fused_kernel(%arg0: i32, %arg1: memref<2x1152xf32, #tpu.memory_space<vmem>>, %arg2: memref<1152x1024xbf16, #tpu.memory_space<vmem>>, %arg3: memref<1x1024xf32, #tpu.memory_space<vmem>>, %arg4: memref<1024x128xbf16, #tpu.memory_space<vmem>>, %arg5: memref<1x128xf32, #tpu.memory_space<vmem>>, %arg6: memref<2x128xf32, #tpu.memory_space<vmem>>, %arg7: memref<2x1024xf32, #tpu.memory_space<vmem>>) attributes {dimension_semantics = [#tpu.dimension_semantics<arbitrary>], iteration_bounds = array<i64: 4>, scalar_prefetch = 0 : i64, scratch_operands = 1 : i64, tpu.core_type = #tpu.core_type<tc>, window_params = [{transform_indices = @transform_0, window_bounds = array<i64: 2, 1152>}, {transform_indices = @transform_1, window_bounds = array<i64: 1152, 1024>}, {pipeline_mode = #tpu.pipeline_mode<synchronous>, transform_indices = @transform_2, window_bounds = array<i64: 1, 1024>}, {pipeline_mode = #tpu.pipeline_mode<synchronous>, transform_indices = @transform_3, window_bounds = array<i64: 1024, 128>}, {pipeline_mode = #tpu.pipeline_mode<synchronous>, transform_indices = @transform_4, window_bounds = array<i64: 1, 128>}, {pipeline_mode = #tpu.pipeline_mode<synchronous>, transform_indices = @transform_5, window_bounds = array<i64: 2, 128>}]} {
    %c0_i32 = arith.constant 0 : i32
    %0 = arith.cmpi eq, %arg0, %c0_i32 : i32
    %1 = arith.extui %0 : i1 to i32
    %c0_i32_0 = arith.constant 0 : i32
    %2 = arith.cmpi ne, %1, %c0_i32_0 : i32
    scf.if %2 {
      %cst_9 = arith.constant 0.000000e+00 : f32
      %13 = vector.broadcast %cst_9 : f32 to vector<2x1024xf32>
      %c0_10 = arith.constant 0 : index
      %c0_11 = arith.constant 0 : index
      %14 = vector.load %arg7[%c0_10, %c0_11] : memref<2x1024xf32, #tpu.memory_space<vmem>>, vector<2x1024xf32>
      tpu.vector_store %arg7[%c0_10, %c0_11], %13 {strides = array<i32>} : memref<2x1024xf32, #tpu.memory_space<vmem>>, vector<2x1024xf32>,
    } else {
    }
    %c0 = arith.constant 0 : index
    %c0_1 = arith.constant 0 : index
    %3 = vector.load %arg7[%c0, %c0_1] : memref<2x1024xf32, #tpu.memory_space<vmem>>, vector<2x1024xf32>
    %c0_2 = arith.constant 0 : index
    %c0_3 = arith.constant 0 : index
    %4 = vector.load %arg1[%c0_2, %c0_3] : memref<2x1152xf32, #tpu.memory_space<vmem>>, vector<2x1152xf32>
    %5 = arith.truncf %4 : vector<2x1152xf32> to vector<2x1152xbf16>
    %c0_4 = arith.constant 0 : index
    %c0_5 = arith.constant 0 : index
    %6 = vector.load %arg2[%c0_4, %c0_5] : memref<1152x1024xbf16, #tpu.memory_space<vmem>>, vector<1152x1024xbf16>
    %cst = arith.constant dense<0.000000e+00> : vector<2x1024xf32>
    %7 = tpu.matmul %5, %6, %cst {dimension_numbers = #tpu.dot_dimension_numbers<[1], [0], [0], [1], [0, 0, 1, 1], [], []>} : vector<2x1152xbf16>, vector<1152x1024xbf16>, vector<2x1024xf32> -> vector<2x1024xf32>
    %8 = arith.addf %3, %7 : vector<2x1024xf32>
    %c0_6 = arith.constant 0 : index
    %c0_7 = arith.constant 0 : index
    %9 = vector.load %arg7[%c0_6, %c0_7] : memref<2x1024xf32, #tpu.memory_space<vmem>>, vector<2x1024xf32>
    tpu.vector_store %arg7[%c0_6, %c0_7], %8 {strides = array<i32>} : memref<2x1024xf32, #tpu.memory_space<vmem>>, vector<2x1024xf32>,
    %c3_i32 = arith.constant 3 : i32
    %10 = arith.cmpi eq, %arg0, %c3_i32 : i32
    %11 = arith.extui %10 : i1 to i32
    %c0_i32_8 = arith.constant 0 : i32
    %12 = arith.cmpi ne, %11, %c0_i32_8 : i32
    scf.if %12 {
      %c0_9 = arith.constant 0 : index
      %c0_10 = arith.constant 0 : index
      %13 = vector.load %arg7[%c0_9, %c0_10] : memref<2x1024xf32, #tpu.memory_space<vmem>>, vector<2x1024xf32>
      %c0_11 = arith.constant 0 : index
      %c0_12 = arith.constant 0 : index
      %14 = vector.load %arg3[%c0_11, %c0_12] : memref<1x1024xf32, #tpu.memory_space<vmem>>, vector<1x1024xf32>
      %15 = vector.broadcast %14 : vector<1x1024xf32> to vector<2x1024xf32>
      %16 = arith.addf %13, %15 : vector<2x1024xf32>
      %cst_13 = arith.constant 0.000000e+00 : f32
      %17 = vector.broadcast %cst_13 : f32 to vector<2x1024xf32>
      %18 = arith.maximumf %16, %17 : vector<2x1024xf32>
      %19 = arith.truncf %18 : vector<2x1024xf32> to vector<2x1024xbf16>
      %c0_14 = arith.constant 0 : index
      %c0_15 = arith.constant 0 : index
      %20 = vector.load %arg4[%c0_14, %c0_15] : memref<1024x128xbf16, #tpu.memory_space<vmem>>, vector<1024x128xbf16>
      %cst_16 = arith.constant dense<0.000000e+00> : vector<2x128xf32>
      %21 = tpu.matmul %19, %20, %cst_16 {dimension_numbers = #tpu.dot_dimension_numbers<[1], [0], [0], [1], [0, 0, 1, 1], [], []>} : vector<2x1024xbf16>, vector<1024x128xbf16>, vector<2x128xf32> -> vector<2x128xf32>
      %c0_17 = arith.constant 0 : index
      %c0_18 = arith.constant 0 : index
      %22 = vector.load %arg5[%c0_17, %c0_18] : memref<1x128xf32, #tpu.memory_space<vmem>>, vector<1x128xf32>
      %23 = vector.broadcast %22 : vector<1x128xf32> to vector<2x128xf32>
      %24 = arith.addf %21, %23 : vector<2x128xf32>
      %c0_19 = arith.constant 0 : index
      %c0_20 = arith.constant 0 : index
      %25 = vector.load %arg6[%c0_19, %c0_20] : memref<2x128xf32, #tpu.memory_space<vmem>>, vector<2x128xf32>
      tpu.vector_store %arg6[%c0_19, %c0_20], %24 {strides = array<i32>} : memref<2x128xf32, #tpu.memory_space<vmem>>, vector<2x128xf32>,
    } else {
    }
    return
  }
  func.func @transform_0(%arg0: i32) -> (i32, i32) {
    %c0_i32 = arith.constant 0 : i32
    %c0_i32_0 = arith.constant 0 : i32
    return %c0_i32, %arg0 : i32, i32
  }
  func.func @transform_1(%arg0: i32) -> (i32, i32) {
    %c0_i32 = arith.constant 0 : i32
    %c0_i32_0 = arith.constant 0 : i32
    return %arg0, %c0_i32 : i32, i32
  }
  func.func @transform_2(%arg0: i32) -> (i32, i32) {
    %c0_i32 = arith.constant 0 : i32
    %c0_i32_0 = arith.constant 0 : i32
    %c0_i32_1 = arith.constant 0 : i32
    return %c0_i32, %c0_i32_0 : i32, i32
  }
  func.func @transform_3(%arg0: i32) -> (i32, i32) {
    %c0_i32 = arith.constant 0 : i32
    %c0_i32_0 = arith.constant 0 : i32
    %c0_i32_1 = arith.constant 0 : i32
    return %c0_i32, %c0_i32_0 : i32, i32
  }
  func.func @transform_4(%arg0: i32) -> (i32, i32) {
    %c0_i32 = arith.constant 0 : i32
    %c0_i32_0 = arith.constant 0 : i32
    %c0_i32_1 = arith.constant 0 : i32
    return %c0_i32, %c0_i32_0 : i32, i32
  }
  func.func @transform_5(%arg0: i32) -> (i32, i32) {
    %c0_i32 = arith.constant 0 : i32
    %c0_i32_0 = arith.constant 0 : i32
    %c0_i32_1 = arith.constant 0 : i32
    return %c0_i32, %c0_i32_0 : i32, i32
  }
}

</mosaic_0001>

<bundles_post_ra>
// kernel: cnn_forward.2
= control target key start
LH: loop header
LB: loop body
LE: loop exit
PB: predicated region body
PF: predicated region fallthrough
CT: control target
= control target key end

     0   :  { %vm63_vm0 = vcmask 261120   ;;  %s3506_s4 = inlined_call_operand.vmem [shape: f32[32,32], index: 4, kind: input, shape index: {}]   ;;  %s3507_s0 = inlined_call_operand.vmem [shape: f32[288,32], index: 0, kind: input, shape index: {}]   ;;  %s3508_s1 = inlined_call_operand.vmem [shape: f32[288,32], index: 1, kind: input, shape index: {}]   ;;  %s3509_s2 = inlined_call_operand.vmem [shape: f32[288,32], index: 2, kind: input, shape index: {}]   ;;  %s3510_s3 = inlined_call_operand.vmem [shape: f32[288,32], index: 3, kind: input, shape index: {}]   ;;  %s3511_s5 = inlined_call_operand.vmem [shape: f32[1,32], index: 5, kind: input, shape index: {}]   ;;  %s3512_s6 = inlined_call_operand.vmem [shape: f32[288,32], index: 6, kind: output, shape index: {}]  }
   0x1   :  { %v26_v0 = vld [vmem:[%s3506_s4 + $0x18] sm:$0xff]  ;;  %v25_v1 = vld [vmem:[%s3506_s4 + $0x10] sm:$0xff]  ;;  %v24_v2 = vld [vmem:[%s3506_s4 + $0x8] sm:$0xff] }
   0x2   :  { %2116 = vmatprep.subr.mxu0 %v26_v0  ;;  %2178 = vmatprep.subr.mxu1 %v26_v0  ;;  %v2411_v3 = vld [vmem:[%s3506_s4] sm:$0xff]  ;;  %v28_v6 = vld [vmem:[%s3507_s0 + $0x8] sm:$0xff]  ;;  %v29_v8 = vld [vmem:[%s3507_s0 + $0x10] sm:$0xff] }
   0x3   :  { %2117 = vmatpush3.msra.mxu0 %v26_v0  ;;  %2179 = vmatpush3.msra.mxu1 %v26_v0  ;;  %v27_v4 = vld [vmem:[%s3507_s0] sm:$0xff]  ;;  %v418_v7 = vld [vmem:[%s3508_s1 + $0x8] sm:$0xff]  ;;  %v419_v9 = vld [vmem:[%s3508_s1 + $0x10] sm:$0xff] }
   0x4   :  { %2118 = vmatprep.subr.mxu0 %v25_v1  ;;  %2180 = vmatprep.subr.mxu1 %v25_v1  ;;  %v417_v5 = vld [vmem:[%s3508_s1] sm:$0xff]  ;;  %v30_v10 = vld [vmem:[%s3507_s0 + $0x18] sm:$0xff]  ;;  %v32_v14 = vld [vmem:[%s3507_s0 + $0x28] sm:$0xff] }
   0x5   :  { %2119 = vmatpush3.msra.mxu0 %v25_v1  ;;  %2181 = vmatpush3.msra.mxu1 %v25_v1  ;;  %v420_v11 = vld [vmem:[%s3508_s1 + $0x18] sm:$0xff]  ;;  %v31_v12 = vld [vmem:[%s3507_s0 + $0x20] sm:$0xff]  ;;  %v422_v15 = vld [vmem:[%s3508_s1 + $0x28] sm:$0xff] }
   0x6   :  { %2120 = vmatprep.subr.mxu0 %v24_v2  ;;  %2182 = vmatprep.subr.mxu1 %v24_v2  ;;  %v421_v13 = vld [vmem:[%s3508_s1 + $0x20] sm:$0xff]  ;;  %v33_v16 = vld [vmem:[%s3507_s0 + $0x30] sm:$0xff]  ;;  %v34_v18 = vld [vmem:[%s3507_s0 + $0x38] sm:$0xff] }
   0x7   :  { %2121 = vmatpush3.msra.mxu0 %v24_v2  ;;  %2183 = vmatpush3.msra.mxu1 %v24_v2  ;;  %v423_v17 = vld [vmem:[%s3508_s1 + $0x30] sm:$0xff]  ;;  %v424_v19 = vld [vmem:[%s3508_s1 + $0x38] sm:$0xff]  ;;  %v35_v20 = vld [vmem:[%s3507_s0 + $0x40] sm:$0xff] }
   0x8   :  { %2122 = vmatprep.subr.mxu0 %v2411_v3  ;;  %2184 = vmatprep.subr.mxu1 %v2411_v3  ;;  %v425_v21 = vld [vmem:[%s3508_s1 + $0x40] sm:$0xff]  ;;  %v36_v22 = vld [vmem:[%s3507_s0 + $0x48] sm:$0xff]  ;;  %v37_v24 = vld [vmem:[%s3507_s0 + $0x50] sm:$0xff] }
   0x9   :  { %2123 = vmatpush3.msra.mxu0 %v2411_v3  ;;  %2124 = vmatprep.mubr.msk.f32.mxu0 %vm63_vm0, %v27_v4  ;;  %v426_v23 = vld [vmem:[%s3508_s1 + $0x48] sm:$0xff]  ;;  %v427_v25 = vld [vmem:[%s3508_s1 + $0x50] sm:$0xff]  ;;  %v38_v26 = vld [vmem:[%s3507_s0 + $0x58] sm:$0xff] }
   0xa   :  { %2185 = vmatpush3.msra.mxu1 %v2411_v3  ;;  %2186 = vmatprep.mubr.msk.f32.mxu1 %vm63_vm0, %v417_v5  ;;  %v428_v27 = vld [vmem:[%s3508_s1 + $0x58] sm:$0xff]  ;;  %v39_v28 = vld [vmem:[%s3507_s0 + $0x60] sm:$0xff]  ;;  %v40_v30 = vld [vmem:[%s3507_s0 + $0x68] sm:$0xff] }
   0xb   :  { %2125 = vmatmul.mubr.msk.f32.vlgmr.msra.gmra.mxu0 %vm63_vm0, %v28_v6  ;;  %2187 = vmatmul.mubr.msk.f32.vlgmr.msra.gmra.mxu1 %vm63_vm0, %v418_v7  ;;  %v429_v29 = vld [vmem:[%s3508_s1 + $0x60] sm:$0xff]  ;;  %v430_v31 = vld [vmem:[%s3508_s1 + $0x68] sm:$0xff]  ;;  %v41_v32 = vld [vmem:[%s3507_s0 + $0x70] sm:$0xff] }
   0xc   :  { %2240 = vmatprep.subr.mxu0 %v26_v0  ;;  %2302 = vmatprep.subr.mxu1 %v26_v0  ;;  %v431_v33 = vld [vmem:[%s3508_s1 + $0x70] sm:$0xff]  ;;  %v42_v34 = vld [vmem:[%s3507_s0 + $0x78] sm:$0xff]  ;;  %v43_v36 = vld [vmem:[%s3507_s0 + $0x80] sm:$0xff] }
   0xd   :  { %2241 = vmatpush3.msra.mxu0 %v26_v0  ;;  %2303 = vmatpush3.msra.mxu1 %v26_v0  ;;  %v432_v35 = vld [vmem:[%s3508_s1 + $0x78] sm:$0xff]  ;;  %v433_v37 = vld [vmem:[%s3508_s1 + $0x80] sm:$0xff]  ;;  %v44_v38 = vld [vmem:[%s3507_s0 + $0x88] sm:$0xff] }
   0xe   :  { %2127 = vmatprep.mubr.msk.f32.mxu0 %vm63_vm0, %v29_v8  ;;  %2189 = vmatprep.mubr.msk.f32.mxu1 %vm63_vm0, %v419_v9  ;;  %v434_v39 = vld [vmem:[%s3508_s1 + $0x88] sm:$0xff]  ;;  %v45_v40 = vld [vmem:[%s3507_s0 + $0x90] sm:$0xff]  ;;  %v46_v42 = vld [vmem:[%s3507_s0 + $0x98] sm:$0xff] }
   0xf   :  { %2128 = vmatmul.mubr.msk.f32.gmra.mxu0 %vm63_vm0, %v30_v10  ;;  %2190 = vmatmul.mubr.msk.f32.gmra.mxu1 %vm63_vm0, %v420_v11  ;;  %v435_v41 = vld [vmem:[%s3508_s1 + $0x90] sm:$0xff]  ;;  %v436_v43 = vld [vmem:[%s3508_s1 + $0x98] sm:$0xff]  ;;  %v47_v44 = vld [vmem:[%s3507_s0 + $0xa0] sm:$0xff] }
  0x10   :  { %2130 = vmatprep.mubr.msk.f32.mxu0 %vm63_vm0, %v31_v12  ;;  %2192 = vmatprep.mubr.msk.f32.mxu1 %vm63_vm0, %v421_v13  ;;  %v437_v45 = vld [vmem:[%s3508_s1 + $0xa0] sm:$0xff]  ;;  %v48_v46 = vld [vmem:[%s3507_s0 + $0xa8] sm:$0xff]  ;;  %v49_v48 = vld [vmem:[%s3507_s0 + $0xb0] sm:$0xff] }
  0x11   :  { %2242 = vmatprep.subr.mxu0 %v25_v1  ;;  %2304 = vmatprep.subr.mxu1 %v25_v1  ;;  %v438_v47 = vld [vmem:[%s3508_s1 + $0xa8] sm:$0xff]  ;;  %v439_v49 = vld [vmem:[%s3508_s1 + $0xb0] sm:$0xff]  ;;  %v50_v50 = vld [vmem:[%s3507_s0 + $0xb8] sm:$0xff] }
  0x12   :  { %2243 = vmatpush3.msra.mxu0 %v25_v1  ;;  %2305 = vmatpush3.msra.mxu1 %v25_v1  ;;  %v440_v51 = vld [vmem:[%s3508_s1 + $0xb8] sm:$0xff]  ;;  %v51_v52 = vld [vmem:[%s3507_s0 + $0xc0] sm:$0xff]  ;;  %v52_v54 = vld [vmem:[%s3507_s0 + $0xc8] sm:$0xff] }
  0x13   :  { %2131 = vmatmul.mubr.msk.f32.gmra.mxu0 %vm63_vm0, %v32_v14  ;;  %2193 = vmatmul.mubr.msk.f32.gmra.mxu1 %vm63_vm0, %v422_v15  ;;  %v441_v53 = vld [vmem:[%s3508_s1 + $0xc0] sm:$0xff]  ;;  %v442_v55 = vld [vmem:[%s3508_s1 + $0xc8] sm:$0xff]  ;;  %v53_v56 = vld [vmem:[%s3507_s0 + $0xd0] sm:$0xff] }
  0x14   :  { %2133 = vmatprep.mubr.msk.f32.mxu0 %vm63_vm0, %v33_v16  ;;  %2195 = vmatprep.mubr.msk.f32.mxu1 %vm63_vm0, %v423_v17  ;;  %v443_v57 = vld [vmem:[%s3508_s1 + $0xd0] sm:$0xff]  ;;  %v54_v58 = vld [vmem:[%s3507_s0 + $0xd8] sm:$0xff]  ;;  %v55_v60 = vld [vmem:[%s3507_s0 + $0xe0] sm:$0xff] }
  0x15   :  { %2244 = vmatprep.subr.mxu0 %v24_v2  ;;  %2306 = vmatprep.subr.mxu1 %v24_v2  ;;  %v444_v59 = vld [vmem:[%s3508_s1 + $0xd8] sm:$0xff]  ;;  %v445_v61 = vld [vmem:[%s3508_s1 + $0xe0] sm:$0xff]  ;;  %v56_v62 = vld [vmem:[%s3507_s0 + $0xe8] sm:$0xff] }
  0x16   :  { %2245 = vmatpush3.msra.mxu0 %v24_v2  ;;  %2307 = vmatpush3.msra.mxu1 %v24_v2  ;;  %v446_v63 = vld [vmem:[%s3508_s1 + $0xe8] sm:$0xff]  ;;  %v57_v0 = vld [vmem:[%s3507_s0 + $0xf0] sm:$0xff]  ;;  %v58_v2 = vld [vmem:[%s3507_s0 + $0xf8] sm:$0xff] }
  0x17   :  { %2134 = vmatmul.mubr.msk.f32.gmra.mxu0 %vm63_vm0, %v34_v18  ;;  %2196 = vmatmul.mubr.msk.f32.gmra.mxu1 %vm63_vm0, %v424_v19  ;;  %v447_v1 = vld [vmem:[%s3508_s1 + $0xf0] sm:$0xff]  ;;  %v59_v4 = vld [vmem:[%s3507_s0 + $0x100] sm:$0xff]  ;;  %v60_v6 = vld [vmem:[%s3507_s0 + $0x108] sm:$0xff] }
  0x18   :  { %2136 = vmatprep.mubr.msk.f32.mxu0 %vm63_vm0, %v35_v20  ;;  %2198 = vmatprep.mubr.msk.f32.mxu1 %vm63_vm0, %v425_v21  ;;  %v449_v5 = vld [vmem:[%s3508_s1 + $0x100] sm:$0xff]  ;;  %v450_v7 = vld [vmem:[%s3508_s1 + $0x108] sm:$0xff]  ;;  %v61_v8 = vld [vmem:[%s3507_s0 + $0x110] sm:$0xff] }
  0x19   :  { %2246 = vmatprep.subr.mxu0 %v2411_v3  ;;  %2308 = vmatprep.subr.mxu1 %v2411_v3  ;;  %v451_v9 = vld [vmem:[%s3508_s1 + $0x110] sm:$0xff]  ;;  %v62_v10 = vld [vmem:[%s3507_s0 + $0x118] sm:$0xff]  ;;  %v806_v12 = vld [vmem:[%s3509_s2] sm:$0xff] }
  0x1a   :  { %2247 = vmatpush3.msra.mxu0 %v2411_v3  ;;  %2309 = vmatpush3.msra.mxu1 %v2411_v3  ;;  %v448_v3 = vld [vmem:[%s3508_s1 + $0xf8] sm:$0xff]  ;;  %v1195_v13 = vld [vmem:[%s3510_s3] sm:$0xff]  ;;  %v807_v14 = vld [vmem:[%s3509_s2 + $0x8] sm:$0xff] }
  0x1b   :  { %2137 = vmatmul.mubr.msk.f32.gmra.mxu0 %vm63_vm0, %v36_v22  ;;  %2199 = vmatmul.mubr.msk.f32.gmra.mxu1 %vm63_vm0, %v426_v23  ;;  %v452_v11 = vld [vmem:[%s3508_s1 + $0x118] sm:$0xff]  ;;  %v1196_v15 = vld [vmem:[%s3510_s3 + $0x8] sm:$0xff]  ;;  %v808_v16 = vld [vmem:[%s3509_s2 + $0x10] sm:$0xff] }
  0x1c   :  { %2139 = vmatprep.mubr.msk.f32.mxu0 %vm63_vm0, %v37_v24  ;;  %2201 = vmatprep.mubr.msk.f32.mxu1 %vm63_vm0, %v427_v25  ;;  %v1197_v17 = vld [vmem:[%s3510_s3 + $0x10] sm:$0xff]  ;;  %v809_v18 = vld [vmem:[%s3509_s2 + $0x18] sm:$0xff]  ;;  %v810_v20 = vld [vmem:[%s3509_s2 + $0x20] sm:$0xff] }
  0x1d   :  { %v1198_v19 = vld [vmem:[%s3510_s3 + $0x18] sm:$0xff]  ;;  %v1199_v21 = vld [vmem:[%s3510_s3 + $0x20] sm:$0xff]  ;;  %v811_v22 = vld [vmem:[%s3509_s2 + $0x28] sm:$0xff] }
  0x1e   :  { %v1200_v23 = vld [vmem:[%s3510_s3 + $0x28] sm:$0xff]  ;;  %v812_v24 = vld [vmem:[%s3509_s2 + $0x30] sm:$0xff] }
  0x1f   :  { %2140 = vmatmul.mubr.msk.f32.gmra.mxu0 %vm63_vm0, %v38_v26  ;;  %2202 = vmatmul.mubr.msk.f32.gmra.mxu1 %vm63_vm0, %v428_v27  ;;  %v1201_v25 = vld [vmem:[%s3510_s3 + $0x30] sm:$0xff]  ;;  %v813_v26 = vld [vmem:[%s3509_s2 + $0x38] sm:$0xff] }
  0x20   :  { %2142 = vmatprep.mubr.msk.f32.mxu0 %vm63_vm0, %v39_v28  ;;  %2204 = vmatprep.mubr.msk.f32.mxu1 %vm63_vm0, %v429_v29  ;;  %v1202_v27 = vld [vmem:[%s3510_s3 + $0x38] sm:$0xff]  ;;  %v814_v28 = vld [vmem:[%s3509_s2 + $0x40] sm:$0xff] }
  0x21   :  { %v1203_v29 = vld [vmem:[%s3510_s3 + $0x40] sm:$0xff] }
  0x23   :  { %2143 = vmatmul.mubr.msk.f32.gmra.mxu0 %vm63_vm0, %v40_v30  ;;  %2205 = vmatmul.mubr.msk.f32.gmra.mxu1 %vm63_vm0, %v430_v31  ;;  %v815_v30 = vld [vmem:[%s3509_s2 + $0x48] sm:$0xff] }
  0x24   :  { %2145 = vmatprep.mubr.msk.f32.mxu0 %vm63_vm0, %v41_v32  ;;  %2207 = vmatprep.mubr.msk.f32.mxu1 %vm63_vm0, %v431_v33  ;;  %v1204_v31 = vld [vmem:[%s3510_s3 + $0x48] sm:$0xff]  ;;  %v816_v32 = vld [vmem:[%s3509_s2 + $0x50] sm:$0xff] }
  0x25   :  { %v1205_v33 = vld [vmem:[%s3510_s3 + $0x50] sm:$0xff] }
  0x27   :  { %2146 = vmatmul.mubr.msk.f32.gmra.mxu0 %vm63_vm0, %v42_v34  ;;  %2208 = vmatmul.mubr.msk.f32.gmra.mxu1 %vm63_vm0, %v432_v35  ;;  %v817_v34 = vld [vmem:[%s3509_s2 + $0x58] sm:$0xff] }
  0x28   :  { %2148 = vmatprep.mubr.msk.f32.mxu0 %vm63_vm0, %v43_v36  ;;  %2210 = vmatprep.mubr.msk.f32.mxu1 %vm63_vm0, %v433_v37  ;;  %v1206_v35 = vld [vmem:[%s3510_s3 + $0x58] sm:$0xff]  ;;  %v818_v36 = vld [vmem:[%s3509_s2 + $0x60] sm:$0xff] }
  0x29   :  { %v1207_v37 = vld [vmem:[%s3510_s3 + $0x60] sm:$0xff] }
  0x2b   :  { %2149 = vmatmul.mubr.msk.f32.gmra.mxu0 %vm63_vm0, %v44_v38  ;;  %2211 = vmatmul.mubr.msk.f32.gmra.mxu1 %vm63_vm0, %v434_v39  ;;  %v819_v38 = vld [vmem:[%s3509_s2 + $0x68] sm:$0xff] }
  0x2c   :  { %2151 = vmatprep.mubr.msk.f32.mxu0 %vm63_vm0, %v45_v40  ;;  %2213 = vmatprep.mubr.msk.f32.mxu1 %vm63_vm0, %v435_v41  ;;  %v1208_v39 = vld [vmem:[%s3510_s3 + $0x68] sm:$0xff]  ;;  %v820_v40 = vld [vmem:[%s3509_s2 + $0x70] sm:$0xff] }
  0x2d   :  { %v1209_v41 = vld [vmem:[%s3510_s3 + $0x70] sm:$0xff] }
  0x2f   :  { %2152 = vmatmul.mubr.msk.f32.gmra.mxu0 %vm63_vm0, %v46_v42  ;;  %2214 = vmatmul.mubr.msk.f32.gmra.mxu1 %vm63_vm0, %v436_v43  ;;  %v821_v42 = vld [vmem:[%s3509_s2 + $0x78] sm:$0xff] }
  0x30   :  { %2154 = vmatprep.mubr.msk.f32.mxu0 %vm63_vm0, %v47_v44  ;;  %2216 = vmatprep.mubr.msk.f32.mxu1 %vm63_vm0, %v437_v45  ;;  %v1210_v43 = vld [vmem:[%s3510_s3 + $0x78] sm:$0xff]  ;;  %v822_v44 = vld [vmem:[%s3509_s2 + $0x80] sm:$0xff] }
  0x31   :  { %v1211_v45 = vld [vmem:[%s3510_s3 + $0x80] sm:$0xff] }
  0x33   :  { %2155 = vmatmul.mubr.msk.f32.gmra.mxu0 %vm63_vm0, %v48_v46  ;;  %2217 = vmatmul.mubr.msk.f32.gmra.mxu1 %vm63_vm0, %v438_v47  ;;  %v823_v46 = vld [vmem:[%s3509_s2 + $0x88] sm:$0xff] }
  0x34   :  { %2157 = vmatprep.mubr.msk.f32.mxu0 %vm63_vm0, %v49_v48  ;;  %2219 = vmatprep.mubr.msk.f32.mxu1 %vm63_vm0, %v439_v49  ;;  %v1212_v47 = vld [vmem:[%s3510_s3 + $0x88] sm:$0xff]  ;;  %v824_v48 = vld [vmem:[%s3509_s2 + $0x90] sm:$0xff] }
  0x35   :  { %v1213_v49 = vld [vmem:[%s3510_s3 + $0x90] sm:$0xff] }
  0x37   :  { %2158 = vmatmul.mubr.msk.f32.gmra.mxu0 %vm63_vm0, %v50_v50  ;;  %2220 = vmatmul.mubr.msk.f32.gmra.mxu1 %vm63_vm0, %v440_v51  ;;  %v825_v50 = vld [vmem:[%s3509_s2 + $0x98] sm:$0xff] }
  0x38   :  { %2160 = vmatprep.mubr.msk.f32.mxu0 %vm63_vm0, %v51_v52  ;;  %2222 = vmatprep.mubr.msk.f32.mxu1 %vm63_vm0, %v441_v53  ;;  %v1214_v51 = vld [vmem:[%s3510_s3 + $0x98] sm:$0xff]  ;;  %v826_v52 = vld [vmem:[%s3509_s2 + $0xa0] sm:$0xff] }
  0x39   :  { %v1215_v53 = vld [vmem:[%s3510_s3 + $0xa0] sm:$0xff] }
  0x3b   :  { %2161 = vmatmul.mubr.msk.f32.gmra.mxu0 %vm63_vm0, %v52_v54  ;;  %2223 = vmatmul.mubr.msk.f32.gmra.mxu1 %vm63_vm0, %v442_v55  ;;  %v827_v54 = vld [vmem:[%s3509_s2 + $0xa8] sm:$0xff] }
  0x3c   :  { %2163 = vmatprep.mubr.msk.f32.mxu0 %vm63_vm0, %v53_v56  ;;  %2225 = vmatprep.mubr.msk.f32.mxu1 %vm63_vm0, %v443_v57  ;;  %v1216_v55 = vld [vmem:[%s3510_s3 + $0xa8] sm:$0xff]  ;;  %v828_v56 = vld [vmem:[%s3509_s2 + $0xb0] sm:$0xff] }
  0x3d   :  { %v1217_v57 = vld [vmem:[%s3510_s3 + $0xb0] sm:$0xff] }
  0x3f   :  { %2164 = vmatmul.mubr.msk.f32.gmra.mxu0 %vm63_vm0, %v54_v58  ;;  %2226 = vmatmul.mubr.msk.f32.gmra.mxu1 %vm63_vm0, %v444_v59  ;;  %v829_v58 = vld [vmem:[%s3509_s2 + $0xb8] sm:$0xff] }
  0x40   :  { %2166 = vmatprep.mubr.msk.f32.mxu0 %vm63_vm0, %v55_v60  ;;  %2228 = vmatprep.mubr.msk.f32.mxu1 %vm63_vm0, %v445_v61  ;;  %v1218_v59 = vld [vmem:[%s3510_s3 + $0xb8] sm:$0xff]  ;;  %v830_v60 = vld [vmem:[%s3509_s2 + $0xc0] sm:$0xff] }
  0x41   :  { %v1219_v61 = vld [vmem:[%s3510_s3 + $0xc0] sm:$0xff] }
  0x43   :  { %2167 = vmatmul.mubr.msk.f32.gmra.mxu0 %vm63_vm0, %v56_v62  ;;  %2229 = vmatmul.mubr.msk.f32.gmra.mxu1 %vm63_vm0, %v446_v63  ;;  %v831_v62 = vld [vmem:[%s3509_s2 + $0xc8] sm:$0xff] }
  0x44   :  { %2169 = vmatprep.mubr.msk.f32.mxu0 %vm63_vm0, %v57_v0  ;;  %2231 = vmatprep.mubr.msk.f32.mxu1 %vm63_vm0, %v447_v1  ;;  %v1220_v63 = vld [vmem:[%s3510_s3 + $0xc8] sm:$0xff]  ;;  %v832_v0 = vld [vmem:[%s3509_s2 + $0xd0] sm:$0xff] }
  0x45   :  { %v1221_v1 = vld [vmem:[%s3510_s3 + $0xd0] sm:$0xff] }
  0x47   :  { %2170 = vmatmul.mubr.msk.f32.gmra.mxu0 %vm63_vm0, %v58_v2  ;;  %2232 = vmatmul.mubr.msk.f32.gmra.mxu1 %vm63_vm0, %v448_v3  ;;  %v833_v2 = vld [vmem:[%s3509_s2 + $0xd8] sm:$0xff] }
  0x48   :  { %2172 = vmatprep.mubr.msk.f32.mxu0 %vm63_vm0, %v59_v4  ;;  %2234 = vmatprep.mubr.msk.f32.mxu1 %vm63_vm0, %v449_v5  ;;  %v1222_v3 = vld [vmem:[%s3510_s3 + $0xd8] sm:$0xff]  ;;  %v834_v4 = vld [vmem:[%s3509_s2 + $0xe0] sm:$0xff] }
  0x49   :  { %v1223_v5 = vld [vmem:[%s3510_s3 + $0xe0] sm:$0xff] }
  0x4b   :  { %2173 = vmatmul.mubr.msk.f32.gmra.mxu0 %vm63_vm0, %v60_v6  ;;  %2235 = vmatmul.mubr.msk.f32.gmra.mxu1 %vm63_vm0, %v450_v7  ;;  %v835_v6 = vld [vmem:[%s3509_s2 + $0xe8] sm:$0xff] }
  0x4c   :  { %2175 = vmatprep.mubr.msk.f32.mxu0 %vm63_vm0, %v61_v8  ;;  %2237 = vmatprep.mubr.msk.f32.mxu1 %vm63_vm0, %v451_v9  ;;  %v1224_v7 = vld [vmem:[%s3510_s3 + $0xe8] sm:$0xff]  ;;  %v836_v8 = vld [vmem:[%s3509_s2 + $0xf0] sm:$0xff] }
  0x4d   :  { %v1225_v9 = vld [vmem:[%s3510_s3 + $0xf0] sm:$0xff] }
  0x4f   :  { %2176 = vmatmul.mubr.msk.f32.gmra.mxu0 %vm63_vm0, %v62_v10  ;;  %2238 = vmatmul.mubr.msk.f32.gmra.mxu1 %vm63_vm0, %v452_v11  ;;  %v837_v10 = vld [vmem:[%s3509_s2 + $0xf8] sm:$0xff] }
  0x50   :  { %2248 = vmatprep.mubr.msk.f32.mxu0 %vm63_vm0, %v806_v12  ;;  %2310 = vmatprep.mubr.msk.f32.mxu1 %vm63_vm0, %v1195_v13  ;;  %v1226_v11 = vld [vmem:[%s3510_s3 + $0xf8] sm:$0xff]  ;;  %v838_v12 = vld [vmem:[%s3509_s2 + $0x100] sm:$0xff] }
  0x51   :  { %v1227_v13 = vld [vmem:[%s3510_s3 + $0x100] sm:$0xff] }
  0x53   :  { %2249 = vmatmul.mubr.msk.f32.vlgmr.msra.gmra.mxu0 %vm63_vm0, %v807_v14  ;;  %2311 = vmatmul.mubr.msk.f32.vlgmr.msra.gmra.mxu1 %vm63_vm0, %v1196_v15  ;;  %v839_v14 = vld [vmem:[%s3509_s2 + $0x108] sm:$0xff] }
  0x54   :  { %2251 = vmatprep.mubr.msk.f32.mxu0 %vm63_vm0, %v808_v16  ;;  %2313 = vmatprep.mubr.msk.f32.mxu1 %vm63_vm0, %v1197_v17  ;;  %v1228_v15 = vld [vmem:[%s3510_s3 + $0x108] sm:$0xff]  ;;  %v840_v16 = vld [vmem:[%s3509_s2 + $0x110] sm:$0xff] }
  0x55   :  { %v1229_v17 = vld [vmem:[%s3510_s3 + $0x110] sm:$0xff] }
  0x57   :  { %2252 = vmatmul.mubr.msk.f32.gmra.mxu0 %vm63_vm0, %v809_v18  ;;  %2314 = vmatmul.mubr.msk.f32.gmra.mxu1 %vm63_vm0, %v1198_v19  ;;  %v841_v18 = vld [vmem:[%s3509_s2 + $0x118] sm:$0xff] }
  0x58   :  { %2254 = vmatprep.mubr.msk.f32.mxu0 %vm63_vm0, %v810_v20  ;;  %2316 = vmatprep.mubr.msk.f32.mxu1 %vm63_vm0, %v1199_v21  ;;  %v1230_v19 = vld [vmem:[%s3510_s3 + $0x118] sm:$0xff] }
  0x5b   :  { %2255 = vmatmul.mubr.msk.f32.gmra.mxu0 %vm63_vm0, %v811_v22  ;;  %2317 = vmatmul.mubr.msk.f32.gmra.mxu1 %vm63_vm0, %v1200_v23 }
  0x5c   :  { %2257 = vmatprep.mubr.msk.f32.mxu0 %vm63_vm0, %v812_v24  ;;  %2319 = vmatprep.mubr.msk.f32.mxu1 %vm63_vm0, %v1201_v25 }
  0x5f   :  { %2258 = vmatmul.mubr.msk.f32.gmra.mxu0 %vm63_vm0, %v813_v26  ;;  %2320 = vmatmul.mubr.msk.f32.gmra.mxu1 %vm63_vm0, %v1202_v27 }
  0x60   :  { %2260 = vmatprep.mubr.msk.f32.mxu0 %vm63_vm0, %v814_v28  ;;  %2322 = vmatprep.mubr.msk.f32.mxu1 %vm63_vm0, %v1203_v29 }
  0x63   :  { %2261 = vmatmul.mubr.msk.f32.gmra.mxu0 %vm63_vm0, %v815_v30  ;;  %2323 = vmatmul.mubr.msk.f32.gmra.mxu1 %vm63_vm0, %v1204_v31 }
  0x64   :  { %2263 = vmatprep.mubr.msk.f32.mxu0 %vm63_vm0, %v816_v32  ;;  %2325 = vmatprep.mubr.msk.f32.mxu1 %vm63_vm0, %v1205_v33 }
  0x67   :  { %2264 = vmatmul.mubr.msk.f32.gmra.mxu0 %vm63_vm0, %v817_v34  ;;  %2326 = vmatmul.mubr.msk.f32.gmra.mxu1 %vm63_vm0, %v1206_v35 }
  0x68   :  { %2266 = vmatprep.mubr.msk.f32.mxu0 %vm63_vm0, %v818_v36  ;;  %2328 = vmatprep.mubr.msk.f32.mxu1 %vm63_vm0, %v1207_v37 }
  0x6b   :  { %2267 = vmatmul.mubr.msk.f32.gmra.mxu0 %vm63_vm0, %v819_v38  ;;  %2329 = vmatmul.mubr.msk.f32.gmra.mxu1 %vm63_vm0, %v1208_v39 }
  0x6c   :  { %2269 = vmatprep.mubr.msk.f32.mxu0 %vm63_vm0, %v820_v40  ;;  %2331 = vmatprep.mubr.msk.f32.mxu1 %vm63_vm0, %v1209_v41 }
  0x6f   :  { %2270 = vmatmul.mubr.msk.f32.gmra.mxu0 %vm63_vm0, %v821_v42  ;;  %2332 = vmatmul.mubr.msk.f32.gmra.mxu1 %vm63_vm0, %v1210_v43 }
  0x70   :  { %2272 = vmatprep.mubr.msk.f32.mxu0 %vm63_vm0, %v822_v44  ;;  %2334 = vmatprep.mubr.msk.f32.mxu1 %vm63_vm0, %v1211_v45 }
  0x73   :  { %2273 = vmatmul.mubr.msk.f32.gmra.mxu0 %vm63_vm0, %v823_v46  ;;  %2335 = vmatmul.mubr.msk.f32.gmra.mxu1 %vm63_vm0, %v1212_v47 }
  0x74   :  { %2275 = vmatprep.mubr.msk.f32.mxu0 %vm63_vm0, %v824_v48  ;;  %2337 = vmatprep.mubr.msk.f32.mxu1 %vm63_vm0, %v1213_v49 }
  0x77   :  { %2276 = vmatmul.mubr.msk.f32.gmra.mxu0 %vm63_vm0, %v825_v50  ;;  %2338 = vmatmul.mubr.msk.f32.gmra.mxu1 %vm63_vm0, %v1214_v51 }
  0x78   :  { %2278 = vmatprep.mubr.msk.f32.mxu0 %vm63_vm0, %v826_v52  ;;  %2340 = vmatprep.mubr.msk.f32.mxu1 %vm63_vm0, %v1215_v53 }
  0x7b   :  { %2279 = vmatmul.mubr.msk.f32.gmra.mxu0 %vm63_vm0, %v827_v54  ;;  %2341 = vmatmul.mubr.msk.f32.gmra.mxu1 %vm63_vm0, %v1216_v55 }
  0x7c   :  { %2281 = vmatprep.mubr.msk.f32.mxu0 %vm63_vm0, %v828_v56  ;;  %2343 = vmatprep.mubr.msk.f32.mxu1 %vm63_vm0, %v1217_v57 }
  0x7f   :  { %2282 = vmatmul.mubr.msk.f32.gmra.mxu0 %vm63_vm0, %v829_v58  ;;  %2344 = vmatmul.mubr.msk.f32.gmra.mxu1 %vm63_vm0, %v1218_v59 }
  0x80   :  { %2284 = vmatprep.mubr.msk.f32.mxu0 %vm63_vm0, %v830_v60  ;;  %2346 = vmatprep.mubr.msk.f32.mxu1 %vm63_vm0, %v1219_v61 }
  0x83   :  { %2285 = vmatmul.mubr.msk.f32.gmra.mxu0 %vm63_vm0, %v831_v62  ;;  %2347 = vmatmul.mubr.msk.f32.gmra.mxu1 %vm63_vm0, %v1220_v63 }
  0x84   :  { %2287 = vmatprep.mubr.msk.f32.mxu0 %vm63_vm0, %v832_v0  ;;  %2349 = vmatprep.mubr.msk.f32.mxu1 %vm63_vm0, %v1221_v1 }
  0x87   :  { %2288 = vmatmul.mubr.msk.f32.gmra.mxu0 %vm63_vm0, %v833_v2  ;;  %2350 = vmatmul.mubr.msk.f32.gmra.mxu1 %vm63_vm0, %v1222_v3 }
  0x88   :  { %2290 = vmatprep.mubr.msk.f32.mxu0 %vm63_vm0, %v834_v4  ;;  %2352 = vmatprep.mubr.msk.f32.mxu1 %vm63_vm0, %v1223_v5 }
  0x8b   :  { %2291 = vmatmul.mubr.msk.f32.gmra.mxu0 %vm63_vm0, %v835_v6  ;;  %2353 = vmatmul.mubr.msk.f32.gmra.mxu1 %vm63_vm0, %v1224_v7 }
  0x8c   :  { %2293 = vmatprep.mubr.msk.f32.mxu0 %vm63_vm0, %v836_v8  ;;  %2355 = vmatprep.mubr.msk.f32.mxu1 %vm63_vm0, %v1225_v9 }
  0x8f   :  { %2294 = vmatmul.mubr.msk.f32.gmra.mxu0 %vm63_vm0, %v837_v10  ;;  %2356 = vmatmul.mubr.msk.f32.gmra.mxu1 %vm63_vm0, %v1226_v11 }
  0x90   :  { %2296 = vmatprep.mubr.msk.f32.mxu0 %vm63_vm0, %v838_v12  ;;  %2358 = vmatprep.mubr.msk.f32.mxu1 %vm63_vm0, %v1227_v13  ;;  %v3216_v12 = vld [vmem:[%s3511_s5] ss:$0 sm:$0xff] }
  0x93   :  { %2297 = vmatmul.mubr.msk.f32.gmra.mxu0 %vm63_vm0, %v839_v14  ;;  %2359 = vmatmul.mubr.msk.f32.gmra.mxu1 %vm63_vm0, %v1228_v15 }
  0x94   :  { %2299 = vmatprep.mubr.msk.f32.mxu0 %vm63_vm0, %v840_v16  ;;  %2361 = vmatprep.mubr.msk.f32.mxu1 %vm63_vm0, %v1229_v17 }
  0x97   :  { %2300 = vmatmul.mubr.msk.f32.gmra.mxu0 %vm63_vm0, %v841_v18  ;;  %2362 = vmatmul.mubr.msk.f32.gmra.mxu1 %vm63_vm0, %v1230_v19 }
  0xcb   :  { %v2997_v20 = vpop.f32.mrf.mxu0  ;;  %v2999_v21 = vpop.f32.mrf.mxu1 }
  0xcc   :  { %v3565_v15 = vmax.f32 %v2997_v20, %v2999_v21 }
  0xcd   :  { %v3003_v23 = vpop.f32.mrf.mxu0  ;;  %v3005_v24 = vpop.f32.mrf.mxu1 }
  0xce   :  { %v3566_v18 = vmax.f32 %v3003_v23, %v3005_v24 }
  0xcf   :  { %v3009_v26 = vpop.f32.mrf.mxu0  ;;  %v3011_v27 = vpop.f32.mrf.mxu1 }
  0xd1   :  { %v3015_v29 = vpop.f32.mrf.mxu0  ;;  %v3017_v30 = vpop.f32.mrf.mxu1 }
  0xd2   :  { %v3568_v24 = vmax.f32 %v3015_v29, %v3017_v30 }
  0xd3   :  { %v3021_v32 = vpop.f32.mrf.mxu0  ;;  %v3023_v33 = vpop.f32.mrf.mxu1 }
  0xd5   :  { %v3027_v35 = vpop.f32.mrf.mxu0  ;;  %v3029_v36 = vpop.f32.mrf.mxu1 }
  0xd7   :  { %v3033_v38 = vpop.f32.mrf.mxu0  ;;  %v3035_v39 = vpop.f32.mrf.mxu1 }
  0xd9   :  { %v3039_v41 = vpop.f32.mrf.mxu0  ;;  %v3041_v42 = vpop.f32.mrf.mxu1 }
  0xdb   :  { %v3045_v44 = vpop.f32.mrf.mxu0  ;;  %v3047_v45 = vpop.f32.mrf.mxu1 }
  0xdd   :  { %v3051_v47 = vpop.f32.mrf.mxu0  ;;  %v3053_v48 = vpop.f32.mrf.mxu1 }
  0xdf   :  { %v3057_v50 = vpop.f32.mrf.mxu0  ;;  %v3059_v51 = vpop.f32.mrf.mxu1 }
  0xe1   :  { %v3063_v53 = vpop.f32.mrf.mxu0  ;;  %v3065_v54 = vpop.f32.mrf.mxu1 }
  0xe3   :  { %v3069_v56 = vpop.f32.mrf.mxu0  ;;  %v3071_v57 = vpop.f32.mrf.mxu1 }
  0xe5   :  { %v3075_v59 = vpop.f32.mrf.mxu0  ;;  %v3077_v60 = vpop.f32.mrf.mxu1 }
  0xe7   :  { %v3081_v62 = vpop.f32.mrf.mxu0  ;;  %v3083_v63 = vpop.f32.mrf.mxu1 }
  0xe9   :  { %v3087_v1 = vpop.f32.mrf.mxu0  ;;  %v3089_v2 = vpop.f32.mrf.mxu1 }
  0xeb   :  { %v3093_v4 = vpop.f32.mrf.mxu0  ;;  %v3095_v5 = vpop.f32.mrf.mxu1 }
  0xed   :  { %v3099_v7 = vpop.f32.mrf.mxu0  ;;  %v3101_v8 = vpop.f32.mrf.mxu1 }
  0xef   :  { %v3105_v10 = vpop.f32.mrf.mxu0  ;;  %v3107_v11 = vpop.f32.mrf.mxu1 }
  0xf1   :  { %v3111_v13 = vpop.f32.mrf.mxu0  ;;  %v3113_v14 = vpop.f32.mrf.mxu1 }
  0xf3   :  { %v3117_v16 = vpop.f32.mrf.mxu0  ;;  %v3119_v17 = vpop.f32.mrf.mxu1 }
  0xf5   :  { %v3123_v19 = vpop.f32.mrf.mxu0  ;;  %v3125_v9 = vpop.f32.mrf.mxu1 }
  0xf7   :  { %v3129_v6 = vpop.f32.mrf.mxu0  ;;  %v3131_v3 = vpop.f32.mrf.mxu1 }
  0xf9   :  { %v3135_v0 = vpop.f32.mrf.mxu0  ;;  %v3137_v61 = vpop.f32.mrf.mxu1 }
  0xfa   :  { %3539 = vst [vmem:[#allocation2_spill] sm:$0xff] %v3135_v0  ;;  %3540 = vst [vmem:[#allocation3_spill] sm:$0xff] %v3137_v61  ;;  %v3567_v0 = vmax.f32 %v3009_v26, %v3011_v27 }
  0xfb   :  { %v3141_v58 = vpop.f32.mrf.mxu0  ;;  %v3143_v55 = vpop.f32.mrf.mxu1 }
  0xfc   :  { %3541 = vst [vmem:[#allocation4_spill] sm:$0xff] %v3141_v58  ;;  %3542 = vst [vmem:[#allocation5_spill] sm:$0xff] %v3143_v55 }
  0xfd   :  { %v3147_v52 = vpop.f32.mrf.mxu0  ;;  %v3149_v49 = vpop.f32.mrf.mxu1 }
  0xfe   :  { %3543 = vst [vmem:[#allocation6_spill] sm:$0xff] %v3147_v52  ;;  %3544 = vst [vmem:[#allocation7_spill] sm:$0xff] %v3149_v49 }
  0xff   :  { %v3153_v46 = vpop.f32.mrf.mxu0  ;;  %v3155_v43 = vpop.f32.mrf.mxu1 }
 0x100   :  { %3545 = vst [vmem:[#allocation8_spill] sm:$0xff] %v3153_v46  ;;  %3546 = vst [vmem:[#allocation9_spill] sm:$0xff] %v3155_v43 }
 0x101   :  { %v3159_v40 = vpop.f32.mrf.mxu0  ;;  %v3161_v37 = vpop.f32.mrf.mxu1 }
 0x102   :  { %3547 = vst [vmem:[#allocation10_spill] sm:$0xff] %v3159_v40  ;;  %3548 = vst [vmem:[#allocation11_spill] sm:$0xff] %v3161_v37 }
 0x103   :  { %v3165_v34 = vpop.f32.mrf.mxu0  ;;  %v3167_v31 = vpop.f32.mrf.mxu1 }
 0x104   :  { %3549 = vst [vmem:[#allocation12_spill] sm:$0xff] %v3165_v34  ;;  %3550 = vst [vmem:[#allocation13_spill] sm:$0xff] %v3167_v31 }
 0x105   :  { %v3171_v28 = vpop.f32.mrf.mxu0  ;;  %v3173_v25 = vpop.f32.mrf.mxu1 }
 0x106   :  { %3551 = vst [vmem:[#allocation14_spill] sm:$0xff] %v3171_v28  ;;  %3552 = vst [vmem:[#allocation15_spill] sm:$0xff] %v3173_v25 }
 0x107   :  { %v3177_v22 = vpop.f32.mrf.mxu0  ;;  %v3179_v43 = vpop.f32.mrf.mxu1 }
 0x108   :  { %3553 = vst [vmem:[#allocation16_spill] sm:$0xff] %v3177_v22  ;;  %3554 = vst [vmem:[#allocation17_spill] sm:$0xff] %v3179_v43 }
 0x109   :  { %v3183_v37 = vpop.f32.mrf.mxu0  ;;  %v3185_v40 = vpop.f32.mrf.mxu1 }
 0x10a   :  { %3555 = vst [vmem:[#allocation18_spill] sm:$0xff] %v3183_v37  ;;  %3556 = vst [vmem:[#allocation19_spill] sm:$0xff] %v3185_v40 }
 0x10b   :  { %v3189_v31 = vpop.f32.mrf.mxu0  ;;  %v3191_v34 = vpop.f32.mrf.mxu1 }
 0x10c   :  { %3557 = vst [vmem:[#allocation20_spill] sm:$0xff] %v3189_v31  ;;  %3558 = vst [vmem:[#allocation21_spill] sm:$0xff] %v3191_v34 }
 0x10d   :  { %v3195_v25 = vpop.f32.mrf.mxu0  ;;  %v3197_v28 = vpop.f32.mrf.mxu1 }
 0x10e   :  { %3559 = vst [vmem:[#allocation22_spill] sm:$0xff] %v3195_v25  ;;  %3560 = vst [vmem:[#allocation23_spill] sm:$0xff] %v3197_v28 }
 0x10f   :  { %v3201_v43 = vpop.f32.mrf.mxu0  ;;  %v3203_v22 = vpop.f32.mrf.mxu1 }
 0x110   :  { %3561 = vst [vmem:[#allocation24_spill] sm:$0xff] %v3201_v43  ;;  %3562 = vst [vmem:[#allocation25_spill] sm:$0xff] %v3203_v22 }
 0x111   :  { %v3207_v40 = vpop.f32.mrf.mxu0  ;;  %v3209_v37 = vpop.f32.mrf.mxu1 }
 0x112   :  { %3563 = vst [vmem:[#allocation26_spill] sm:$0xff] %v3207_v40  ;;  %3564 = vst [vmem:[#allocation27_spill] sm:$0xff] %v3209_v37 }
 0x113   :  { %v2250_v34 = vpop.f32.mrf.mxu0  ;;  %v2312_v31 = vpop.f32.mrf.mxu1 }
 0x114   :  { %v1621_v46 = vmax.f32 %v2250_v34, %v2312_v31 }
 0x115   :  { %v1016_v28 = vpop.f32.mrf.mxu0  ;;  %v1405_v25 = vpop.f32.mrf.mxu1 }
 0x116   :  { %v1657_v22 = vmax.f32 %v3565_v15, %v1621_v46  ;;  %v1620_v43 = vmax.f32 %v1016_v28, %v1405_v25 }
 0x117   :  { %v2253_v49 = vpop.f32.mrf.mxu0  ;;  %v2315_v52 = vpop.f32.mrf.mxu1 }
 0x118   :  { %v1700_v55 = vadd.f32 %v3216_v12, %v1657_v22  ;;  %v1656_v31 = vmax.f32 %v3566_v18, %v1620_v43  ;;  %v1623_v34 = vmax.f32 %v2253_v49, %v2315_v52 }
 0x119   :  { %v1026_v37 = vpop.f32.mrf.mxu0  ;;  %v1415_v40 = vpop.f32.mrf.mxu1 }
 0x11a   :  { %v1736_v58 = vmax.f32 %v1700_v55, 0.0  ;;  %v1699_v61 = vadd.f32 %v3216_v12, %v1656_v31  ;;  %v1659_v20 = vmax.f32 %v3567_v0, %v1623_v34  ;;  %v1622_v21 = vmax.f32 %v1026_v37, %v1415_v40 }
 0x11b   :  { %v2256_v25 = vpop.f32.mrf.mxu0  ;;  %v2318_v28 = vpop.f32.mrf.mxu1  ;;  %v3569_v37 = vmax.f32 %v3021_v32, %v3023_v33  ;;  %v3570_v0 = vmax.f32 %v3027_v35, %v3029_v36 }
 0x11c   :  { %1772 = vst.msk [vmem:[%s3512_s6 + $0x8] sm:$0xff] %vm63_vm0, %v1736_v58  ;;  %v1735_v22 = vmax.f32 %v1699_v61, 0.0  ;;  %v1702_v23 = vadd.f32 %v3216_v12, %v1659_v20  ;;  %v1658_v43 = vmax.f32 %v3568_v24, %v1622_v21  ;;  %v1625_v46 = vmax.f32 %v2256_v25, %v2318_v28 }
 0x11d   :  { %v1036_v49 = vpop.f32.mrf.mxu0  ;;  %v1425_v52 = vpop.f32.mrf.mxu1  ;;  %v3571_v20 = vmax.f32 %v3033_v38, %v3035_v39 }
 0x11e   :  { %1771 = vst.msk [vmem:[%s3512_s6] sm:$0xff] %vm63_vm0, %v1735_v22  ;;  %v1738_v26 = vmax.f32 %v1702_v23, 0.0  ;;  %v1701_v27 = vadd.f32 %v3216_v12, %v1658_v43  ;;  %v1661_v40 = vmax.f32 %v3569_v37, %v1625_v46  ;;  %v1624_v55 = vmax.f32 %v1036_v49, %v1425_v52 }
 0x11f   :  { %v2259_v58 = vpop.f32.mrf.mxu0  ;;  %v2321_v61 = vpop.f32.mrf.mxu1  ;;  %v3572_v23 = vmax.f32 %v3039_v41, %v3041_v42  ;;  %v3573_v52 = vmax.f32 %v3045_v44, %v3047_v45 }
 0x120   :  { %1774 = vst.msk [vmem:[%s3512_s6 + $0x18] sm:$0xff] %vm63_vm0, %v1738_v26  ;;  %v1737_v29 = vmax.f32 %v1701_v27, 0.0  ;;  %v1704_v30 = vadd.f32 %v3216_v12, %v1661_v40  ;;  %v1660_v15 = vmax.f32 %v3570_v0, %v1624_v55  ;;  %v1627_v18 = vmax.f32 %v2259_v58, %v2321_v61 }
 0x121   :  { %v1046_v31 = vpop.f32.mrf.mxu0  ;;  %v1435_v34 = vpop.f32.mrf.mxu1  ;;  %v3574_v55 = vmax.f32 %v3051_v47, %v3053_v48  ;;  %v3575_v0 = vmax.f32 %v3057_v50, %v3059_v51 }
 0x122   :  { %1773 = vst.msk [vmem:[%s3512_s6 + $0x10] sm:$0xff] %vm63_vm0, %v1737_v29  ;;  %v1740_v32 = vmax.f32 %v1704_v30, 0.0  ;;  %v1703_v33 = vadd.f32 %v3216_v12, %v1660_v15  ;;  %v1663_v21 = vmax.f32 %v3571_v20, %v1627_v18  ;;  %v1626_v25 = vmax.f32 %v1046_v31, %v1435_v34 }
 0x123   :  { %v2262_v28 = vpop.f32.mrf.mxu0  ;;  %v2324_v22 = vpop.f32.mrf.mxu1 }
 0x124   :  { %1776 = vst.msk [vmem:[%s3512_s6 + $0x28] sm:$0xff] %vm63_vm0, %v1740_v32  ;;  %v1739_v35 = vmax.f32 %v1703_v33, 0.0  ;;  %v1706_v36 = vadd.f32 %v3216_v12, %v1663_v21  ;;  %v1662_v24 = vmax.f32 %v3572_v23, %v1626_v25  ;;  %v1629_v43 = vmax.f32 %v2262_v28, %v2324_v22 }
 0x125   :  { %v1056_v46 = vpop.f32.mrf.mxu0  ;;  %v1445_v49 = vpop.f32.mrf.mxu1  ;;  %v3576_v32 = vmax.f32 %v3063_v53, %v3065_v54  ;;  %v3577_v28 = vmax.f32 %v3069_v56, %v3071_v57 }
 0x126   :  { %1775 = vst.msk [vmem:[%s3512_s6 + $0x20] sm:$0xff] %vm63_vm0, %v1739_v35  ;;  %v1742_v38 = vmax.f32 %v1706_v36, 0.0  ;;  %v1705_v39 = vadd.f32 %v3216_v12, %v1662_v24  ;;  %v1665_v26 = vmax.f32 %v3573_v52, %v1629_v43  ;;  %v1628_v27 = vmax.f32 %v1056_v46, %v1445_v49 }
 0x127   :  { %v2265_v37 = vpop.f32.mrf.mxu0  ;;  %v2327_v40 = vpop.f32.mrf.mxu1  ;;  %v3578_v24 = vmax.f32 %v3075_v59, %v3077_v60 }
 0x128   :  { %1778 = vst.msk [vmem:[%s3512_s6 + $0x38] sm:$0xff] %vm63_vm0, %v1742_v38  ;;  %v1741_v41 = vmax.f32 %v1705_v39, 0.0  ;;  %v1708_v42 = vadd.f32 %v3216_v12, %v1665_v26  ;;  %v1664_v58 = vmax.f32 %v3574_v55, %v1628_v27  ;;  %v1631_v61 = vmax.f32 %v2265_v37, %v2327_v40 }
 0x129   :  { %v1066_v29 = vpop.f32.mrf.mxu0  ;;  %v1455_v30 = vpop.f32.mrf.mxu1  ;;  %v3579_v39 = vmax.f32 %v3081_v62, %v3083_v63  ;;  %v3580_v40 = vmax.f32 %v3087_v1, %v3089_v2 }
 0x12a   :  { %1777 = vst.msk [vmem:[%s3512_s6 + $0x30] sm:$0xff] %vm63_vm0, %v1741_v41  ;;  %v1744_v44 = vmax.f32 %v1708_v42, 0.0  ;;  %v1707_v45 = vadd.f32 %v3216_v12, %v1664_v58  ;;  %v1667_v15 = vmax.f32 %v3575_v0, %v1631_v61  ;;  %v1630_v18 = vmax.f32 %v1066_v29, %v1455_v30 }
 0x12b   :  { %v2268_v31 = vpop.f32.mrf.mxu0  ;;  %v2330_v34 = vpop.f32.mrf.mxu1  ;;  %v3581_v61 = vmax.f32 %v3093_v4, %v3095_v5  ;;  %v3582_v0 = vmax.f32 %v3099_v7, %v3101_v8 }
 0x12c   :  { %1780 = vst.msk [vmem:[%s3512_s6 + $0x48] sm:$0xff] %vm63_vm0, %v1744_v44  ;;  %v1743_v47 = vmax.f32 %v1707_v45, 0.0  ;;  %v1710_v48 = vadd.f32 %v3216_v12, %v1667_v15  ;;  %v1666_v33 = vmax.f32 %v3576_v32, %v1630_v18  ;;  %v1633_v20 = vmax.f32 %v2268_v31, %v2330_v34 }
 0x12d   :  { %v1076_v21 = vpop.f32.mrf.mxu0  ;;  %v1465_v25 = vpop.f32.mrf.mxu1 }
 0x12e   :  { %1779 = vst.msk [vmem:[%s3512_s6 + $0x40] sm:$0xff] %vm63_vm0, %v1743_v47  ;;  %v1746_v50 = vmax.f32 %v1710_v48, 0.0  ;;  %v1709_v51 = vadd.f32 %v3216_v12, %v1666_v33  ;;  %v1669_v22 = vmax.f32 %v3577_v28, %v1633_v20  ;;  %v1632_v35 = vmax.f32 %v1076_v21, %v1465_v25 }
 0x12f   :  { %v2271_v36 = vpop.f32.mrf.mxu0  ;;  %v2333_v23 = vpop.f32.mrf.mxu1  ;;  %v3583_v47 = vmax.f32 %v3105_v10, %v3107_v11  ;;  %v3584_v21 = vmax.f32 %v3111_v13, %v3113_v14 }
 0x130   :  { %1782 = vst.msk [vmem:[%s3512_s6 + $0x58] sm:$0xff] %vm63_vm0, %v1746_v50  ;;  %v1745_v53 = vmax.f32 %v1709_v51, 0.0  ;;  %v1712_v54 = vadd.f32 %v3216_v12, %v1669_v22  ;;  %v1668_v43 = vmax.f32 %v3578_v24, %v1632_v35  ;;  %v1635_v46 = vmax.f32 %v2271_v36, %v2333_v23 }
 0x131   :  { %v1086_v49 = vpop.f32.mrf.mxu0  ;;  %v1475_v38 = vpop.f32.mrf.mxu1  ;;  %v3585_v22 = vmax.f32 %v3117_v16, %v3119_v17 }
 0x132   :  { %1781 = vst.msk [vmem:[%s3512_s6 + $0x50] sm:$0xff] %vm63_vm0, %v1745_v53  ;;  %v1748_v56 = vmax.f32 %v1712_v54, 0.0  ;;  %v1711_v57 = vadd.f32 %v3216_v12, %v1668_v43  ;;  %v1671_v52 = vmax.f32 %v3579_v39, %v1635_v46  ;;  %v1634_v26 = vmax.f32 %v1086_v49, %v1475_v38 }
 0x133   :  { %v2274_v27 = vpop.f32.mrf.mxu0  ;;  %v2336_v37 = vpop.f32.mrf.mxu1  ;;  %v3586_v54 = vmax.f32 %v3123_v19, %v3125_v9  ;;  %v3587_v38 = vmax.f32 %v3129_v6, %v3131_v3 }
 0x134   :  { %1784 = vst.msk [vmem:[%s3512_s6 + $0x68] sm:$0xff] %vm63_vm0, %v1748_v56  ;;  %v1747_v59 = vmax.f32 %v1711_v57, 0.0  ;;  %v1714_v60 = vadd.f32 %v3216_v12, %v1671_v52  ;;  %v1670_v41 = vmax.f32 %v3580_v40, %v1634_v26  ;;  %v1637_v42 = vmax.f32 %v2274_v27, %v2336_v37  ;;  %v3588_v26 = vld [vmem:[#allocation2_spill] sm:$0xff]  ;;  %v3589_v27 = vld [vmem:[#allocation3_spill] sm:$0xff] }
 0x135   :  { %v1096_v55 = vpop.f32.mrf.mxu0  ;;  %v1485_v58 = vpop.f32.mrf.mxu1  ;;  %v3590_v37 = vmax.f32 %v3588_v26, %v3589_v27  ;;  %v3609_v26 = vld [vmem:[#allocation16_spill] sm:$0xff]  ;;  %v3610_v27 = vld [vmem:[#allocation17_spill] sm:$0xff] }
 0x136   :  { %1783 = vst.msk [vmem:[%s3512_s6 + $0x60] sm:$0xff] %vm63_vm0, %v1747_v59  ;;  %v1750_v62 = vmax.f32 %v1714_v60, 0.0  ;;  %v1713_v63 = vadd.f32 %v3216_v12, %v1670_v41  ;;  %v1673_v29 = vmax.f32 %v3581_v61, %v1637_v42  ;;  %v1636_v30 = vmax.f32 %v1096_v55, %v1485_v58  ;;  %v3591_v42 = vld [vmem:[#allocation4_spill] sm:$0xff]  ;;  %v3592_v55 = vld [vmem:[#allocation5_spill] sm:$0xff] }
 0x137   :  { %v2277_v44 = vpop.f32.mrf.mxu0  ;;  %v2339_v45 = vpop.f32.mrf.mxu1  ;;  %v3593_v58 = vmax.f32 %v3591_v42, %v3592_v55  ;;  %v3612_v42 = vld [vmem:[#allocation18_spill] sm:$0xff]  ;;  %v3613_v55 = vld [vmem:[#allocation19_spill] sm:$0xff] }
 0x138   :  { %1786 = vst.msk [vmem:[%s3512_s6 + $0x78] sm:$0xff] %vm63_vm0, %v1750_v62  ;;  %v1749_v1 = vmax.f32 %v1713_v63, 0.0  ;;  %v1716_v2 = vadd.f32 %v3216_v12, %v1673_v29  ;;  %v1672_v15 = vmax.f32 %v3582_v0, %v1636_v30  ;;  %v1639_v18 = vmax.f32 %v2277_v44, %v2339_v45  ;;  %v3594_v45 = vld [vmem:[#allocation6_spill] sm:$0xff] }
 0x139   :  { %v1106_v31 = vpop.f32.mrf.mxu0  ;;  %v1495_v34 = vpop.f32.mrf.mxu1 }
 0x13a   :  { %1785 = vst.msk [vmem:[%s3512_s6 + $0x70] sm:$0xff] %vm63_vm0, %v1749_v1  ;;  %v1752_v4 = vmax.f32 %v1716_v2, 0.0  ;;  %v1715_v5 = vadd.f32 %v3216_v12, %v1672_v15  ;;  %v1675_v48 = vmax.f32 %v3583_v47, %v1639_v18  ;;  %v1638_v32 = vmax.f32 %v1106_v31, %v1495_v34  ;;  %v3595_v1 = vld [vmem:[#allocation7_spill] sm:$0xff]  ;;  %v3598_v47 = vld [vmem:[#allocation9_spill] sm:$0xff] }
 0x13b   :  { %v2280_v33 = vpop.f32.mrf.mxu0  ;;  %v2342_v20 = vpop.f32.mrf.mxu1  ;;  %v3596_v2 = vmax.f32 %v3594_v45, %v3595_v1  ;;  %v3615_v45 = vld [vmem:[#allocation20_spill] sm:$0xff]  ;;  %v3616_v1 = vld [vmem:[#allocation21_spill] sm:$0xff] }
 0x13c   :  { %1788 = vst.msk [vmem:[%s3512_s6 + $0x88] sm:$0xff] %vm63_vm0, %v1752_v4  ;;  %v1751_v7 = vmax.f32 %v1715_v5, 0.0  ;;  %v1718_v8 = vadd.f32 %v3216_v12, %v1675_v48  ;;  %v1674_v25 = vmax.f32 %v3584_v21, %v1638_v32  ;;  %v1641_v50 = vmax.f32 %v2280_v33, %v2342_v20  ;;  %v3597_v5 = vld [vmem:[#allocation8_spill] sm:$0xff] }
 0x13d   :  { %v1116_v51 = vpop.f32.mrf.mxu0  ;;  %v1505_v28 = vpop.f32.mrf.mxu1  ;;  %v3599_v48 = vmax.f32 %v3597_v5, %v3598_v47  ;;  %v3618_v5 = vld [vmem:[#allocation22_spill] sm:$0xff]  ;;  %v3619_v47 = vld [vmem:[#allocation23_spill] sm:$0xff] }
 0x13e   :  { %1787 = vst.msk [vmem:[%s3512_s6 + $0x80] sm:$0xff] %vm63_vm0, %v1751_v7  ;;  %v1754_v10 = vmax.f32 %v1718_v8, 0.0  ;;  %v1717_v11 = vadd.f32 %v3216_v12, %v1674_v25  ;;  %v1677_v35 = vmax.f32 %v3585_v22, %v1641_v50  ;;  %v1640_v36 = vmax.f32 %v1116_v51, %v1505_v28  ;;  %v3600_v25 = vld [vmem:[#allocation10_spill] sm:$0xff]  ;;  %v3601_v50 = vld [vmem:[#allocation11_spill] sm:$0xff] }
 0x13f   :  { %v2283_v23 = vpop.f32.mrf.mxu0  ;;  %v2345_v53 = vpop.f32.mrf.mxu1  ;;  %v3602_v51 = vmax.f32 %v3600_v25, %v3601_v50  ;;  %v3621_v25 = vld [vmem:[#allocation24_spill] sm:$0xff]  ;;  %v3622_v50 = vld [vmem:[#allocation25_spill] sm:$0xff] }
 0x140   :  { %1790 = vst.msk [vmem:[%s3512_s6 + $0x98] sm:$0xff] %vm63_vm0, %v1754_v10  ;;  %v1753_v13 = vmax.f32 %v1717_v11, 0.0  ;;  %v1720_v14 = vadd.f32 %v3216_v12, %v1677_v35  ;;  %v1676_v24 = vmax.f32 %v3586_v54, %v1640_v36  ;;  %v1643_v43 = vmax.f32 %v2283_v23, %v2345_v53  ;;  %v3603_v23 = vld [vmem:[#allocation12_spill] sm:$0xff]  ;;  %v3604_v53 = vld [vmem:[#allocation13_spill] sm:$0xff] }
 0x141   :  { %v1126_v46 = vpop.f32.mrf.mxu0  ;;  %v1515_v49 = vpop.f32.mrf.mxu1 }
 0x142   :  { %1789 = vst.msk [vmem:[%s3512_s6 + $0x90] sm:$0xff] %vm63_vm0, %v1753_v13  ;;  %v1756_v16 = vmax.f32 %v1720_v14, 0.0  ;;  %v1719_v17 = vadd.f32 %v3216_v12, %v1676_v24  ;;  %v1679_v56 = vmax.f32 %v3587_v38, %v1643_v43  ;;  %v1642_v57 = vmax.f32 %v1126_v46, %v1515_v49 }
 0x143   :  { %v2286_v39 = vpop.f32.mrf.mxu0  ;;  %v2348_v52 = vpop.f32.mrf.mxu1  ;;  %v3605_v13 = vmax.f32 %v3603_v23, %v3604_v53 }
 0x144   :  { %1792 = vst.msk [vmem:[%s3512_s6 + $0xa8] sm:$0xff] %vm63_vm0, %v1756_v16  ;;  %v1755_v9 = vmax.f32 %v1719_v17, 0.0  ;;  %v1722_v19 = vadd.f32 %v3216_v12, %v1679_v56  ;;  %v1678_v59 = vmax.f32 %v3590_v37, %v1642_v57  ;;  %v1645_v60 = vmax.f32 %v2286_v39, %v2348_v52  ;;  %v3606_v16 = vld [vmem:[#allocation14_spill] sm:$0xff]  ;;  %v3607_v17 = vld [vmem:[#allocation15_spill] sm:$0xff] }
 0x145   :  { %v1136_v40 = vpop.f32.mrf.mxu0  ;;  %v1525_v41 = vpop.f32.mrf.mxu1  ;;  %v3608_v38 = vmax.f32 %v3606_v16, %v3607_v17  ;;  %v3611_v37 = vmax.f32 %v3609_v26, %v3610_v27 }
 0x146   :  { %1791 = vst.msk [vmem:[%s3512_s6 + $0xa0] sm:$0xff] %vm63_vm0, %v1755_v9  ;;  %v1758_v3 = vmax.f32 %v1722_v19, 0.0  ;;  %v1721_v6 = vadd.f32 %v3216_v12, %v1678_v59  ;;  %v1681_v62 = vmax.f32 %v3593_v58, %v1645_v60  ;;  %v1644_v63 = vmax.f32 %v1136_v40, %v1525_v41 }
 0x147   :  { %v2289_v61 = vpop.f32.mrf.mxu0  ;;  %v2351_v29 = vpop.f32.mrf.mxu1  ;;  %v3614_v58 = vmax.f32 %v3612_v42, %v3613_v55 }
 0x148   :  { %1794 = vst.msk [vmem:[%s3512_s6 + $0xb8] sm:$0xff] %vm63_vm0, %v1758_v3  ;;  %v1757_v30 = vmax.f32 %v1721_v6, 0.0  ;;  %v1724_v44 = vadd.f32 %v3216_v12, %v1681_v62  ;;  %v1680_v0 = vmax.f32 %v3596_v2, %v1644_v63  ;;  %v1647_v15 = vmax.f32 %v2289_v61, %v2351_v29 }
 0x149   :  { %v1146_v18 = vpop.f32.mrf.mxu0  ;;  %v1535_v31 = vpop.f32.mrf.mxu1  ;;  %v3617_v2 = vmax.f32 %v3615_v45, %v3616_v1 }
 0x14a   :  { %1793 = vst.msk [vmem:[%s3512_s6 + $0xb0] sm:$0xff] %vm63_vm0, %v1757_v30  ;;  %v1760_v34 = vmax.f32 %v1724_v44, 0.0  ;;  %v1723_v4 = vadd.f32 %v3216_v12, %v1680_v0  ;;  %v1683_v32 = vmax.f32 %v3599_v48, %v1647_v15  ;;  %v1646_v33 = vmax.f32 %v1146_v18, %v1535_v31 }
 0x14b   :  { %v2292_v20 = vpop.f32.mrf.mxu0  ;;  %v2354_v7 = vpop.f32.mrf.mxu1  ;;  %v3620_v48 = vmax.f32 %v3618_v5, %v3619_v47 }
 0x14c   :  { %1796 = vst.msk [vmem:[%s3512_s6 + $0xc8] sm:$0xff] %vm63_vm0, %v1760_v34  ;;  %v1759_v8 = vmax.f32 %v1723_v4, 0.0  ;;  %v1726_v21 = vadd.f32 %v3216_v12, %v1683_v32  ;;  %v1682_v28 = vmax.f32 %v3602_v51, %v1646_v33  ;;  %v1649_v10 = vmax.f32 %v2292_v20, %v2354_v7 }
 0x14d   :  { %v1156_v11 = vpop.f32.mrf.mxu0  ;;  %v1545_v22 = vpop.f32.mrf.mxu1  ;;  %v3623_v51 = vmax.f32 %v3621_v25, %v3622_v50 }
 0x14e   :  { %1795 = vst.msk [vmem:[%s3512_s6 + $0xc0] sm:$0xff] %vm63_vm0, %v1759_v8  ;;  %v1762_v35 = vmax.f32 %v1726_v21, 0.0  ;;  %v1725_v36 = vadd.f32 %v3216_v12, %v1682_v28  ;;  %v1685_v14 = vmax.f32 %v3605_v13, %v1649_v10  ;;  %v1648_v54 = vmax.f32 %v1156_v11, %v1545_v22 }
 0x14f   :  { %v2295_v24 = vpop.f32.mrf.mxu0  ;;  %v2357_v43 = vpop.f32.mrf.mxu1 }
 0x150   :  { %1798 = vst.msk [vmem:[%s3512_s6 + $0xd8] sm:$0xff] %vm63_vm0, %v1762_v35  ;;  %v1761_v46 = vmax.f32 %v1725_v36, 0.0  ;;  %v1728_v49 = vadd.f32 %v3216_v12, %v1685_v14  ;;  %v1684_v56 = vmax.f32 %v3608_v38, %v1648_v54  ;;  %v1651_v57 = vmax.f32 %v2295_v24, %v2357_v43  ;;  %v3624_v35 = vld [vmem:[#allocation26_spill] sm:$0xff]  ;;  %v3625_v36 = vld [vmem:[#allocation27_spill] sm:$0xff] }
 0x151   :  { %v1166_v39 = vpop.f32.mrf.mxu0  ;;  %v1555_v52 = vpop.f32.mrf.mxu1  ;;  %v3626_v23 = vmax.f32 %v3624_v35, %v3625_v36 }
 0x152   :  { %1797 = vst.msk [vmem:[%s3512_s6 + $0xd0] sm:$0xff] %vm63_vm0, %v1761_v46  ;;  %v1764_v9 = vmax.f32 %v1728_v49, 0.0  ;;  %v1727_v19 = vadd.f32 %v3216_v12, %v1684_v56  ;;  %v1687_v59 = vmax.f32 %v3611_v37, %v1651_v57  ;;  %v1650_v60 = vmax.f32 %v1166_v39, %v1555_v52 }
 0x153   :  { %v2298_v40 = vpop.f32.mrf.mxu0  ;;  %v2360_v41 = vpop.f32.mrf.mxu1 }
 0x154   :  { %1800 = vst.msk [vmem:[%s3512_s6 + $0xe8] sm:$0xff] %vm63_vm0, %v1764_v9  ;;  %v1763_v3 = vmax.f32 %v1727_v19, 0.0  ;;  %v1730_v6 = vadd.f32 %v3216_v12, %v1687_v59  ;;  %v1686_v62 = vmax.f32 %v3614_v58, %v1650_v60  ;;  %v1653_v63 = vmax.f32 %v2298_v40, %v2360_v41 }
 0x155   :  { %v1176_v61 = vpop.f32.mrf.mxu0  ;;  %v1565_v29 = vpop.f32.mrf.mxu1 }
 0x156   :  { %1799 = vst.msk [vmem:[%s3512_s6 + $0xe0] sm:$0xff] %vm63_vm0, %v1763_v3  ;;  %v1766_v30 = vmax.f32 %v1730_v6, 0.0  ;;  %v1729_v44 = vadd.f32 %v3216_v12, %v1686_v62  ;;  %v1689_v0 = vmax.f32 %v3617_v2, %v1653_v63  ;;  %v1652_v15 = vmax.f32 %v1176_v61, %v1565_v29 }
 0x157   :  { %v2301_v18 = vpop.f32.mrf.mxu0  ;;  %v2363_v31 = vpop.f32.mrf.mxu1 }
 0x158   :  { %1802 = vst.msk [vmem:[%s3512_s6 + $0xf8] sm:$0xff] %vm63_vm0, %v1766_v30  ;;  %v1765_v34 = vmax.f32 %v1729_v44, 0.0  ;;  %v1732_v4 = vadd.f32 %v3216_v12, %v1689_v0  ;;  %v1688_v32 = vmax.f32 %v3620_v48, %v1652_v15  ;;  %v1655_v33 = vmax.f32 %v2301_v18, %v2363_v31 }
 0x159   :  { %v1186_v20 = vpop.f32.mrf.mxu0  ;;  %v1575_v7 = vpop.f32.mrf.mxu1 }
 0x15a   :  { %1801 = vst.msk [vmem:[%s3512_s6 + $0xf0] sm:$0xff] %vm63_vm0, %v1765_v34  ;;  %v1768_v8 = vmax.f32 %v1732_v4, 0.0  ;;  %v1731_v21 = vadd.f32 %v3216_v12, %v1688_v32  ;;  %v1691_v28 = vmax.f32 %v3623_v51, %v1655_v33  ;;  %v1654_v10 = vmax.f32 %v1186_v20, %v1575_v7 }
 0x15c   :  { %1804 = vst.msk [vmem:[%s3512_s6 + $0x108] sm:$0xff] %vm63_vm0, %v1768_v8  ;;  %v1767_v11 = vmax.f32 %v1731_v21, 0.0  ;;  %v1734_v22 = vadd.f32 %v3216_v12, %v1691_v28  ;;  %v1690_v53 = vmax.f32 %v3626_v23, %v1654_v10 }
 0x15e   :  { %1803 = vst.msk [vmem:[%s3512_s6 + $0x100] sm:$0xff] %vm63_vm0, %v1767_v11  ;;  %v1770_v13 = vmax.f32 %v1734_v22, 0.0  ;;  %v1733_v14 = vadd.f32 %v3216_v12, %v1690_v53 }
 0x160   :  { %1806 = vst.msk [vmem:[%s3512_s6 + $0x118] sm:$0xff] %vm63_vm0, %v1770_v13  ;;  %v1769_v54 = vmax.f32 %v1733_v14, 0.0 }
 0x162   :  { %1805 = vst.msk [vmem:[%s3512_s6 + $0x110] sm:$0xff] %vm63_vm0, %v1769_v54 }

// kernel: cnn_forward.3
= control target key start
LH: loop header
LB: loop body
LE: loop exit
PB: predicated region body
PF: predicated region fallthrough
CT: control target
= control target key end

     0   :  { %10 = vsyncpa [#allocation4], 0  ;;  %s6404_s18 = smov 0   ;;  %s7376_s0 = inlined_call_operand.vmem [shape: f32[2,4608], index: 0, kind: input, shape index: {}]   ;;  %s7377_s1 = inlined_call_operand.vmem [shape: bf16[4608,1024], index: 1, kind: input, shape index: {}]   ;;  %s7378_s2 = inlined_call_operand.vmem [shape: f32[1,1024], index: 2, kind: input, shape index: {}]   ;;  %s7379_s3 = inlined_call_operand.vmem [shape: bf16[1024,128], index: 3, kind: input, shape index: {}]   ;;  %s7380_s4 = inlined_call_operand.vmem [shape: f32[1,128], index: 4, kind: input, shape index: {}]   ;;  %s7381_s5 = inlined_call_operand.hbm [shape: f32[2,128], index: 5, kind: output, shape index: {}]  }
   0x1 LB: > { %s6410_s19 = sadd.s32 4294967295, %s6368_s18   ;;  %p5509_p0 = scmp.ge.s32.totalorder %s6368_s18, 1  ;;  %s6368_s18 = sphi %s6404_s18, %s16_s18  }
   0x2   : > { %p196_p1 = scmp.lt.s32.totalorder %s6368_s18, 5 }
   0x4   : > { %p197_p2 = pnand %p5509_p0, %p196_p1 }
   0x5   : > { %s225_s20 = smul.u32 (!%p197_p2), 9, %s6410_s19  ;;  %p5513_p5 = scmp.ne.s32.totalorder (!%p197_p2), %s6410_s19, 0 }
   0x6   : > { %200 = sbr.rel (%p197_p2) target bundleno = 1094 (0x446), region = 40 }
   0x7   : > { %s231_s21 = smul.u32 (!%p197_p2), 144, %s6410_s19  ;;  %p226_p3 = scmp.lt.s32.totalorder (!%p197_p2), %s225_s20, 35 }
   0x9   : > { %p232_p4 = scmp.lt.s32.totalorder (!%p197_p2), %s231_s21, 575 }
   0xb   : > { %s7383_s20 = smov (!%p226_p3, %s225_s20), 35  ;;  %s7385_s21 = smov (!%p232_p4, %s231_s21), 575 }
   0xc   : > { %s5510_s22 = sshll.u32 %s7383_s20, 1  ;;  %s6161_s26 = sshll.u32 %s7385_s21, 5 }
   0xd   : > { %s6419_s25 = scalar_lea.vmem %s7376_s0, %s5510_s22  ;;  %s6424_s29 = scalar_lea.vmem %s7377_s1, %s6161_s26 }
   0xe   : > { %242 = sbr.rel (%p5513_p5) target bundleno = 21 (0x15), region = 44 }
  0x13   : > { %v6370_v0 = vmov 0.0  }
  0x14   : > { %243 = vst [vmem:[#allocation2] sm:$0xff] %v6370_v0  ;;  %244 = vst [vmem:[#allocation2 + $0x8] sm:$0xff] %v6370_v0 }
  0x15 PF: > { %v368_v1 = vld [vmem:[%s6424_s29 + $0x1c0] sm:$0xff]  ;;  %v6371_v33 = vmov 1983009808   ;;  %v257_v35 = vlaneseq  ;;  %p6091_p6 = scmp.ne.s32.totalorder %s6410_s19, 3 }
  0x16   : > { %v372_v2 = vld [vmem:[%s6424_s29 + $0x1e0] sm:$0xff]  ;;  %v255_v34 = vunpack.c.l.s4 %v6371_v33 }
  0x17   : > { %v496_v3 = vld [vmem:[%s6424_s29 + $0x5c0] sm:$0xff]  ;;  %v5572_v4 = vcombine.high %v368_v1, %v372_v2  ;;  %v5571_v6 = vcombine.low %v368_v1, %v372_v2  ;;  %v6449_v45 = vshrl.u32 %v257_v35, 7 }
  0x18   : > { %v500_v5 = vld [vmem:[%s6424_s29 + $0x5e0] sm:$0xff]  ;;  %v256_v44 = vunpack.c.0.s8 %v255_v34 }
  0x19   : > { %v360_v7 = vld [vmem:[%s6424_s29 + $0x180] sm:$0xff]  ;;  %v5700_v9 = vcombine.high %v496_v3, %v500_v5  ;;  %v5699_v10 = vcombine.low %v496_v3, %v500_v5  ;;  %3768 = vmatprep.subr.bf16.mxu0 %v5572_v4 }
  0x1a   : > { %v364_v8 = vld [vmem:[%s6424_s29 + $0x1a0] sm:$0xff]  ;;  %3769 = vmatpush1.bf16.msra.mxu0 %v5571_v6  ;;  %v6456_v54 = vsub.s32 %v256_v44, %v6449_v45 }
  0x1b   : > { %v5564_v11 = vcombine.high %v360_v7, %v364_v8  ;;  %v488_v12 = vld [vmem:[%s6424_s29 + $0x580] sm:$0xff]  ;;  %3809 = vmatprep.subr.bf16.mxu1 %v5700_v9  ;;  %v5563_v19 = vcombine.low %v360_v7, %v364_v8 }
  0x1c   : > { %v492_v13 = vld [vmem:[%s6424_s29 + $0x5a0] sm:$0xff]  ;;  %3810 = vmatpush1.bf16.msra.mxu1 %v5699_v10 }
  0x1d   : > { %v352_v14 = vld [vmem:[%s6424_s29 + $0x140] sm:$0xff]  ;;  %v5692_v15 = vcombine.high %v488_v12, %v492_v13  ;;  %3770 = vmatprep.subr.bf16.mxu0 %v5564_v11  ;;  %v5691_v20 = vcombine.low %v488_v12, %v492_v13 }
  0x1e   : > { %v356_v16 = vld [vmem:[%s6424_s29 + $0x160] sm:$0xff]  ;;  %3771 = vmatpush1.bf16.msra.mxu0 %v5563_v19 }
  0x1f   : > { %v480_v17 = vld [vmem:[%s6424_s29 + $0x540] sm:$0xff]  ;;  %v5556_v21 = vcombine.high %v352_v14, %v356_v16  ;;  %3811 = vmatprep.subr.bf16.mxu1 %v5692_v15  ;;  %v5555_v27 = vcombine.low %v352_v14, %v356_v16 }
  0x20   : > { %v484_v18 = vld [vmem:[%s6424_s29 + $0x560] sm:$0xff]  ;;  %3812 = vmatpush1.bf16.msra.mxu1 %v5691_v20 }
  0x21   : > { %v5684_v22 = vcombine.high %v480_v17, %v484_v18  ;;  %v344_v23 = vld [vmem:[%s6424_s29 + $0x100] sm:$0xff]  ;;  %3772 = vmatprep.subr.bf16.mxu0 %v5556_v21  ;;  %v5683_v28 = vcombine.low %v480_v17, %v484_v18 }
  0x22   : > { %v348_v24 = vld [vmem:[%s6424_s29 + $0x120] sm:$0xff]  ;;  %3773 = vmatpush1.bf16.msra.mxu0 %v5555_v27 }
  0x23   : > { %v472_v25 = vld [vmem:[%s6424_s29 + $0x500] sm:$0xff]  ;;  %v5548_v29 = vcombine.high %v344_v23, %v348_v24  ;;  %3813 = vmatprep.subr.bf16.mxu1 %v5684_v22  ;;  %v5547_v38 = vcombine.low %v344_v23, %v348_v24 }
  0x24   : > { %v476_v26 = vld [vmem:[%s6424_s29 + $0x520] sm:$0xff]  ;;  %3814 = vmatpush1.bf16.msra.mxu1 %v5683_v28 }
  0x25   : > { %v5676_v30 = vcombine.high %v472_v25, %v476_v26  ;;  %v336_v31 = vld [vmem:[%s6424_s29 + $0xc0] sm:$0xff]  ;;  %3774 = vmatprep.subr.bf16.mxu0 %v5548_v29  ;;  %v5675_v39 = vcombine.low %v472_v25, %v476_v26 }
  0x26   : > { %v340_v32 = vld [vmem:[%s6424_s29 + $0xe0] sm:$0xff]  ;;  %3775 = vmatpush1.bf16.msra.mxu0 %v5547_v38 }
  0x27   : > { %v464_v36 = vld [vmem:[%s6424_s29 + $0x4c0] sm:$0xff]  ;;  %v5540_v40 = vcombine.high %v336_v31, %v340_v32  ;;  %3815 = vmatprep.subr.bf16.mxu1 %v5676_v30  ;;  %v5539_v48 = vcombine.low %v336_v31, %v340_v32 }
  0x28   : > { %v468_v37 = vld [vmem:[%s6424_s29 + $0x4e0] sm:$0xff]  ;;  %3816 = vmatpush1.bf16.msra.mxu1 %v5675_v39 }
  0x29   : > { %v5668_v41 = vcombine.high %v464_v36, %v468_v37  ;;  %v328_v42 = vld [vmem:[%s6424_s29 + $0x80] sm:$0xff]  ;;  %3776 = vmatprep.subr.bf16.mxu0 %v5540_v40  ;;  %v5667_v49 = vcombine.low %v464_v36, %v468_v37 }
  0x2a   : > { %v332_v43 = vld [vmem:[%s6424_s29 + $0xa0] sm:$0xff]  ;;  %3777 = vmatpush1.bf16.msra.mxu0 %v5539_v48 }
  0x2b   : > { %v456_v46 = vld [vmem:[%s6424_s29 + $0x480] sm:$0xff]  ;;  %v5532_v50 = vcombine.high %v328_v42, %v332_v43  ;;  %3817 = vmatprep.subr.bf16.mxu1 %v5668_v41  ;;  %v5531_v57 = vcombine.low %v328_v42, %v332_v43 }
  0x2c   : > { %v460_v47 = vld [vmem:[%s6424_s29 + $0x4a0] sm:$0xff]  ;;  %3818 = vmatpush1.bf16.msra.mxu1 %v5667_v49 }
  0x2d   : > { %v5660_v51 = vcombine.high %v456_v46, %v460_v47  ;;  %v320_v52 = vld [vmem:[%s6424_s29 + $0x40] sm:$0xff]  ;;  %3778 = vmatprep.subr.bf16.mxu0 %v5532_v50  ;;  %v5659_v58 = vcombine.low %v456_v46, %v460_v47 }
  0x2e   : > { %v324_v53 = vld [vmem:[%s6424_s29 + $0x60] sm:$0xff]  ;;  %3779 = vmatpush1.bf16.msra.mxu0 %v5531_v57 }
  0x2f   : > { %v448_v55 = vld [vmem:[%s6424_s29 + $0x440] sm:$0xff]  ;;  %v5524_v59 = vcombine.high %v320_v52, %v324_v53  ;;  %3819 = vmatprep.subr.bf16.mxu1 %v5660_v51  ;;  %v5523_v4 = vcombine.low %v320_v52, %v324_v53 }
  0x30   : > { %v452_v56 = vld [vmem:[%s6424_s29 + $0x460] sm:$0xff]  ;;  %3820 = vmatpush1.bf16.msra.mxu1 %v5659_v58 }
  0x31   : > { %v247_v60 = vld [vmem:[%s6419_s25] sm:$0xff]  ;;  %v5652_v61 = vcombine.high %v448_v55, %v452_v56  ;;  %3780 = vmatprep.subr.bf16.mxu0 %v5524_v59  ;;  %v5651_v7 = vcombine.low %v448_v55, %v452_v56 }
  0x32   : > { %v312_v62 = vld [vmem:[%s6424_s29] sm:$0xff]  ;;  %v6464_v0 = vrot.slane %v247_v60, %v6456_v54  ;;  %v253_v1 = vcombine.high %v247_v60, %v247_v60  ;;  %3781 = vmatpush1.bf16.msra.mxu0 %v5523_v4 }
  0x33   : > { %v316_v63 = vld [vmem:[%s6424_s29 + $0x20] sm:$0xff]  ;;  %3821 = vmatprep.subr.bf16.mxu1 %v5652_v61 }
  0x34   : > { %v440_v2 = vld [vmem:[%s6424_s29 + $0x400] sm:$0xff]  ;;  %v268_v5 = vcombine.high %v6464_v0, %v6464_v0  ;;  %v6471_v6 = vrot.slane %v253_v1, %v6456_v54  ;;  %v5516_v8 = vcombine.high %v312_v62, %v316_v63  ;;  %v5515_v16 = vcombine.low %v312_v62, %v316_v63  ;;  %3822 = vmatpush1.bf16.msra.mxu1 %v5651_v7 }
  0x35   : > { %v444_v3 = vld [vmem:[%s6424_s29 + $0x420] sm:$0xff] }
  0x36   : > { %v5644_v9 = vcombine.high %v440_v2, %v444_v3  ;;  %v432_v10 = vld [vmem:[%s6424_s29 + $0x3c0] sm:$0xff]  ;;  %v6475_v12 = vpack.c.bf16 %v268_v5, %v268_v5  ;;  %v269_v13 = vcombine.high %v6471_v6, %v6471_v6  ;;  %3782 = vmatprep.subr.bf16.mxu0 %v5516_v8  ;;  %v5643_v18 = vcombine.low %v440_v2, %v444_v3  ;;  %v248_v5 = vld [vmem:[%s6419_s25 + $0x8] sm:$0xff] }
  0x37   : > { %v436_v11 = vld [vmem:[%s6424_s29 + $0x3e0] sm:$0xff]  ;;  %3783 = vmatpush1.bf16.msra.mxu0 %v5515_v16 }
  0x38   : > { %v560_v14 = vld [vmem:[%s6424_s29 + $0x7c0] sm:$0xff]  ;;  %3800 = vmatprep.mubr.bf16.mxu0 %v6475_v12  ;;  %v6482_v17 = vpack.c.bf16 %v269_v13, %v269_v13  ;;  %v5636_v19 = vcombine.high %v432_v10, %v436_v11  ;;  %3823 = vmatprep.subr.bf16.mxu1 %v5644_v9  ;;  %v5635_v25 = vcombine.low %v432_v10, %v436_v11 }
  0x39   : > { %v564_v15 = vld [vmem:[%s6424_s29 + $0x7e0] sm:$0xff]  ;;  %3824 = vmatpush1.bf16.msra.mxu1 %v5643_v18 }
  0x3a   : > { %v5764_v20 = vcombine.high %v560_v14, %v564_v15  ;;  %v424_v21 = vld [vmem:[%s6424_s29 + $0x380] sm:$0xff]  ;;  %3841 = vmatprep.mubr.bf16.mxu1 %v6482_v17  ;;  %3784 = vmatprep.subr.bf16.mxu0 %v5636_v19  ;;  %v5763_v26 = vcombine.low %v560_v14, %v564_v15  ;;  %v270_v15 = vcombine.high %v248_v5, %v248_v5 }
  0x3b   : > { %v428_v22 = vld [vmem:[%s6424_s29 + $0x3a0] sm:$0xff]  ;;  %3785 = vmatpush2.bf16.msra.mxu0 %v5635_v25 }
  0x3c   : > { %v552_v23 = vld [vmem:[%s6424_s29 + $0x780] sm:$0xff]  ;;  %v5628_v27 = vcombine.high %v424_v21, %v428_v22  ;;  %3825 = vmatprep.subr.bf16.mxu1 %v5764_v20  ;;  %v5627_v33 = vcombine.low %v424_v21, %v428_v22 }
  0x3d   : > { %v556_v24 = vld [vmem:[%s6424_s29 + $0x7a0] sm:$0xff]  ;;  %3826 = vmatpush2.bf16.msra.mxu1 %v5763_v26  ;;  %v6522_v26 = vrot.slane %v270_v15, %v6456_v54 }
  0x3e   : > { %v5756_v28 = vcombine.high %v552_v23, %v556_v24  ;;  %v416_v29 = vld [vmem:[%s6424_s29 + $0x340] sm:$0xff]  ;;  %3786 = vmatprep.subr.bf16.mxu0 %v5628_v27  ;;  %v5755_v34 = vcombine.low %v552_v23, %v556_v24  ;;  %v6517_v23 = vrot.slane %v248_v5, %v6456_v54 }
  0x3f   : > { %v420_v30 = vld [vmem:[%s6424_s29 + $0x360] sm:$0xff]  ;;  %3787 = vmatpush2.bf16.msra.mxu0 %v5627_v33 }
  0x40   : > { %v544_v31 = vld [vmem:[%s6424_s29 + $0x740] sm:$0xff]  ;;  %v5620_v35 = vcombine.high %v416_v29, %v420_v30  ;;  %3827 = vmatprep.subr.bf16.mxu1 %v5756_v28  ;;  %v5619_v41 = vcombine.low %v416_v29, %v420_v30  ;;  %v285_v33 = vcombine.high %v6517_v23, %v6517_v23 }
  0x41   : > { %v548_v32 = vld [vmem:[%s6424_s29 + $0x760] sm:$0xff]  ;;  %3828 = vmatpush2.bf16.msra.mxu1 %v5755_v34  ;;  %v6530_v34 = vpack.c.bf16 %v6464_v0, %v6464_v0 }
  0x42   : > { %v5748_v36 = vcombine.high %v544_v31, %v548_v32  ;;  %v408_v37 = vld [vmem:[%s6424_s29 + $0x300] sm:$0xff]  ;;  %3788 = vmatprep.subr.bf16.mxu0 %v5620_v35  ;;  %v5747_v42 = vcombine.low %v544_v31, %v548_v32 }
  0x43   : > { %v412_v38 = vld [vmem:[%s6424_s29 + $0x320] sm:$0xff]  ;;  %3789 = vmatpush2.bf16.msra.mxu0 %v5619_v41 }
  0x44   : > { %v536_v39 = vld [vmem:[%s6424_s29 + $0x700] sm:$0xff]  ;;  %v5612_v43 = vcombine.high %v408_v37, %v412_v38  ;;  %3829 = vmatprep.subr.bf16.mxu1 %v5748_v36  ;;  %v5611_v50 = vcombine.low %v408_v37, %v412_v38  ;;  %v286_v37 = vcombine.high %v6522_v26, %v6522_v26  ;;  %v6538_v38 = vpack.c.bf16 %v6471_v6, %v6471_v6 }
  0x45   : > { %v540_v40 = vld [vmem:[%s6424_s29 + $0x720] sm:$0xff]  ;;  %3830 = vmatpush2.bf16.msra.mxu1 %v5747_v42 }
  0x46   : > { %v5740_v44 = vcombine.high %v536_v39, %v540_v40  ;;  %v400_v46 = vld [vmem:[%s6424_s29 + $0x2c0] sm:$0xff]  ;;  %3790 = vmatprep.subr.bf16.mxu0 %v5612_v43  ;;  %v5739_v51 = vcombine.low %v536_v39, %v540_v40 }
  0x47   : > { %v404_v47 = vld [vmem:[%s6424_s29 + $0x2e0] sm:$0xff]  ;;  %3791 = vmatpush2.bf16.msra.mxu0 %v5611_v50 }
  0x48   : > { %v528_v48 = vld [vmem:[%s6424_s29 + $0x6c0] sm:$0xff]  ;;  %v5604_v52 = vcombine.high %v400_v46, %v404_v47  ;;  %3831 = vmatprep.subr.bf16.mxu1 %v5740_v44  ;;  %v5603_v59 = vcombine.low %v400_v46, %v404_v47  ;;  %v6542_v44 = vpack.c.bf16 %v285_v33, %v285_v33  ;;  %v6547_v47 = vpack.c.bf16 %v286_v37, %v286_v37 }
  0x49   : > { %v532_v49 = vld [vmem:[%s6424_s29 + $0x6e0] sm:$0xff]  ;;  %3832 = vmatpush2.bf16.msra.mxu1 %v5739_v51 }
  0x4a   : > { %v5732_v53 = vcombine.high %v528_v48, %v532_v49  ;;  %v392_v55 = vld [vmem:[%s6424_s29 + $0x280] sm:$0xff]  ;;  %3792 = vmatprep.subr.bf16.mxu0 %v5604_v52  ;;  %v5731_v60 = vcombine.low %v528_v48, %v532_v49 }
  0x4b   : > { %v396_v56 = vld [vmem:[%s6424_s29 + $0x2a0] sm:$0xff]  ;;  %3793 = vmatpush2.bf16.msra.mxu0 %v5603_v59 }
  0x4c   : > { %v520_v57 = vld [vmem:[%s6424_s29 + $0x680] sm:$0xff]  ;;  %v5596_v61 = vcombine.high %v392_v55, %v396_v56  ;;  %3833 = vmatprep.subr.bf16.mxu1 %v5732_v53  ;;  %v5595_v4 = vcombine.low %v392_v55, %v396_v56 }
  0x4d   : > { %v524_v58 = vld [vmem:[%s6424_s29 + $0x6a0] sm:$0xff]  ;;  %3834 = vmatpush2.bf16.msra.mxu1 %v5731_v60 }
  0x4e   : > { %v5724_v62 = vcombine.high %v520_v57, %v524_v58  ;;  %v384_v63 = vld [vmem:[%s6424_s29 + $0x240] sm:$0xff]  ;;  %3794 = vmatprep.subr.bf16.mxu0 %v5596_v61  ;;  %v5723_v7 = vcombine.low %v520_v57, %v524_v58 }
  0x4f   : > { %v388_v1 = vld [vmem:[%s6424_s29 + $0x260] sm:$0xff]  ;;  %3795 = vmatpush2.bf16.msra.mxu0 %v5595_v4 }
  0x50   : > { %v512_v2 = vld [vmem:[%s6424_s29 + $0x640] sm:$0xff]  ;;  %v5588_v8 = vcombine.high %v384_v63, %v388_v1  ;;  %3835 = vmatprep.subr.bf16.mxu1 %v5724_v62  ;;  %v5587_v16 = vcombine.low %v384_v63, %v388_v1 }
  0x51   : > { %v516_v3 = vld [vmem:[%s6424_s29 + $0x660] sm:$0xff]  ;;  %3836 = vmatpush2.bf16.msra.mxu1 %v5723_v7 }
  0x52   : > { %v5716_v9 = vcombine.high %v512_v2, %v516_v3  ;;  %v376_v10 = vld [vmem:[%s6424_s29 + $0x200] sm:$0xff]  ;;  %3796 = vmatprep.subr.bf16.mxu0 %v5588_v8  ;;  %v5715_v18 = vcombine.low %v512_v2, %v516_v3 }
  0x53   : > { %v380_v11 = vld [vmem:[%s6424_s29 + $0x220] sm:$0xff]  ;;  %3797 = vmatpush2.bf16.msra.mxu0 %v5587_v16 }
  0x54   : > { %v504_v13 = vld [vmem:[%s6424_s29 + $0x600] sm:$0xff]  ;;  %v5580_v19 = vcombine.high %v376_v10, %v380_v11  ;;  %3837 = vmatprep.subr.bf16.mxu1 %v5716_v9  ;;  %v5579_v27 = vcombine.low %v376_v10, %v380_v11 }
  0x55   : > { %v508_v14 = vld [vmem:[%s6424_s29 + $0x620] sm:$0xff]  ;;  %3838 = vmatpush2.bf16.msra.mxu1 %v5715_v18 }
  0x56   : > { %v5708_v20 = vcombine.high %v504_v13, %v508_v14  ;;  %v624_v21 = vld [vmem:[%s6424_s29 + $0x9c0] sm:$0xff]  ;;  %3798 = vmatprep.subr.bf16.mxu0 %v5580_v19  ;;  %v5707_v28 = vcombine.low %v504_v13, %v508_v14 }
  0x57   : > { %v628_v22 = vld [vmem:[%s6424_s29 + $0x9e0] sm:$0xff]  ;;  %3799 = vmatpush2.bf16.msra.mxu0 %v5579_v27 }
  0x58   : > { %v752_v24 = vld [vmem:[%s6424_s29 + $0xdc0] sm:$0xff]  ;;  %v5828_v29 = vcombine.high %v624_v21, %v628_v22  ;;  %3839 = vmatprep.subr.bf16.mxu1 %v5708_v20  ;;  %v5827_v39 = vcombine.low %v624_v21, %v628_v22 }
  0x59   : > { %v756_v25 = vld [vmem:[%s6424_s29 + $0xde0] sm:$0xff]  ;;  %3840 = vmatpush2.bf16.msra.mxu1 %v5707_v28 }
  0x5a   : > { %v5956_v30 = vcombine.high %v752_v24, %v756_v25  ;;  %v616_v31 = vld [vmem:[%s6424_s29 + $0x980] sm:$0xff]  ;;  %3850 = vmatprep.subr.bf16.mxu0 %v5828_v29  ;;  %v5955_v40 = vcombine.low %v752_v24, %v756_v25  ;;  %3801 = vmatmul.mubr.bf16.vlgmr.msra.gmra.mxu0 %v6530_v34 }
  0x5b   : > { %v620_v32 = vld [vmem:[%s6424_s29 + $0x9a0] sm:$0xff]  ;;  %3851 = vmatpush1.bf16.msra.mxu0 %v5827_v39  ;;  %3882 = vmatprep.mubr.bf16.mxu0 %v6542_v44 }
  0x5c   : > { %v744_v35 = vld [vmem:[%s6424_s29 + $0xd80] sm:$0xff]  ;;  %v5820_v41 = vcombine.high %v616_v31, %v620_v32  ;;  %3891 = vmatprep.subr.bf16.mxu1 %v5956_v30  ;;  %3842 = vmatmul.mubr.bf16.vlgmr.msra.gmra.mxu1 %v6538_v38  ;;  %v5819_v48 = vcombine.low %v616_v31, %v620_v32 }
  0x5d   : > { %v748_v36 = vld [vmem:[%s6424_s29 + $0xda0] sm:$0xff]  ;;  %3892 = vmatpush1.bf16.msra.mxu1 %v5955_v40  ;;  %3923 = vmatprep.mubr.bf16.mxu1 %v6547_v47 }
  0x5e   : > { %v5948_v0 = vcombine.high %v744_v35, %v748_v36  ;;  %v608_v42 = vld [vmem:[%s6424_s29 + $0x940] sm:$0xff]  ;;  %3852 = vmatprep.subr.bf16.mxu0 %v5820_v41  ;;  %v5947_v49 = vcombine.low %v744_v35, %v748_v36 }
  0x5f   : > { %v612_v43 = vld [vmem:[%s6424_s29 + $0x960] sm:$0xff]  ;;  %3853 = vmatpush1.bf16.msra.mxu0 %v5819_v48 }
  0x60   : > { %v736_v46 = vld [vmem:[%s6424_s29 + $0xd40] sm:$0xff]  ;;  %v5812_v50 = vcombine.high %v608_v42, %v612_v43  ;;  %3893 = vmatprep.subr.bf16.mxu1 %v5948_v0  ;;  %v5811_v57 = vcombine.low %v608_v42, %v612_v43 }
  0x61   : > { %v740_v6 = vld [vmem:[%s6424_s29 + $0xd60] sm:$0xff]  ;;  %3894 = vmatpush1.bf16.msra.mxu1 %v5947_v49 }
  0x62   : > { %v5940_v51 = vcombine.high %v736_v46, %v740_v6  ;;  %v600_v52 = vld [vmem:[%s6424_s29 + $0x900] sm:$0xff]  ;;  %3854 = vmatprep.subr.bf16.mxu0 %v5812_v50  ;;  %v5939_v58 = vcombine.low %v736_v46, %v740_v6 }
  0x63   : > { %v604_v53 = vld [vmem:[%s6424_s29 + $0x920] sm:$0xff]  ;;  %3855 = vmatpush1.bf16.msra.mxu0 %v5811_v57 }
  0x64   : > { %v728_v55 = vld [vmem:[%s6424_s29 + $0xd00] sm:$0xff]  ;;  %v5804_v59 = vcombine.high %v600_v52, %v604_v53  ;;  %3895 = vmatprep.subr.bf16.mxu1 %v5940_v51  ;;  %v5803_v2 = vcombine.low %v600_v52, %v604_v53 }
  0x65   : > { %v732_v56 = vld [vmem:[%s6424_s29 + $0xd20] sm:$0xff]  ;;  %3896 = vmatpush1.bf16.msra.mxu1 %v5939_v58 }
  0x66   : > { %v5932_v60 = vcombine.high %v728_v55, %v732_v56  ;;  %v592_v61 = vld [vmem:[%s6424_s29 + $0x8c0] sm:$0xff]  ;;  %3856 = vmatprep.subr.bf16.mxu0 %v5804_v59  ;;  %v5931_v3 = vcombine.low %v728_v55, %v732_v56 }
  0x67   : > { %v596_v62 = vld [vmem:[%s6424_s29 + $0x8e0] sm:$0xff]  ;;  %3857 = vmatpush1.bf16.msra.mxu0 %v5803_v2 }
  0x68   : > { %v720_v63 = vld [vmem:[%s6424_s29 + $0xcc0] sm:$0xff]  ;;  %v5796_v4 = vcombine.high %v592_v61, %v596_v62  ;;  %3897 = vmatprep.subr.bf16.mxu1 %v5932_v60  ;;  %v5795_v11 = vcombine.low %v592_v61, %v596_v62 }
  0x69   : > { %v724_v1 = vld [vmem:[%s6424_s29 + $0xce0] sm:$0xff]  ;;  %3898 = vmatpush1.bf16.msra.mxu1 %v5931_v3 }
  0x6a   : > { %v5924_v5 = vcombine.high %v720_v63, %v724_v1  ;;  %v584_v7 = vld [vmem:[%s6424_s29 + $0x880] sm:$0xff]  ;;  %3858 = vmatprep.subr.bf16.mxu0 %v5796_v4  ;;  %v5923_v13 = vcombine.low %v720_v63, %v724_v1 }
  0x6b   : > { %v588_v8 = vld [vmem:[%s6424_s29 + $0x8a0] sm:$0xff]  ;;  %3859 = vmatpush1.bf16.msra.mxu0 %v5795_v11 }
  0x6c   : > { %v712_v9 = vld [vmem:[%s6424_s29 + $0xc80] sm:$0xff]  ;;  %v5788_v14 = vcombine.high %v584_v7, %v588_v8  ;;  %3899 = vmatprep.subr.bf16.mxu1 %v5924_v5  ;;  %v5787_v21 = vcombine.low %v584_v7, %v588_v8 }
  0x6d   : > { %v716_v10 = vld [vmem:[%s6424_s29 + $0xca0] sm:$0xff]  ;;  %3900 = vmatpush1.bf16.msra.mxu1 %v5923_v13 }
  0x6e   : > { %v5916_v15 = vcombine.high %v712_v9, %v716_v10  ;;  %v576_v16 = vld [vmem:[%s6424_s29 + $0x840] sm:$0xff]  ;;  %3860 = vmatprep.subr.bf16.mxu0 %v5788_v14  ;;  %v5915_v22 = vcombine.low %v712_v9, %v716_v10 }
  0x6f   : > { %v580_v18 = vld [vmem:[%s6424_s29 + $0x860] sm:$0xff]  ;;  %3861 = vmatpush1.bf16.msra.mxu0 %v5787_v21 }
  0x70   : > { %v704_v19 = vld [vmem:[%s6424_s29 + $0xc40] sm:$0xff]  ;;  %v5780_v24 = vcombine.high %v576_v16, %v580_v18  ;;  %3901 = vmatprep.subr.bf16.mxu1 %v5916_v15  ;;  %v5779_v31 = vcombine.low %v576_v16, %v580_v18 }
  0x71   : > { %v708_v20 = vld [vmem:[%s6424_s29 + $0xc60] sm:$0xff]  ;;  %3902 = vmatpush1.bf16.msra.mxu1 %v5915_v22 }
  0x72   : > { %v5908_v25 = vcombine.high %v704_v19, %v708_v20  ;;  %v568_v27 = vld [vmem:[%s6424_s29 + $0x800] sm:$0xff]  ;;  %3862 = vmatprep.subr.bf16.mxu0 %v5780_v24  ;;  %v5907_v32 = vcombine.low %v704_v19, %v708_v20 }
  0x73   : > { %v572_v28 = vld [vmem:[%s6424_s29 + $0x820] sm:$0xff]  ;;  %3863 = vmatpush1.bf16.msra.mxu0 %v5779_v31 }
  0x74   : > { %v696_v29 = vld [vmem:[%s6424_s29 + $0xc00] sm:$0xff]  ;;  %v5772_v33 = vcombine.high %v568_v27, %v572_v28  ;;  %3903 = vmatprep.subr.bf16.mxu1 %v5908_v25  ;;  %v5771_v41 = vcombine.low %v568_v27, %v572_v28 }
  0x75   : > { %v700_v30 = vld [vmem:[%s6424_s29 + $0xc20] sm:$0xff]  ;;  %3904 = vmatpush1.bf16.msra.mxu1 %v5907_v32 }
  0x76   : > { %v5900_v35 = vcombine.high %v696_v29, %v700_v30  ;;  %v688_v36 = vld [vmem:[%s6424_s29 + $0xbc0] sm:$0xff]  ;;  %3864 = vmatprep.subr.bf16.mxu0 %v5772_v33  ;;  %v5899_v0 = vcombine.low %v696_v29, %v700_v30 }
  0x77   : > { %v692_v37 = vld [vmem:[%s6424_s29 + $0xbe0] sm:$0xff]  ;;  %3865 = vmatpush1.bf16.msra.mxu0 %v5771_v41 }
  0x78   : > { %v816_v39 = vld [vmem:[%s6424_s29 + $0xfc0] sm:$0xff]  ;;  %v5892_v42 = vcombine.high %v688_v36, %v692_v37  ;;  %3905 = vmatprep.subr.bf16.mxu1 %v5900_v35  ;;  %v5891_v50 = vcombine.low %v688_v36, %v692_v37 }
  0x79   : > { %v820_v40 = vld [vmem:[%s6424_s29 + $0xfe0] sm:$0xff]  ;;  %3906 = vmatpush1.bf16.msra.mxu1 %v5899_v0 }
  0x7a   : > { %v6020_v43 = vcombine.high %v816_v39, %v820_v40  ;;  %v680_v46 = vld [vmem:[%s6424_s29 + $0xb80] sm:$0xff]  ;;  %3866 = vmatprep.subr.bf16.mxu0 %v5892_v42  ;;  %v6019_v51 = vcombine.low %v816_v39, %v820_v40 }
  0x7b   : > { %v684_v6 = vld [vmem:[%s6424_s29 + $0xba0] sm:$0xff]  ;;  %3867 = vmatpush2.bf16.msra.mxu0 %v5891_v50  ;;  %v369_v50 = vld [vmem:[%s6424_s29 + $0x1c8] sm:$0xff] }
  0x7c   : > { %v808_v48 = vld [vmem:[%s6424_s29 + $0xf80] sm:$0xff]  ;;  %v5884_v52 = vcombine.high %v680_v46, %v684_v6  ;;  %3907 = vmatprep.subr.bf16.mxu1 %v6020_v43  ;;  %v5883_v59 = vcombine.low %v680_v46, %v684_v6 }
  0x7d   : > { %v812_v49 = vld [vmem:[%s6424_s29 + $0xfa0] sm:$0xff]  ;;  %3908 = vmatpush2.bf16.msra.mxu1 %v6019_v51  ;;  %v373_v51 = vld [vmem:[%s6424_s29 + $0x1e8] sm:$0xff] }
  0x7e   : > { %v6012_v53 = vcombine.high %v808_v48, %v812_v49  ;;  %v672_v55 = vld [vmem:[%s6424_s29 + $0xb40] sm:$0xff]  ;;  %3868 = vmatprep.subr.bf16.mxu0 %v5884_v52  ;;  %v6011_v60 = vcombine.low %v808_v48, %v812_v49 }
  0x7f   : > { %v676_v56 = vld [vmem:[%s6424_s29 + $0xb60] sm:$0xff]  ;;  %3869 = vmatpush2.bf16.msra.mxu0 %v5883_v59  ;;  %v6612_v59 = vpack.c.bf16 %v6517_v23, %v6517_v23 }
  0x80   : > { %v800_v57 = vld [vmem:[%s6424_s29 + $0xf40] sm:$0xff]  ;;  %v5876_v61 = vcombine.high %v672_v55, %v676_v56  ;;  %3909 = vmatprep.subr.bf16.mxu1 %v6012_v53  ;;  %v5875_v4 = vcombine.low %v672_v55, %v676_v56  ;;  %v5574_v56 = vcombine.high %v369_v50, %v373_v51 }
  0x81   : > { %v804_v58 = vld [vmem:[%s6424_s29 + $0xf60] sm:$0xff]  ;;  %3910 = vmatpush2.bf16.msra.mxu1 %v6011_v60  ;;  %v361_v60 = vld [vmem:[%s6424_s29 + $0x188] sm:$0xff] }
  0x82   : > { %v6004_v62 = vcombine.high %v800_v57, %v804_v58  ;;  %v664_v63 = vld [vmem:[%s6424_s29 + $0xb00] sm:$0xff]  ;;  %3870 = vmatprep.subr.bf16.mxu0 %v5876_v61  ;;  %v6003_v5 = vcombine.low %v800_v57, %v804_v58  ;;  %v365_v61 = vld [vmem:[%s6424_s29 + $0x1a8] sm:$0xff] }
  0x83   : > { %v668_v1 = vld [vmem:[%s6424_s29 + $0xb20] sm:$0xff]  ;;  %3871 = vmatpush2.bf16.msra.mxu0 %v5875_v4 }
  0x84   : > { %v792_v2 = vld [vmem:[%s6424_s29 + $0xf00] sm:$0xff]  ;;  %v5868_v7 = vcombine.high %v664_v63, %v668_v1  ;;  %3911 = vmatprep.subr.bf16.mxu1 %v6004_v62  ;;  %v5867_v14 = vcombine.low %v664_v63, %v668_v1  ;;  %v6618_v62 = vpack.c.bf16 %v6522_v26, %v6522_v26  ;;  %v5573_v1 = vcombine.low %v369_v50, %v373_v51 }
  0x85   : > { %v796_v3 = vld [vmem:[%s6424_s29 + $0xf20] sm:$0xff]  ;;  %3912 = vmatpush2.bf16.msra.mxu1 %v6003_v5  ;;  %v353_v5 = vld [vmem:[%s6424_s29 + $0x148] sm:$0xff] }
  0x86   : > { %v5996_v8 = vcombine.high %v792_v2, %v796_v3  ;;  %v656_v9 = vld [vmem:[%s6424_s29 + $0xac0] sm:$0xff]  ;;  %3872 = vmatprep.subr.bf16.mxu0 %v5868_v7  ;;  %v5995_v15 = vcombine.low %v792_v2, %v796_v3  ;;  %v5566_v3 = vcombine.high %v361_v60, %v365_v61  ;;  %v357_v7 = vld [vmem:[%s6424_s29 + $0x168] sm:$0xff] }
  0x87   : > { %v660_v10 = vld [vmem:[%s6424_s29 + $0xae0] sm:$0xff]  ;;  %3873 = vmatpush2.bf16.msra.mxu0 %v5867_v14  ;;  %v6372_v14 = vmov 0  }
  0x88   : > { %v784_v11 = vld [vmem:[%s6424_s29 + $0xec0] sm:$0xff]  ;;  %v5860_v16 = vcombine.high %v656_v9, %v660_v10  ;;  %3913 = vmatprep.subr.bf16.mxu1 %v5996_v8  ;;  %v5859_v24 = vcombine.low %v656_v9, %v660_v10  ;;  %v5565_v8 = vcombine.low %v361_v60, %v365_v61  ;;  %v5558_v10 = vcombine.high %v353_v5, %v357_v7  ;;  %v497_v61 = vld [vmem:[%s6424_s29 + $0x5c8] sm:$0xff] }
  0x89   : > { %v788_v13 = vld [vmem:[%s6424_s29 + $0xee0] sm:$0xff]  ;;  %3914 = vmatpush2.bf16.msra.mxu1 %v5995_v15  ;;  %v345_v15 = vld [vmem:[%s6424_s29 + $0x108] sm:$0xff] }
  0x8a   : > { %v5988_v18 = vcombine.high %v784_v11, %v788_v13  ;;  %v648_v19 = vld [vmem:[%s6424_s29 + $0xa80] sm:$0xff]  ;;  %3874 = vmatprep.subr.bf16.mxu0 %v5860_v16  ;;  %v5987_v25 = vcombine.low %v784_v11, %v788_v13  ;;  %v349_v16 = vld [vmem:[%s6424_s29 + $0x128] sm:$0xff] }
  0x8b   : > { %v652_v20 = vld [vmem:[%s6424_s29 + $0xaa0] sm:$0xff]  ;;  %3875 = vmatpush2.bf16.msra.mxu0 %v5859_v24 }
  0x8c   : > { %v776_v21 = vld [vmem:[%s6424_s29 + $0xe80] sm:$0xff]  ;;  %v5852_v27 = vcombine.high %v648_v19, %v652_v20  ;;  %3915 = vmatprep.subr.bf16.mxu1 %v5988_v18  ;;  %v5851_v33 = vcombine.low %v648_v19, %v652_v20  ;;  %v5557_v19 = vcombine.low %v353_v5, %v357_v7 }
  0x8d   : > { %v780_v22 = vld [vmem:[%s6424_s29 + $0xea0] sm:$0xff]  ;;  %3916 = vmatpush2.bf16.msra.mxu1 %v5987_v25  ;;  %v337_v25 = vld [vmem:[%s6424_s29 + $0xc8] sm:$0xff] }
  0x8e   : > { %v5980_v28 = vcombine.high %v776_v21, %v780_v22  ;;  %v640_v29 = vld [vmem:[%s6424_s29 + $0xa40] sm:$0xff]  ;;  %3876 = vmatprep.subr.bf16.mxu0 %v5852_v27  ;;  %v5979_v35 = vcombine.low %v776_v21, %v780_v22  ;;  %v5550_v21 = vcombine.high %v345_v15, %v349_v16  ;;  %v341_v27 = vld [vmem:[%s6424_s29 + $0xe8] sm:$0xff] }
  0x8f   : > { %v644_v30 = vld [vmem:[%s6424_s29 + $0xa60] sm:$0xff]  ;;  %3877 = vmatpush2.bf16.msra.mxu0 %v5851_v33 }
  0x90   : > { %v768_v31 = vld [vmem:[%s6424_s29 + $0xe40] sm:$0xff]  ;;  %v5844_v36 = vcombine.high %v640_v29, %v644_v30  ;;  %3917 = vmatprep.subr.bf16.mxu1 %v5980_v28  ;;  %v5843_v42 = vcombine.low %v640_v29, %v644_v30  ;;  %v5549_v29 = vcombine.low %v345_v15, %v349_v16 }
  0x91   : > { %v772_v32 = vld [vmem:[%s6424_s29 + $0xe60] sm:$0xff]  ;;  %3918 = vmatpush2.bf16.msra.mxu1 %v5979_v35  ;;  %v329_v35 = vld [vmem:[%s6424_s29 + $0x88] sm:$0xff] }
  0x92   : > { %v5972_v37 = vcombine.high %v768_v31, %v772_v32  ;;  %v632_v39 = vld [vmem:[%s6424_s29 + $0xa00] sm:$0xff]  ;;  %3878 = vmatprep.subr.bf16.mxu0 %v5844_v36  ;;  %v5971_v43 = vcombine.low %v768_v31, %v772_v32  ;;  %v5542_v31 = vcombine.high %v337_v25, %v341_v27  ;;  %v333_v36 = vld [vmem:[%s6424_s29 + $0xa8] sm:$0xff] }
  0x93   : > { %v636_v40 = vld [vmem:[%s6424_s29 + $0xa20] sm:$0xff]  ;;  %3879 = vmatpush2.bf16.msra.mxu0 %v5843_v42 }
  0x94   : > { %v760_v41 = vld [vmem:[%s6424_s29 + $0xe00] sm:$0xff]  ;;  %v5836_v46 = vcombine.high %v632_v39, %v636_v40  ;;  %3919 = vmatprep.subr.bf16.mxu1 %v5972_v37  ;;  %v5835_v52 = vcombine.low %v632_v39, %v636_v40  ;;  %v5541_v39 = vcombine.low %v337_v25, %v341_v27 }
  0x95   : > { %v764_v0 = vld [vmem:[%s6424_s29 + $0xe20] sm:$0xff]  ;;  %3920 = vmatpush2.bf16.msra.mxu1 %v5971_v43  ;;  %v321_v43 = vld [vmem:[%s6424_s29 + $0x48] sm:$0xff] }
  0x96   : > { %v5964_v6 = vcombine.high %v760_v41, %v764_v0  ;;  %v880_v48 = vld [vmem:[%s6424_s29 + $0x11c0] sm:$0xff]  ;;  %3880 = vmatprep.subr.bf16.mxu0 %v5836_v46  ;;  %v5963_v53 = vcombine.low %v760_v41, %v764_v0  ;;  %v5534_v41 = vcombine.high %v329_v35, %v333_v36  ;;  %v325_v46 = vld [vmem:[%s6424_s29 + $0x68] sm:$0xff] }
  0x97   : > { %v884_v49 = vld [vmem:[%s6424_s29 + $0x11e0] sm:$0xff]  ;;  %3881 = vmatpush2.bf16.msra.mxu0 %v5835_v52  ;;  %v5526_v50 = vcombine.high %v321_v43, %v325_v46 }
  0x98   : > { %v6084_v55 = vcombine.high %v880_v48, %v884_v49  ;;  %3921 = vmatprep.subr.bf16.mxu1 %v5964_v6  ;;  %v872_v57 = vld [vmem:[%s6424_s29 + $0x1180] sm:$0xff]  ;;  %v6083_v63 = vcombine.low %v880_v48, %v884_v49  ;;  %v5533_v48 = vcombine.low %v329_v35, %v333_v36 }
  0x99   : > { %v876_v58 = vld [vmem:[%s6424_s29 + $0x11a0] sm:$0xff]  ;;  %3922 = vmatpush2.bf16.msra.mxu1 %v5963_v53  ;;  %v313_v53 = vld [vmem:[%s6424_s29 + $0x8] sm:$0xff] }
  0x9a   : > { %3932 = vmatprep.subr.bf16.mxu0 %v6084_v55  ;;  %v6076_v2 = vcombine.high %v872_v57, %v876_v58  ;;  %3973 = vmatprep.subr.bf16.mxu1 %v5574_v56  ;;  %v864_v4 = vld [vmem:[%s6424_s29 + $0x1140] sm:$0xff]  ;;  %v6075_v26 = vcombine.low %v872_v57, %v876_v58  ;;  %v317_v55 = vld [vmem:[%s6424_s29 + $0x28] sm:$0xff]  ;;  %v5525_v57 = vcombine.low %v321_v43, %v325_v46 }
  0x9b   : > { %v868_v23 = vld [vmem:[%s6424_s29 + $0x1160] sm:$0xff]  ;;  %3883 = vmatmul.mubr.bf16.vlgmr.msra.gmra.mxu0 %v6612_v59  ;;  %v5518_v60 = vcombine.high %v313_v53, %v317_v55 }
  0x9c   : > { %3924 = vmatmul.mubr.bf16.vlgmr.msra.gmra.mxu1 %v6618_v62  ;;  %3933 = vmatpush1.bf16.msra.mxu0 %v6083_v63  ;;  %v6068_v9 = vcombine.high %v864_v4, %v868_v23  ;;  %v856_v11 = vld [vmem:[%s6424_s29 + $0x1100] sm:$0xff]  ;;  %v6067_v18 = vcombine.low %v864_v4, %v868_v23  ;;  %v501_v63 = vld [vmem:[%s6424_s29 + $0x5e8] sm:$0xff]  ;;  %v5514_v4 = vld.sshfl [vmem:[%s6419_s25 + $0x10] sm:$0x3 pattern:$0x76325410]  ;;  %v5517_v23 = vcombine.low %v313_v53, %v317_v55 }
  0x9d   : > { %3974 = vmatpush1.bf16.msra.mxu1 %v5573_v1  ;;  %3934 = vmatprep.subr.bf16.mxu0 %v6076_v2  ;;  %v860_v13 = vld [vmem:[%s6424_s29 + $0x1120] sm:$0xff]  ;;  %v433_v1 = vld [vmem:[%s6424_s29 + $0x3c8] sm:$0xff]  ;;  %v5702_v5 = vcombine.high %v497_v61, %v501_v63 }
  0x9e   : > { %3975 = vmatprep.subr.bf16.mxu1 %v5566_v3  ;;  %3964 = vmatprep.mubr.bf16.mxu0 %v6372_v14  ;;  %v6060_v20 = vcombine.high %v856_v11, %v860_v13  ;;  %v848_v22 = vld [vmem:[%s6424_s29 + $0x10c0] sm:$0xff]  ;;  %v6059_v28 = vcombine.low %v856_v11, %v860_v13  ;;  %v437_v2 = vld [vmem:[%s6424_s29 + $0x3e8] sm:$0xff]  ;;  %v5701_v13 = vcombine.low %v497_v61, %v501_v63 }
  0x9f   : > { %4005 = vmatprep.mubr.bf16.mxu1 %v6475_v12  ;;  %v852_v24 = vld [vmem:[%s6424_s29 + $0x10e0] sm:$0xff]  ;;  %v5638_v7 = vcombine.high %v433_v1, %v437_v2  ;;  %v429_v11 = vld [vmem:[%s6424_s29 + $0x3a8] sm:$0xff]  ;;  %v5637_v15 = vcombine.low %v433_v1, %v437_v2 }
  0xa0   : > { %3935 = vmatpush1.bf16.msra.mxu0 %v6075_v26  ;;  %v6052_v30 = vcombine.high %v848_v22, %v852_v24  ;;  %v840_v32 = vld [vmem:[%s6424_s29 + $0x1080] sm:$0xff]  ;;  %v6051_v37 = vcombine.low %v848_v22, %v852_v24  ;;  %v489_v26 = vld [vmem:[%s6424_s29 + $0x588] sm:$0xff] }
  0xa1   : > { %3976 = vmatpush1.bf16.msra.mxu1 %v5565_v8  ;;  %3936 = vmatprep.subr.bf16.mxu0 %v6068_v9  ;;  %v844_v33 = vld [vmem:[%s6424_s29 + $0x10a0] sm:$0xff]  ;;  %v493_v8 = vld [vmem:[%s6424_s29 + $0x5a8] sm:$0xff]  ;;  %v6655_v9 = vpack.c.bf16 %v5514_v4, %v5514_v4 }
  0xa2   : > { %3977 = vmatprep.subr.bf16.mxu1 %v5558_v10  ;;  %v6044_v40 = vcombine.high %v840_v32, %v844_v33  ;;  %v832_v0 = vld [vmem:[%s6424_s29 + $0x1040] sm:$0xff]  ;;  %v6043_v6 = vcombine.low %v840_v32, %v844_v33  ;;  %v425_v10 = vld [vmem:[%s6424_s29 + $0x388] sm:$0xff]  ;;  %v5694_v16 = vcombine.high %v489_v26, %v493_v8  ;;  %v5693_v24 = vcombine.low %v489_v26, %v493_v8 }
  0xa3   : > { %v836_v42 = vld [vmem:[%s6424_s29 + $0x1060] sm:$0xff]  ;;  %v421_v22 = vld [vmem:[%s6424_s29 + $0x368] sm:$0xff]  ;;  %v5629_v25 = vcombine.low %v425_v10, %v429_v11 }
  0xa4   : > { %3937 = vmatpush1.bf16.msra.mxu0 %v6067_v18  ;;  %v6036_v49 = vcombine.high %v832_v0, %v836_v42  ;;  %v824_v51 = vld [vmem:[%s6424_s29 + $0x1000] sm:$0xff]  ;;  %v6035_v56 = vcombine.low %v832_v0, %v836_v42  ;;  %v5630_v18 = vcombine.high %v425_v10, %v429_v11  ;;  %v413_v32 = vld [vmem:[%s6424_s29 + $0x328] sm:$0xff] }
  0xa5   : > { %3978 = vmatpush1.bf16.msra.mxu1 %v5557_v19  ;;  %3938 = vmatprep.subr.bf16.mxu0 %v6060_v20  ;;  %v828_v52 = vld [vmem:[%s6424_s29 + $0x1020] sm:$0xff]  ;;  %v481_v19 = vld [vmem:[%s6424_s29 + $0x548] sm:$0xff] }
  0xa6   : > { %3979 = vmatprep.subr.bf16.mxu1 %v5550_v21  ;;  %v6028_v58 = vcombine.high %v824_v51, %v828_v52  ;;  %v6027_v3 = vcombine.low %v824_v51, %v828_v52  ;;  %v485_v20 = vld [vmem:[%s6424_s29 + $0x568] sm:$0xff] }
  0xa7   : > { %v417_v21 = vld [vmem:[%s6424_s29 + $0x348] sm:$0xff]  ;;  %v5686_v27 = vcombine.high %v481_v19, %v485_v20  ;;  %v5685_v33 = vcombine.low %v481_v19, %v485_v20 }
  0xa8   : > { %3939 = vmatpush1.bf16.msra.mxu0 %v6059_v28  ;;  %v5622_v28 = vcombine.high %v417_v21, %v421_v22  ;;  %v5621_v35 = vcombine.low %v417_v21, %v421_v22  ;;  %v405_v0 = vld [vmem:[%s6424_s29 + $0x2e8] sm:$0xff] }
  0xa9   : > { %3980 = vmatpush1.bf16.msra.mxu1 %v5549_v29  ;;  %3940 = vmatprep.subr.bf16.mxu0 %v6052_v30  ;;  %v473_v29 = vld [vmem:[%s6424_s29 + $0x508] sm:$0xff] }
  0xaa   : > { %3981 = vmatprep.subr.bf16.mxu1 %v5542_v31  ;;  %v477_v30 = vld [vmem:[%s6424_s29 + $0x528] sm:$0xff] }
  0xab   : > { %v409_v31 = vld [vmem:[%s6424_s29 + $0x308] sm:$0xff]  ;;  %v5678_v36 = vcombine.high %v473_v29, %v477_v30  ;;  %v5677_v42 = vcombine.low %v473_v29, %v477_v30 }
  0xac   : > { %3941 = vmatpush1.bf16.msra.mxu0 %v6051_v37  ;;  %v5614_v37 = vcombine.high %v409_v31, %v413_v32  ;;  %v5613_v43 = vcombine.low %v409_v31, %v413_v32  ;;  %v397_v51 = vld [vmem:[%s6424_s29 + $0x2a8] sm:$0xff] }
  0xad   : > { %3982 = vmatpush1.bf16.msra.mxu1 %v5541_v39  ;;  %3942 = vmatprep.subr.bf16.mxu0 %v6044_v40  ;;  %v465_v39 = vld [vmem:[%s6424_s29 + $0x4c8] sm:$0xff] }
  0xae   : > { %3983 = vmatprep.subr.bf16.mxu1 %v5534_v41  ;;  %v469_v40 = vld [vmem:[%s6424_s29 + $0x4e8] sm:$0xff] }
  0xaf   : > { %v401_v41 = vld [vmem:[%s6424_s29 + $0x2c8] sm:$0xff]  ;;  %v5670_v46 = vcombine.high %v465_v39, %v469_v40  ;;  %v5669_v52 = vcombine.low %v465_v39, %v469_v40 }
  0xb0   : > { %3943 = vmatpush1.bf16.msra.mxu0 %v6043_v6  ;;  %v5606_v6 = vcombine.high %v401_v41, %v405_v0  ;;  %v5605_v53 = vcombine.low %v401_v41, %v405_v0  ;;  %v389_v61 = vld [vmem:[%s6424_s29 + $0x268] sm:$0xff] }
  0xb1   : > { %3984 = vmatpush1.bf16.msra.mxu1 %v5533_v48  ;;  %3944 = vmatprep.subr.bf16.mxu0 %v6036_v49  ;;  %v457_v48 = vld [vmem:[%s6424_s29 + $0x488] sm:$0xff] }
  0xb2   : > { %3985 = vmatprep.subr.bf16.mxu1 %v5526_v50  ;;  %v461_v49 = vld [vmem:[%s6424_s29 + $0x4a8] sm:$0xff] }
  0xb3   : > { %v393_v50 = vld [vmem:[%s6424_s29 + $0x288] sm:$0xff]  ;;  %v5662_v55 = vcombine.high %v457_v48, %v461_v49  ;;  %v5661_v63 = vcombine.low %v457_v48, %v461_v49 }
  0xb4   : > { %3945 = vmatpush1.bf16.msra.mxu0 %v6035_v56  ;;  %v5598_v56 = vcombine.high %v393_v50, %v397_v51  ;;  %v5597_v1 = vcombine.low %v393_v50, %v397_v51  ;;  %v441_v4 = vld [vmem:[%s6424_s29 + $0x408] sm:$0xff] }
  0xb5   : > { %3986 = vmatpush1.bf16.msra.mxu1 %v5525_v57  ;;  %3946 = vmatprep.subr.bf16.mxu0 %v6028_v58  ;;  %v449_v57 = vld [vmem:[%s6424_s29 + $0x448] sm:$0xff] }
  0xb6   : > { %3987 = vmatprep.subr.bf16.mxu1 %v5518_v60  ;;  %v453_v58 = vld [vmem:[%s6424_s29 + $0x468] sm:$0xff] }
  0xb7   : > { %v385_v60 = vld [vmem:[%s6424_s29 + $0x248] sm:$0xff]  ;;  %v5654_v2 = vcombine.high %v449_v57, %v453_v58  ;;  %v5653_v26 = vcombine.low %v449_v57, %v453_v58 }
  0xb8   : > { %3947 = vmatpush1.bf16.msra.mxu0 %v6027_v3  ;;  %v5590_v3 = vcombine.high %v385_v60, %v389_v61  ;;  %v5589_v8 = vcombine.low %v385_v60, %v389_v61 }
  0xb9   : > { %3988 = vmatpush1.bf16.msra.mxu1 %v5517_v23  ;;  %4014 = vmatprep.subr.bf16.mxu0 %v5702_v5  ;;  %v445_v23 = vld [vmem:[%s6424_s29 + $0x428] sm:$0xff] }
  0xba   : > { %3989 = vmatprep.subr.bf16.mxu1 %v5638_v7  ;;  %v377_v5 = vld [vmem:[%s6424_s29 + $0x208] sm:$0xff]  ;;  %v5646_v10 = vcombine.high %v441_v4, %v445_v23  ;;  %v5645_v19 = vcombine.low %v441_v4, %v445_v23 }
  0xbb   : > { %3965 = vmatmul.mubr.bf16.vlgmr.msra.gmra.mxu0 %v6655_v9  ;;  %v381_v7 = vld [vmem:[%s6424_s29 + $0x228] sm:$0xff] }
  0xbc   : > { %4015 = vmatpush1.bf16.msra.mxu0 %v5701_v13  ;;  %4046 = vmatprep.mubr.bf16.mxu0 %v6482_v17  ;;  %v5582_v11 = vcombine.high %v377_v5, %v381_v7  ;;  %v561_v13 = vld [vmem:[%s6424_s29 + $0x7c8] sm:$0xff]  ;;  %v5581_v20 = vcombine.low %v377_v5, %v381_v7 }
  0xbd   : > { %3990 = vmatpush2.bf16.msra.mxu1 %v5637_v15  ;;  %4016 = vmatprep.subr.bf16.mxu0 %v5694_v16  ;;  %v565_v15 = vld [vmem:[%s6424_s29 + $0x7e8] sm:$0xff] }
  0xbe   : > { %3991 = vmatprep.subr.bf16.mxu1 %v5630_v18  ;;  %v625_v16 = vld [vmem:[%s6424_s29 + $0x9c8] sm:$0xff]  ;;  %v5766_v21 = vcombine.high %v561_v13, %v565_v15  ;;  %v5765_v29 = vcombine.low %v561_v13, %v565_v15 }
  0xbf   : > { %v629_v18 = vld [vmem:[%s6424_s29 + $0x9e8] sm:$0xff] }
  0xc0   : > { %4017 = vmatpush1.bf16.msra.mxu0 %v5693_v24  ;;  %v5830_v22 = vcombine.high %v625_v16, %v629_v18  ;;  %v553_v24 = vld [vmem:[%s6424_s29 + $0x788] sm:$0xff]  ;;  %v5829_v30 = vcombine.low %v625_v16, %v629_v18 }
  0xc1   : > { %3992 = vmatpush2.bf16.msra.mxu1 %v5629_v25  ;;  %4018 = vmatprep.subr.bf16.mxu0 %v5686_v27  ;;  %v557_v25 = vld [vmem:[%s6424_s29 + $0x7a8] sm:$0xff] }
  0xc2   : > { %3993 = vmatprep.subr.bf16.mxu1 %v5622_v28  ;;  %v617_v27 = vld [vmem:[%s6424_s29 + $0x988] sm:$0xff]  ;;  %v5758_v31 = vcombine.high %v553_v24, %v557_v25  ;;  %v5757_v39 = vcombine.low %v553_v24, %v557_v25 }
  0xc3   : > { %v621_v28 = vld [vmem:[%s6424_s29 + $0x9a8] sm:$0xff] }
  0xc4   : > { %4019 = vmatpush1.bf16.msra.mxu0 %v5685_v33  ;;  %v5822_v32 = vcombine.high %v617_v27, %v621_v28  ;;  %v545_v33 = vld [vmem:[%s6424_s29 + $0x748] sm:$0xff]  ;;  %v5821_v40 = vcombine.low %v617_v27, %v621_v28 }
  0xc5   : > { %3994 = vmatpush2.bf16.msra.mxu1 %v5621_v35  ;;  %4020 = vmatprep.subr.bf16.mxu0 %v5678_v36  ;;  %v549_v35 = vld [vmem:[%s6424_s29 + $0x768] sm:$0xff] }
  0xc6   : > { %3995 = vmatprep.subr.bf16.mxu1 %v5614_v37  ;;  %v609_v36 = vld [vmem:[%s6424_s29 + $0x948] sm:$0xff]  ;;  %v5750_v41 = vcombine.high %v545_v33, %v549_v35  ;;  %v5749_v48 = vcombine.low %v545_v33, %v549_v35 }
  0xc7   : > { %v613_v37 = vld [vmem:[%s6424_s29 + $0x968] sm:$0xff] }
  0xc8   : > { %4021 = vmatpush1.bf16.msra.mxu0 %v5677_v42  ;;  %v5814_v0 = vcombine.high %v609_v36, %v613_v37  ;;  %v537_v42 = vld [vmem:[%s6424_s29 + $0x708] sm:$0xff]  ;;  %v5813_v49 = vcombine.low %v609_v36, %v613_v37 }
  0xc9   : > { %3996 = vmatpush2.bf16.msra.mxu1 %v5613_v43  ;;  %4022 = vmatprep.subr.bf16.mxu0 %v5670_v46  ;;  %v541_v43 = vld [vmem:[%s6424_s29 + $0x728] sm:$0xff] }
  0xca   : > { %3997 = vmatprep.subr.bf16.mxu1 %v5606_v6  ;;  %v601_v46 = vld [vmem:[%s6424_s29 + $0x908] sm:$0xff]  ;;  %v5742_v50 = vcombine.high %v537_v42, %v541_v43  ;;  %v5741_v57 = vcombine.low %v537_v42, %v541_v43 }
  0xcb   : > { %v605_v6 = vld [vmem:[%s6424_s29 + $0x928] sm:$0xff] }
  0xcc   : > { %4023 = vmatpush1.bf16.msra.mxu0 %v5669_v52  ;;  %v5806_v51 = vcombine.high %v601_v46, %v605_v6  ;;  %v529_v52 = vld [vmem:[%s6424_s29 + $0x6c8] sm:$0xff]  ;;  %v5805_v58 = vcombine.low %v601_v46, %v605_v6 }
  0xcd   : > { %3998 = vmatpush2.bf16.msra.mxu1 %v5605_v53  ;;  %4024 = vmatprep.subr.bf16.mxu0 %v5662_v55  ;;  %v533_v53 = vld [vmem:[%s6424_s29 + $0x6e8] sm:$0xff] }
  0xce   : > { %3999 = vmatprep.subr.bf16.mxu1 %v5598_v56  ;;  %v593_v55 = vld [vmem:[%s6424_s29 + $0x8c8] sm:$0xff]  ;;  %v5734_v60 = vcombine.high %v529_v52, %v533_v53  ;;  %v5733_v4 = vcombine.low %v529_v52, %v533_v53 }
  0xcf   : > { %v597_v56 = vld [vmem:[%s6424_s29 + $0x8e8] sm:$0xff] }
  0xd0   : > { %4025 = vmatpush1.bf16.msra.mxu0 %v5661_v63  ;;  %v5798_v61 = vcombine.high %v593_v55, %v597_v56  ;;  %v521_v63 = vld [vmem:[%s6424_s29 + $0x688] sm:$0xff]  ;;  %v5797_v23 = vcombine.low %v593_v55, %v597_v56 }
  0xd1   : > { %4000 = vmatpush2.bf16.msra.mxu1 %v5597_v1  ;;  %4026 = vmatprep.subr.bf16.mxu0 %v5654_v2  ;;  %v525_v1 = vld [vmem:[%s6424_s29 + $0x6a8] sm:$0xff] }
  0xd2   : > { %4001 = vmatprep.subr.bf16.mxu1 %v5590_v3  ;;  %v585_v2 = vld [vmem:[%s6424_s29 + $0x888] sm:$0xff]  ;;  %v5726_v5 = vcombine.high %v521_v63, %v525_v1  ;;  %v5725_v13 = vcombine.low %v521_v63, %v525_v1 }
  0xd3   : > { %v589_v3 = vld [vmem:[%s6424_s29 + $0x8a8] sm:$0xff] }
  0xd4   : > { %4027 = vmatpush1.bf16.msra.mxu0 %v5653_v26  ;;  %v5790_v7 = vcombine.high %v585_v2, %v589_v3  ;;  %v513_v26 = vld [vmem:[%s6424_s29 + $0x648] sm:$0xff]  ;;  %v5789_v15 = vcombine.low %v585_v2, %v589_v3 }
  0xd5   : > { %4002 = vmatpush2.bf16.msra.mxu1 %v5589_v8  ;;  %4028 = vmatprep.subr.bf16.mxu0 %v5646_v10  ;;  %v517_v8 = vld [vmem:[%s6424_s29 + $0x668] sm:$0xff] }
  0xd6   : > { %4003 = vmatprep.subr.bf16.mxu1 %v5582_v11  ;;  %v577_v10 = vld [vmem:[%s6424_s29 + $0x848] sm:$0xff]  ;;  %v5718_v16 = vcombine.high %v513_v26, %v517_v8  ;;  %v5717_v24 = vcombine.low %v513_v26, %v517_v8 }
  0xd7   : > { %v581_v11 = vld [vmem:[%s6424_s29 + $0x868] sm:$0xff] }
  0xd8   : > { %4029 = vmatpush1.bf16.msra.mxu0 %v5645_v19  ;;  %v5782_v18 = vcombine.high %v577_v10, %v581_v11  ;;  %v505_v19 = vld [vmem:[%s6424_s29 + $0x608] sm:$0xff]  ;;  %v5781_v25 = vcombine.low %v577_v10, %v581_v11 }
  0xd9   : > { %4004 = vmatpush2.bf16.msra.mxu1 %v5581_v20  ;;  %4030 = vmatprep.subr.bf16.mxu0 %v5766_v21  ;;  %v509_v20 = vld [vmem:[%s6424_s29 + $0x628] sm:$0xff] }
  0xda   : > { %4055 = vmatprep.subr.bf16.mxu1 %v5830_v22  ;;  %v569_v21 = vld [vmem:[%s6424_s29 + $0x808] sm:$0xff]  ;;  %v5710_v27 = vcombine.high %v505_v19, %v509_v20  ;;  %v5709_v33 = vcombine.low %v505_v19, %v509_v20 }
  0xdb   : > { %v573_v22 = vld [vmem:[%s6424_s29 + $0x828] sm:$0xff] }
  0xdc   : > { %4006 = vmatmul.mubr.bf16.vlgmr.msra.gmra.mxu1 %v6530_v34  ;;  %4031 = vmatpush2.bf16.msra.mxu0 %v5765_v29  ;;  %v5774_v28 = vcombine.high %v569_v21, %v573_v22  ;;  %v753_v29 = vld [vmem:[%s6424_s29 + $0xdc8] sm:$0xff]  ;;  %v5773_v35 = vcombine.low %v569_v21, %v573_v22 }
  0xdd   : > { %4056 = vmatpush1.bf16.msra.mxu1 %v5829_v30  ;;  %4032 = vmatprep.subr.bf16.mxu0 %v5758_v31  ;;  %v757_v30 = vld [vmem:[%s6424_s29 + $0xde8] sm:$0xff] }
  0xde   : > { %4057 = vmatprep.subr.bf16.mxu1 %v5822_v32  ;;  %4087 = vmatprep.mubr.bf16.mxu1 %v6542_v44  ;;  %v689_v31 = vld [vmem:[%s6424_s29 + $0xbc8] sm:$0xff]  ;;  %v5958_v36 = vcombine.high %v753_v29, %v757_v30  ;;  %v5957_v42 = vcombine.low %v753_v29, %v757_v30 }
  0xdf   : > { %v693_v32 = vld [vmem:[%s6424_s29 + $0xbe8] sm:$0xff] }
  0xe0   : > { %4033 = vmatpush2.bf16.msra.mxu0 %v5757_v39  ;;  %v5894_v37 = vcombine.high %v689_v31, %v693_v32  ;;  %v745_v39 = vld [vmem:[%s6424_s29 + $0xd88] sm:$0xff]  ;;  %v5893_v43 = vcombine.low %v689_v31, %v693_v32 }
  0xe1   : > { %4058 = vmatpush1.bf16.msra.mxu1 %v5821_v40  ;;  %4034 = vmatprep.subr.bf16.mxu0 %v5750_v41  ;;  %v749_v40 = vld [vmem:[%s6424_s29 + $0xda8] sm:$0xff] }
  0xe2   : > { %4059 = vmatprep.subr.bf16.mxu1 %v5814_v0  ;;  %v681_v41 = vld [vmem:[%s6424_s29 + $0xb88] sm:$0xff]  ;;  %v5950_v46 = vcombine.high %v745_v39, %v749_v40  ;;  %v5949_v52 = vcombine.low %v745_v39, %v749_v40 }
  0xe3   : > { %v685_v0 = vld [vmem:[%s6424_s29 + $0xba8] sm:$0xff] }
  0xe4   : > { %4035 = vmatpush2.bf16.msra.mxu0 %v5749_v48  ;;  %v5886_v6 = vcombine.high %v681_v41, %v685_v0  ;;  %v737_v48 = vld [vmem:[%s6424_s29 + $0xd48] sm:$0xff]  ;;  %v5885_v53 = vcombine.low %v681_v41, %v685_v0 }
  0xe5   : > { %4060 = vmatpush1.bf16.msra.mxu1 %v5813_v49  ;;  %4036 = vmatprep.subr.bf16.mxu0 %v5742_v50  ;;  %v741_v49 = vld [vmem:[%s6424_s29 + $0xd68] sm:$0xff] }
  0xe6   : > { %4061 = vmatprep.subr.bf16.mxu1 %v5806_v51  ;;  %v673_v50 = vld [vmem:[%s6424_s29 + $0xb48] sm:$0xff]  ;;  %v5942_v55 = vcombine.high %v737_v48, %v741_v49  ;;  %v5941_v63 = vcombine.low %v737_v48, %v741_v49 }
  0xe7   : > { %v677_v51 = vld [vmem:[%s6424_s29 + $0xb68] sm:$0xff] }
  0xe8   : > { %4037 = vmatpush2.bf16.msra.mxu0 %v5741_v57  ;;  %v5878_v56 = vcombine.high %v673_v50, %v677_v51  ;;  %v729_v57 = vld [vmem:[%s6424_s29 + $0xd08] sm:$0xff]  ;;  %v5877_v1 = vcombine.low %v673_v50, %v677_v51 }
  0xe9   : > { %4062 = vmatpush1.bf16.msra.mxu1 %v5805_v58  ;;  %4038 = vmatprep.subr.bf16.mxu0 %v5734_v60  ;;  %v733_v58 = vld [vmem:[%s6424_s29 + $0xd28] sm:$0xff] }
  0xea   : > { %4063 = vmatprep.subr.bf16.mxu1 %v5798_v61  ;;  %v665_v60 = vld [vmem:[%s6424_s29 + $0xb08] sm:$0xff]  ;;  %v5934_v2 = vcombine.high %v729_v57, %v733_v58  ;;  %v5933_v26 = vcombine.low %v729_v57, %v733_v58 }
  0xeb   : > { %v669_v61 = vld [vmem:[%s6424_s29 + $0xb28] sm:$0xff] }
  0xec   : > { %4039 = vmatpush2.bf16.msra.mxu0 %v5733_v4  ;;  %v5870_v3 = vcombine.high %v665_v60, %v669_v61  ;;  %v721_v4 = vld [vmem:[%s6424_s29 + $0xcc8] sm:$0xff]  ;;  %v5869_v8 = vcombine.low %v665_v60, %v669_v61 }
  0xed   : > { %4064 = vmatpush1.bf16.msra.mxu1 %v5797_v23  ;;  %4040 = vmatprep.subr.bf16.mxu0 %v5726_v5  ;;  %v725_v23 = vld [vmem:[%s6424_s29 + $0xce8] sm:$0xff] }
  0xee   : > { %4065 = vmatprep.subr.bf16.mxu1 %v5790_v7  ;;  %v657_v5 = vld [vmem:[%s6424_s29 + $0xac8] sm:$0xff]  ;;  %v5926_v10 = vcombine.high %v721_v4, %v725_v23  ;;  %v5925_v19 = vcombine.low %v721_v4, %v725_v23 }
  0xef   : > { %v661_v7 = vld [vmem:[%s6424_s29 + $0xae8] sm:$0xff] }
  0xf0   : > { %4041 = vmatpush2.bf16.msra.mxu0 %v5725_v13  ;;  %v5862_v11 = vcombine.high %v657_v5, %v661_v7  ;;  %v713_v13 = vld [vmem:[%s6424_s29 + $0xc88] sm:$0xff]  ;;  %v5861_v20 = vcombine.low %v657_v5, %v661_v7 }
  0xf1   : > { %4066 = vmatpush1.bf16.msra.mxu1 %v5789_v15  ;;  %4042 = vmatprep.subr.bf16.mxu0 %v5718_v16  ;;  %v717_v15 = vld [vmem:[%s6424_s29 + $0xca8] sm:$0xff] }
  0xf2   : > { %4067 = vmatprep.subr.bf16.mxu1 %v5782_v18  ;;  %v649_v16 = vld [vmem:[%s6424_s29 + $0xa88] sm:$0xff]  ;;  %v5918_v21 = vcombine.high %v713_v13, %v717_v15  ;;  %v5917_v29 = vcombine.low %v713_v13, %v717_v15 }
  0xf3   : > { %v653_v18 = vld [vmem:[%s6424_s29 + $0xaa8] sm:$0xff] }
  0xf4   : > { %4043 = vmatpush2.bf16.msra.mxu0 %v5717_v24  ;;  %v5854_v22 = vcombine.high %v649_v16, %v653_v18  ;;  %v705_v24 = vld [vmem:[%s6424_s29 + $0xc48] sm:$0xff]  ;;  %v5853_v30 = vcombine.low %v649_v16, %v653_v18 }
  0xf5   : > { %4068 = vmatpush1.bf16.msra.mxu1 %v5781_v25  ;;  %4044 = vmatprep.subr.bf16.mxu0 %v5710_v27  ;;  %v709_v25 = vld [vmem:[%s6424_s29 + $0xc68] sm:$0xff] }
  0xf6   : > { %4069 = vmatprep.subr.bf16.mxu1 %v5774_v28  ;;  %v641_v27 = vld [vmem:[%s6424_s29 + $0xa48] sm:$0xff]  ;;  %v5910_v31 = vcombine.high %v705_v24, %v709_v25  ;;  %v5909_v39 = vcombine.low %v705_v24, %v709_v25 }
  0xf7   : > { %v645_v28 = vld [vmem:[%s6424_s29 + $0xa68] sm:$0xff] }
  0xf8   : > { %4045 = vmatpush2.bf16.msra.mxu0 %v5709_v33  ;;  %v5846_v32 = vcombine.high %v641_v27, %v645_v28  ;;  %v697_v33 = vld [vmem:[%s6424_s29 + $0xc08] sm:$0xff]  ;;  %v5845_v40 = vcombine.low %v641_v27, %v645_v28 }
  0xf9   : > { %4070 = vmatpush1.bf16.msra.mxu1 %v5773_v35  ;;  %4096 = vmatprep.subr.bf16.mxu0 %v5958_v36  ;;  %v701_v35 = vld [vmem:[%s6424_s29 + $0xc28] sm:$0xff] }
  0xfa   : > { %4071 = vmatprep.subr.bf16.mxu1 %v5894_v37  ;;  %v633_v36 = vld [vmem:[%s6424_s29 + $0xa08] sm:$0xff]  ;;  %v5902_v41 = vcombine.high %v697_v33, %v701_v35  ;;  %v5901_v48 = vcombine.low %v697_v33, %v701_v35 }
  0xfb   : > { %4047 = vmatmul.mubr.bf16.vlgmr.msra.gmra.mxu0 %v6538_v38  ;;  %v637_v37 = vld [vmem:[%s6424_s29 + $0xa28] sm:$0xff] }
  0xfc   : > { %4097 = vmatpush1.bf16.msra.mxu0 %v5957_v42  ;;  %4128 = vmatprep.mubr.bf16.mxu0 %v6547_v47  ;;  %v5838_v0 = vcombine.high %v633_v36, %v637_v37  ;;  %v817_v42 = vld [vmem:[%s6424_s29 + $0xfc8] sm:$0xff]  ;;  %v5837_v49 = vcombine.low %v633_v36, %v637_v37 }
  0xfd   : > { %4072 = vmatpush2.bf16.msra.mxu1 %v5893_v43  ;;  %4098 = vmatprep.subr.bf16.mxu0 %v5950_v46  ;;  %v821_v43 = vld [vmem:[%s6424_s29 + $0xfe8] sm:$0xff] }
  0xfe   : > { %4073 = vmatprep.subr.bf16.mxu1 %v5886_v6  ;;  %v881_v46 = vld [vmem:[%s6424_s29 + $0x11c8] sm:$0xff]  ;;  %v6022_v50 = vcombine.high %v817_v42, %v821_v43  ;;  %v6021_v57 = vcombine.low %v817_v42, %v821_v43 }
  0xff   : > { %v885_v6 = vld [vmem:[%s6424_s29 + $0x11e8] sm:$0xff] }
 0x100   : > { %4099 = vmatpush1.bf16.msra.mxu0 %v5949_v52  ;;  %v6086_v51 = vcombine.high %v881_v46, %v885_v6  ;;  %v809_v52 = vld [vmem:[%s6424_s29 + $0xf88] sm:$0xff]  ;;  %v6085_v58 = vcombine.low %v881_v46, %v885_v6 }
 0x101   : > { %4074 = vmatpush2.bf16.msra.mxu1 %v5885_v53  ;;  %4100 = vmatprep.subr.bf16.mxu0 %v5942_v55  ;;  %v813_v53 = vld [vmem:[%s6424_s29 + $0xfa8] sm:$0xff] }
 0x102   : > { %4075 = vmatprep.subr.bf16.mxu1 %v5878_v56  ;;  %v873_v55 = vld [vmem:[%s6424_s29 + $0x1188] sm:$0xff]  ;;  %v6014_v60 = vcombine.high %v809_v52, %v813_v53  ;;  %v6013_v5 = vcombine.low %v809_v52, %v813_v53 }
 0x103   : > { %v877_v56 = vld [vmem:[%s6424_s29 + $0x11a8] sm:$0xff] }
 0x104   : > { %4101 = vmatpush1.bf16.msra.mxu0 %v5941_v63  ;;  %v6078_v61 = vcombine.high %v873_v55, %v877_v56  ;;  %v801_v63 = vld [vmem:[%s6424_s29 + $0xf48] sm:$0xff] }
 0x105   : > { %4076 = vmatpush2.bf16.msra.mxu1 %v5877_v1  ;;  %4102 = vmatprep.subr.bf16.mxu0 %v5934_v2  ;;  %v805_v1 = vld [vmem:[%s6424_s29 + $0xf68] sm:$0xff] }
 0x106   : > { %4077 = vmatprep.subr.bf16.mxu1 %v5870_v3  ;;  %v865_v3 = vld [vmem:[%s6424_s29 + $0x1148] sm:$0xff]  ;;  %v6005_v24 = vcombine.low %v801_v63, %v805_v1 }
 0x107   : > { %v869_v4 = vld [vmem:[%s6424_s29 + $0x1168] sm:$0xff] }
 0x108   : > { %4103 = vmatpush1.bf16.msra.mxu0 %v5933_v26  ;;  %v6070_v13 = vcombine.high %v865_v3, %v869_v4  ;;  %v793_v15 = vld [vmem:[%s6424_s29 + $0xf08] sm:$0xff]  ;;  %v6069_v27 = vcombine.low %v865_v3, %v869_v4 }
 0x109   : > { %4078 = vmatpush2.bf16.msra.mxu1 %v5869_v8  ;;  %4104 = vmatprep.subr.bf16.mxu0 %v5926_v10  ;;  %v6077_v8 = vcombine.low %v873_v55, %v877_v56  ;;  %v6006_v10 = vcombine.high %v801_v63, %v805_v1  ;;  %v797_v16 = vld [vmem:[%s6424_s29 + $0xf28] sm:$0xff] }
 0x10a   : > { %4079 = vmatprep.subr.bf16.mxu1 %v5862_v11  ;;  %v5998_v28 = vcombine.high %v793_v15, %v797_v16  ;;  %v849_v33 = vld [vmem:[%s6424_s29 + $0x10c8] sm:$0xff]  ;;  %v5997_v36 = vcombine.low %v793_v15, %v797_v16 }
 0x10b   : > { %v853_v35 = vld [vmem:[%s6424_s29 + $0x10e8] sm:$0xff] }
 0x10c   : > { %4105 = vmatpush1.bf16.msra.mxu0 %v5925_v19  ;;  %v841_v42 = vld [vmem:[%s6424_s29 + $0x1088] sm:$0xff]  ;;  %v6053_v6 = vcombine.low %v849_v33, %v853_v35 }
 0x10d   : > { %4080 = vmatpush2.bf16.msra.mxu1 %v5861_v20  ;;  %4106 = vmatprep.subr.bf16.mxu0 %v5918_v21  ;;  %v857_v20 = vld [vmem:[%s6424_s29 + $0x1108] sm:$0xff] }
 0x10e   : > { %4081 = vmatprep.subr.bf16.mxu1 %v5854_v22  ;;  %v861_v21 = vld [vmem:[%s6424_s29 + $0x1128] sm:$0xff] }
 0x10f   : > { %v6061_v37 = vcombine.low %v857_v20, %v861_v21  ;;  %v845_v43 = vld [vmem:[%s6424_s29 + $0x10a8] sm:$0xff] }
 0x110   : > { %4107 = vmatpush1.bf16.msra.mxu0 %v5917_v29  ;;  %v833_v52 = vld [vmem:[%s6424_s29 + $0x1048] sm:$0xff]  ;;  %v6045_v56 = vcombine.low %v841_v42, %v845_v43 }
 0x111   : > { %4082 = vmatpush2.bf16.msra.mxu1 %v5853_v30  ;;  %4108 = vmatprep.subr.bf16.mxu0 %v5910_v31  ;;  %v6062_v30 = vcombine.high %v857_v20, %v861_v21  ;;  %v785_v31 = vld [vmem:[%s6424_s29 + $0xec8] sm:$0xff]  ;;  %v366_v20 = vld [vmem:[%s6424_s29 + $0x1b0] sm:$0xff] }
 0x112   : > { %4083 = vmatprep.subr.bf16.mxu1 %v5846_v32  ;;  %v789_v32 = vld [vmem:[%s6424_s29 + $0xee8] sm:$0xff]  ;;  %v490_v21 = vld [vmem:[%s6424_s29 + $0x590] sm:$0xff] }
 0x113   : > { %v5989_v46 = vcombine.low %v785_v31, %v789_v32  ;;  %v837_v53 = vld [vmem:[%s6424_s29 + $0x1068] sm:$0xff] }
 0x114   : > { %4109 = vmatpush1.bf16.msra.mxu0 %v5909_v39  ;;  %v5990_v39 = vcombine.high %v785_v31, %v789_v32  ;;  %v825_v63 = vld [vmem:[%s6424_s29 + $0x1008] sm:$0xff]  ;;  %v6037_v3 = vcombine.low %v833_v52, %v837_v53  ;;  %v482_v31 = vld [vmem:[%s6424_s29 + $0x550] sm:$0xff] }
 0x115   : > { %4084 = vmatpush2.bf16.msra.mxu1 %v5845_v40  ;;  %4110 = vmatprep.subr.bf16.mxu0 %v5902_v41  ;;  %v6054_v40 = vcombine.high %v849_v33, %v853_v35  ;;  %v777_v41 = vld [vmem:[%s6424_s29 + $0xe88] sm:$0xff]  ;;  %v486_v32 = vld [vmem:[%s6424_s29 + $0x570] sm:$0xff] }
 0x116   : > { %4085 = vmatprep.subr.bf16.mxu1 %v5838_v0  ;;  %v781_v0 = vld [vmem:[%s6424_s29 + $0xea8] sm:$0xff] }
 0x117   : > { %v5981_v55 = vcombine.low %v777_v41, %v781_v0  ;;  %v829_v1 = vld [vmem:[%s6424_s29 + $0x1028] sm:$0xff] }
 0x118   : > { %4111 = vmatpush1.bf16.msra.mxu0 %v5901_v48  ;;  %v5982_v48 = vcombine.high %v777_v41, %v781_v0  ;;  %v474_v41 = vld [vmem:[%s6424_s29 + $0x510] sm:$0xff] }
 0x119   : > { %4086 = vmatpush2.bf16.msra.mxu1 %v5837_v49  ;;  %4112 = vmatprep.subr.bf16.mxu0 %v6022_v50  ;;  %v6046_v49 = vcombine.high %v841_v42, %v845_v43  ;;  %v769_v50 = vld [vmem:[%s6424_s29 + $0xe48] sm:$0xff]  ;;  %v478_v0 = vld [vmem:[%s6424_s29 + $0x530] sm:$0xff]  ;;  %v5687_v43 = vcombine.low %v482_v31, %v486_v32 }
 0x11a   : > { %4137 = vmatprep.subr.bf16.mxu1 %v6086_v51  ;;  %v3802_v2 = vpop.f32.mrf.mxu0  ;;  %v773_v51 = vld [vmem:[%s6424_s29 + $0xe68] sm:$0xff] }
 0x11c   : > { %v3843_v23 = vpop.f32.mrf.mxu1  ;;  %4088 = vmatmul.mubr.bf16.vlgmr.msra.gmra.mxu1 %v6612_v59  ;;  %4113 = vmatpush2.bf16.msra.mxu0 %v6021_v57  ;;  %v3804_v26 = vpop.f32.mrf.mxu0  ;;  %v5974_v57 = vcombine.high %v769_v50, %v773_v51 }
 0x11d   : > { %v6766_v7 = vadd.f32 %v3843_v23, %v3802_v2  ;;  %4138 = vmatpush1.bf16.msra.mxu1 %v6085_v58  ;;  %4114 = vmatprep.subr.bf16.mxu0 %v6014_v60  ;;  %v6038_v58 = vcombine.high %v833_v52, %v837_v53  ;;  %v761_v60 = vld [vmem:[%s6424_s29 + $0xe08] sm:$0xff]  ;;  %v5973_v2 = vcombine.low %v769_v50, %v773_v51  ;;  %v466_v50 = vld [vmem:[%s6424_s29 + $0x4d0] sm:$0xff] }
 0x11e   : > { %v3845_v11 = vpop.f32.mrf.mxu1  ;;  %4139 = vmatprep.subr.bf16.mxu1 %v6078_v61  ;;  %4169 = vmatprep.mubr.bf16.mxu1 %v6372_v14  ;;  %v3806_v19 = vpop.f32.mrf.mxu0  ;;  %v765_v61 = vld [vmem:[%s6424_s29 + $0xe28] sm:$0xff]  ;;  %v6030_v23 = vcombine.high %v825_v63, %v829_v1  ;;  %v470_v51 = vld [vmem:[%s6424_s29 + $0x4f0] sm:$0xff]  ;;  %v5679_v53 = vcombine.low %v474_v41, %v478_v0 }
 0x11f   : > { %v6771_v18 = vadd.f32 %v3845_v11, %v3804_v26  ;;  %v5966_v4 = vcombine.high %v761_v60, %v765_v61  ;;  %v374_v26 = vld [vmem:[%s6424_s29 + $0x1f0] sm:$0xff]  ;;  %v5965_v11 = vcombine.low %v761_v60, %v765_v61 }
 0x120   : > { %v3847_v22 = vpop.f32.mrf.mxu1  ;;  %4115 = vmatpush2.bf16.msra.mxu0 %v6013_v5  ;;  %v3807_v25 = vpop.f32.mrf.mxu0  ;;  %v370_v5 = vld [vmem:[%s6424_s29 + $0x1d0] sm:$0xff] }
 0x121   : > { %4140 = vmatpush1.bf16.msra.mxu1 %v6077_v8  ;;  %4116 = vmatprep.subr.bf16.mxu0 %v6006_v10  ;;  %v498_v8 = vld [vmem:[%s6424_s29 + $0x5d0] sm:$0xff]  ;;  %v5576_v15 = vcombine.high %v370_v5, %v374_v26 }
 0x122   : > { %v3848_v29 = vpop.f32.mrf.mxu1  ;;  %4141 = vmatprep.subr.bf16.mxu1 %v6070_v13  ;;  %v502_v10 = vld [vmem:[%s6424_s29 + $0x5f0] sm:$0xff]  ;;  %v6029_v13 = vcombine.low %v825_v63, %v829_v1  ;;  %v5671_v1 = vcombine.low %v466_v50, %v470_v51 }
 0x123   : > { %v5704_v16 = vcombine.high %v498_v8, %v502_v10  ;;  %v362_v19 = vld [vmem:[%s6424_s29 + $0x190] sm:$0xff]  ;;  %v5703_v25 = vcombine.low %v498_v8, %v502_v10 }
 0x124   : > { %4117 = vmatpush2.bf16.msra.mxu0 %v6005_v24  ;;  %v494_v22 = vld [vmem:[%s6424_s29 + $0x5b0] sm:$0xff]  ;;  %v5575_v24 = vcombine.low %v370_v5, %v374_v26  ;;  %v5567_v33 = vcombine.low %v362_v19, %v366_v20 }
 0x125   : > { %4142 = vmatpush1.bf16.msra.mxu1 %v6069_v27  ;;  %4118 = vmatprep.subr.bf16.mxu0 %v5998_v28  ;;  %v5568_v27 = vcombine.high %v362_v19, %v366_v20  ;;  %v5696_v28 = vcombine.high %v490_v21, %v494_v22  ;;  %v354_v29 = vld [vmem:[%s6424_s29 + $0x150] sm:$0xff]  ;;  %v5695_v35 = vcombine.low %v490_v21, %v494_v22 }
 0x126   : > { %4143 = vmatprep.subr.bf16.mxu1 %v6062_v30  ;;  %v358_v30 = vld [vmem:[%s6424_s29 + $0x170] sm:$0xff] }
 0x127   : > { %v5559_v42 = vcombine.low %v354_v29, %v358_v30  ;;  %v458_v60 = vld [vmem:[%s6424_s29 + $0x490] sm:$0xff] }
 0x128   : > { %4119 = vmatpush2.bf16.msra.mxu0 %v5997_v36  ;;  %v5560_v36 = vcombine.high %v354_v29, %v358_v30  ;;  %v462_v61 = vld [vmem:[%s6424_s29 + $0x4b0] sm:$0xff] }
 0x129   : > { %4144 = vmatpush1.bf16.msra.mxu1 %v6061_v37  ;;  %4120 = vmatprep.subr.bf16.mxu0 %v5990_v39  ;;  %v5688_v37 = vcombine.high %v482_v31, %v486_v32  ;;  %v346_v39 = vld [vmem:[%s6424_s29 + $0x110] sm:$0xff]  ;;  %v5663_v10 = vcombine.low %v458_v60, %v462_v61 }
 0x12a   : > { %4145 = vmatprep.subr.bf16.mxu1 %v6054_v40  ;;  %v350_v40 = vld [vmem:[%s6424_s29 + $0x130] sm:$0xff] }
 0x12b   : > { %v5551_v52 = vcombine.low %v346_v39, %v350_v40  ;;  %v450_v5 = vld [vmem:[%s6424_s29 + $0x450] sm:$0xff] }
 0x12c   : > { %4121 = vmatpush2.bf16.msra.mxu0 %v5989_v46  ;;  %v5552_v46 = vcombine.high %v346_v39, %v350_v40  ;;  %v454_v26 = vld [vmem:[%s6424_s29 + $0x470] sm:$0xff] }
 0x12d   : > { %4146 = vmatpush1.bf16.msra.mxu1 %v6053_v6  ;;  %4122 = vmatprep.subr.bf16.mxu0 %v5982_v48  ;;  %v5680_v6 = vcombine.high %v474_v41, %v478_v0  ;;  %v338_v48 = vld [vmem:[%s6424_s29 + $0xd0] sm:$0xff]  ;;  %v5655_v22 = vcombine.low %v450_v5, %v454_v26 }
 0x12e   : > { %4147 = vmatprep.subr.bf16.mxu1 %v6046_v49  ;;  %v342_v49 = vld [vmem:[%s6424_s29 + $0xf0] sm:$0xff] }
 0x12f   : > { %v5543_v63 = vcombine.low %v338_v48, %v342_v49  ;;  %v442_v19 = vld [vmem:[%s6424_s29 + $0x410] sm:$0xff] }
 0x130   : > { %4123 = vmatpush2.bf16.msra.mxu0 %v5981_v55  ;;  %v5544_v55 = vcombine.high %v338_v48, %v342_v49  ;;  %v446_v20 = vld [vmem:[%s6424_s29 + $0x430] sm:$0xff] }
 0x131   : > { %4148 = vmatpush1.bf16.msra.mxu1 %v6045_v56  ;;  %4124 = vmatprep.subr.bf16.mxu0 %v5974_v57  ;;  %v5672_v56 = vcombine.high %v466_v50, %v470_v51  ;;  %v330_v57 = vld [vmem:[%s6424_s29 + $0x90] sm:$0xff]  ;;  %v5647_v32 = vcombine.low %v442_v19, %v446_v20 }
 0x132   : > { %4149 = vmatprep.subr.bf16.mxu1 %v6038_v58  ;;  %v334_v58 = vld [vmem:[%s6424_s29 + $0xb0] sm:$0xff] }
 0x133   : > { %v5535_v8 = vcombine.low %v330_v57, %v334_v58  ;;  %v562_v29 = vld [vmem:[%s6424_s29 + $0x7d0] sm:$0xff] }
 0x134   : > { %4125 = vmatpush2.bf16.msra.mxu0 %v5973_v2  ;;  %v5536_v2 = vcombine.high %v330_v57, %v334_v58  ;;  %v566_v30 = vld [vmem:[%s6424_s29 + $0x7f0] sm:$0xff] }
 0x135   : > { %4150 = vmatpush1.bf16.msra.mxu1 %v6037_v3  ;;  %4126 = vmatprep.subr.bf16.mxu0 %v5966_v4  ;;  %v5664_v3 = vcombine.high %v458_v60, %v462_v61  ;;  %v322_v4 = vld [vmem:[%s6424_s29 + $0x50] sm:$0xff]  ;;  %v5767_v0 = vcombine.low %v562_v29, %v566_v30 }
 0x136   : > { %4151 = vmatprep.subr.bf16.mxu1 %v6030_v23  ;;  %v326_v23 = vld [vmem:[%s6424_s29 + $0x70] sm:$0xff] }
 0x137   : > { %v5527_v21 = vcombine.low %v322_v4, %v326_v23  ;;  %v554_v39 = vld [vmem:[%s6424_s29 + $0x790] sm:$0xff] }
 0x138   : > { %4127 = vmatpush2.bf16.msra.mxu0 %v5965_v11  ;;  %v5528_v11 = vcombine.high %v322_v4, %v326_v23  ;;  %v558_v40 = vld [vmem:[%s6424_s29 + $0x7b0] sm:$0xff] }
 0x139   : > { %4152 = vmatpush1.bf16.msra.mxu1 %v6029_v13  ;;  %4178 = vmatprep.subr.bf16.mxu0 %v5576_v15  ;;  %v5656_v13 = vcombine.high %v450_v5, %v454_v26  ;;  %v314_v15 = vld [vmem:[%s6424_s29 + $0x10] sm:$0xff] }
 0x13a   : > { %4219 = vmatprep.subr.bf16.mxu1 %v5704_v16  ;;  %v318_v16 = vld [vmem:[%s6424_s29 + $0x30] sm:$0xff] }
 0x13b   : > { %4129 = vmatmul.mubr.bf16.vlgmr.msra.gmra.mxu0 %v6618_v62  ;;  %v5519_v31 = vcombine.low %v314_v15, %v318_v16  ;;  %v546_v49 = vld [vmem:[%s6424_s29 + $0x750] sm:$0xff] }
 0x13c   : > { %4170 = vmatmul.mubr.bf16.vlgmr.msra.gmra.mxu1 %v6655_v9  ;;  %4179 = vmatpush1.bf16.msra.mxu0 %v5575_v24  ;;  %v5520_v24 = vcombine.high %v314_v15, %v318_v16  ;;  %v550_v50 = vld [vmem:[%s6424_s29 + $0x770] sm:$0xff] }
 0x13d   : > { %4220 = vmatpush1.bf16.msra.mxu1 %v5703_v25  ;;  %4180 = vmatprep.subr.bf16.mxu0 %v5568_v27  ;;  %v5648_v25 = vcombine.high %v442_v19, %v446_v20  ;;  %v434_v27 = vld [vmem:[%s6424_s29 + $0x3d0] sm:$0xff] }
 0x13e   : > { %4221 = vmatprep.subr.bf16.mxu1 %v5696_v28  ;;  %4210 = vmatprep.mubr.bf16.mxu0 %v6475_v12  ;;  %v438_v28 = vld [vmem:[%s6424_s29 + $0x3f0] sm:$0xff] }
 0x13f   : > { %4251 = vmatprep.mubr.bf16.mxu1 %v6482_v17  ;;  %v5639_v41 = vcombine.low %v434_v27, %v438_v28  ;;  %v542_v4 = vld [vmem:[%s6424_s29 + $0x730] sm:$0xff] }
 0x140   : > { %4181 = vmatpush1.bf16.msra.mxu0 %v5567_v33  ;;  %v5640_v33 = vcombine.high %v434_v27, %v438_v28  ;;  %v402_v15 = vld [vmem:[%s6424_s29 + $0x2d0] sm:$0xff] }
 0x141   : > { %4222 = vmatpush1.bf16.msra.mxu1 %v5695_v35  ;;  %4182 = vmatprep.subr.bf16.mxu0 %v5560_v36  ;;  %v5768_v35 = vcombine.high %v562_v29, %v566_v30  ;;  %v426_v36 = vld [vmem:[%s6424_s29 + $0x390] sm:$0xff] }
 0x142   : > { %4223 = vmatprep.subr.bf16.mxu1 %v5688_v37  ;;  %v430_v37 = vld [vmem:[%s6424_s29 + $0x3b0] sm:$0xff] }
 0x143   : > { %v406_v16 = vld [vmem:[%s6424_s29 + $0x2f0] sm:$0xff] }
 0x144   : > { %4183 = vmatpush1.bf16.msra.mxu0 %v5559_v42  ;;  %v5632_v42 = vcombine.high %v426_v36, %v430_v37  ;;  %v530_v19 = vld [vmem:[%s6424_s29 + $0x6d0] sm:$0xff] }
 0x145   : > { %4224 = vmatpush1.bf16.msra.mxu1 %v5687_v43  ;;  %4184 = vmatprep.subr.bf16.mxu0 %v5552_v46  ;;  %v5760_v43 = vcombine.high %v554_v39, %v558_v40  ;;  %v418_v46 = vld [vmem:[%s6424_s29 + $0x350] sm:$0xff] }
 0x146   : > { %4225 = vmatprep.subr.bf16.mxu1 %v5680_v6  ;;  %v422_v6 = vld [vmem:[%s6424_s29 + $0x370] sm:$0xff] }
 0x147   : > { %v5624_v57 = vcombine.high %v418_v46, %v422_v6  ;;  %v5623_v26 = vcombine.low %v418_v46, %v422_v6  ;;  %v534_v20 = vld [vmem:[%s6424_s29 + $0x6f0] sm:$0xff] }
 0x148   : > { %4185 = vmatpush1.bf16.msra.mxu0 %v5551_v52  ;;  %v394_v27 = vld [vmem:[%s6424_s29 + $0x290] sm:$0xff] }
 0x149   : > { %4226 = vmatpush1.bf16.msra.mxu1 %v5679_v53  ;;  %4186 = vmatprep.subr.bf16.mxu0 %v5544_v55  ;;  %v5631_v53 = vcombine.low %v426_v36, %v430_v37  ;;  %v398_v28 = vld [vmem:[%s6424_s29 + $0x2b0] sm:$0xff] }
 0x14a   : > { %4227 = vmatprep.subr.bf16.mxu1 %v5672_v56  ;;  %v5759_v56 = vcombine.low %v554_v39, %v558_v40  ;;  %v522_v29 = vld [vmem:[%s6424_s29 + $0x690] sm:$0xff] }
 0x14b   : > { %v526_v30 = vld [vmem:[%s6424_s29 + $0x6b0] sm:$0xff] }
 0x14c   : > { %4187 = vmatpush1.bf16.msra.mxu0 %v5543_v63  ;;  %v5752_v63 = vcombine.high %v546_v49, %v550_v50  ;;  %v386_v36 = vld [vmem:[%s6424_s29 + $0x250] sm:$0xff] }
 0x14d   : > { %4228 = vmatpush1.bf16.msra.mxu1 %v5671_v1  ;;  %4188 = vmatprep.subr.bf16.mxu0 %v5536_v2  ;;  %v410_v1 = vld [vmem:[%s6424_s29 + $0x310] sm:$0xff] }
 0x14e   : > { %4229 = vmatprep.subr.bf16.mxu1 %v5664_v3  ;;  %v414_v2 = vld [vmem:[%s6424_s29 + $0x330] sm:$0xff] }
 0x14f   : > { %v538_v3 = vld [vmem:[%s6424_s29 + $0x710] sm:$0xff] }
 0x150   : > { %4189 = vmatpush1.bf16.msra.mxu0 %v5535_v8  ;;  %v390_v37 = vld [vmem:[%s6424_s29 + $0x270] sm:$0xff] }
 0x151   : > { %4230 = vmatpush1.bf16.msra.mxu1 %v5663_v10  ;;  %4190 = vmatprep.subr.bf16.mxu0 %v5528_v11  ;;  %v5616_v10 = vcombine.high %v410_v1, %v414_v2  ;;  %v514_v39 = vld [vmem:[%s6424_s29 + $0x650] sm:$0xff] }
 0x152   : > { %4231 = vmatprep.subr.bf16.mxu1 %v5656_v13  ;;  %v5744_v13 = vcombine.high %v538_v3, %v542_v4  ;;  %v518_v40 = vld [vmem:[%s6424_s29 + $0x670] sm:$0xff] }
 0x153   : > { %v378_v46 = vld [vmem:[%s6424_s29 + $0x210] sm:$0xff] }
 0x154   : > { %4191 = vmatpush1.bf16.msra.mxu0 %v5527_v21  ;;  %v5615_v21 = vcombine.low %v410_v1, %v414_v2  ;;  %v382_v6 = vld [vmem:[%s6424_s29 + $0x230] sm:$0xff] }
 0x155   : > { %4232 = vmatpush1.bf16.msra.mxu1 %v5655_v22  ;;  %4192 = vmatprep.subr.bf16.mxu0 %v5520_v24  ;;  %v5743_v22 = vcombine.low %v538_v3, %v542_v4  ;;  %v5608_v24 = vcombine.high %v402_v15, %v406_v16  ;;  %v622_v3 = vld [vmem:[%s6424_s29 + $0x9b0] sm:$0xff] }
 0x156   : > { %4233 = vmatprep.subr.bf16.mxu1 %v5648_v25  ;;  %v5736_v25 = vcombine.high %v530_v19, %v534_v20  ;;  %v746_v4 = vld [vmem:[%s6424_s29 + $0xd90] sm:$0xff] }
 0x158   : > { %4193 = vmatpush1.bf16.msra.mxu0 %v5519_v31  ;;  %v5607_v31 = vcombine.low %v402_v15, %v406_v16  ;;  %v738_v16 = vld [vmem:[%s6424_s29 + $0xd50] sm:$0xff] }
 0x159   : > { %4234 = vmatpush1.bf16.msra.mxu1 %v5647_v32  ;;  %4194 = vmatprep.subr.bf16.mxu0 %v5640_v33  ;;  %v5735_v32 = vcombine.low %v530_v19, %v534_v20  ;;  %v5600_v33 = vcombine.high %v394_v27, %v398_v28  ;;  %v742_v19 = vld [vmem:[%s6424_s29 + $0xd70] sm:$0xff] }
 0x15a   : > { %4235 = vmatprep.subr.bf16.mxu1 %v5768_v35  ;;  %v5728_v35 = vcombine.high %v522_v29, %v526_v30 }
 0x15b   : > { %v3884_v48 = vpop.f32.mrf.mxu0 }
 0x15c   : > { %v3885_v51 = vadd.f32 %v3884_v48, %v6766_v7  ;;  %v3925_v52 = vpop.f32.mrf.mxu1  ;;  %4195 = vmatpush2.bf16.msra.mxu0 %v5639_v41  ;;  %v5599_v41 = vcombine.low %v394_v27, %v398_v28  ;;  %v506_v48 = vld [vmem:[%s6424_s29 + $0x610] sm:$0xff]  ;;  %v5944_v28 = vcombine.high %v738_v16, %v742_v19 }
 0x15d   : > { %4236 = vmatpush2.bf16.msra.mxu1 %v5767_v0  ;;  %v3886_v55 = vpop.f32.mrf.mxu0  ;;  %4196 = vmatprep.subr.bf16.mxu0 %v5632_v42  ;;  %v5727_v0 = vcombine.low %v522_v29, %v526_v30  ;;  %v5592_v42 = vcombine.high %v386_v36, %v390_v37  ;;  %v602_v29 = vld [vmem:[%s6424_s29 + $0x910] sm:$0xff] }
 0x15e   : > { %v6840_v58 = vadd.f32 %v3925_v52, %v3885_v51  ;;  %v3887_v60 = vadd.f32 %v3886_v55, %v6771_v18  ;;  %v3927_v61 = vpop.f32.mrf.mxu1  ;;  %4237 = vmatprep.subr.bf16.mxu1 %v5760_v43  ;;  %v5751_v18 = vcombine.low %v546_v49, %v550_v50  ;;  %v5720_v43 = vcombine.high %v514_v39, %v518_v40  ;;  %v510_v49 = vld [vmem:[%s6424_s29 + $0x630] sm:$0xff] }
 0x15f   : > { %v3888_v7 = vpop.f32.mrf.mxu0  ;;  %v5591_v50 = vcombine.low %v386_v36, %v390_v37  ;;  %v5719_v51 = vcombine.low %v514_v39, %v518_v40  ;;  %v5584_v52 = vcombine.high %v378_v46, %v382_v6  ;;  %v626_v55 = vld [vmem:[%s6424_s29 + $0x9d0] sm:$0xff]  ;;  %v5943_v36 = vcombine.low %v738_v16, %v742_v19 }
 0x160   : > { %v6847_v23 = vadd.f32 %v3927_v61, %v3887_v60  ;;  %v3929_v5 = vpop.f32.mrf.mxu1  ;;  %4197 = vmatpush2.bf16.msra.mxu0 %v5631_v53  ;;  %v5712_v53 = vcombine.high %v506_v48, %v510_v49  ;;  %v758_v60 = vld [vmem:[%s6424_s29 + $0xdf0] sm:$0xff]  ;;  %v5583_v61 = vcombine.low %v378_v46, %v382_v6 }
 0x161   : > { %4238 = vmatpush2.bf16.msra.mxu1 %v5759_v56  ;;  %v3889_v8 = vpop.f32.mrf.mxu0  ;;  %4198 = vmatprep.subr.bf16.mxu0 %v5624_v57  ;;  %v630_v56 = vld [vmem:[%s6424_s29 + $0x9f0] sm:$0xff] }
 0x162   : > { %v3930_v11 = vpop.f32.mrf.mxu1  ;;  %4239 = vmatprep.subr.bf16.mxu1 %v5752_v63  ;;  %v754_v57 = vld [vmem:[%s6424_s29 + $0xdd0] sm:$0xff]  ;;  %v5711_v63 = vcombine.low %v506_v48, %v510_v49  ;;  %v5832_v1 = vcombine.high %v626_v55, %v630_v56 }
 0x163   : > { %v5960_v2 = vcombine.high %v754_v57, %v758_v60  ;;  %v618_v7 = vld [vmem:[%s6424_s29 + $0x990] sm:$0xff]  ;;  %v5959_v8 = vcombine.low %v754_v57, %v758_v60 }
 0x164   : > { %4199 = vmatpush2.bf16.msra.mxu0 %v5623_v26  ;;  %v750_v5 = vld [vmem:[%s6424_s29 + $0xdb0] sm:$0xff]  ;;  %v5831_v26 = vcombine.low %v626_v55, %v630_v56 }
 0x165   : > { %4240 = vmatpush2.bf16.msra.mxu1 %v5751_v18  ;;  %4200 = vmatprep.subr.bf16.mxu0 %v5616_v10  ;;  %v5824_v18 = vcombine.high %v618_v7, %v622_v3  ;;  %v5952_v10 = vcombine.high %v746_v4, %v750_v5  ;;  %v610_v11 = vld [vmem:[%s6424_s29 + $0x950] sm:$0xff] }
 0x166   : > { %4241 = vmatprep.subr.bf16.mxu1 %v5744_v13  ;;  %v614_v13 = vld [vmem:[%s6424_s29 + $0x970] sm:$0xff] }
 0x167   : > { %v606_v30 = vld [vmem:[%s6424_s29 + $0x930] sm:$0xff] }
 0x168   : > { %4201 = vmatpush2.bf16.msra.mxu0 %v5615_v21  ;;  %v5823_v21 = vcombine.low %v618_v7, %v622_v3  ;;  %v5808_v37 = vcombine.high %v602_v29, %v606_v30  ;;  %v594_v40 = vld [vmem:[%s6424_s29 + $0x8d0] sm:$0xff] }
 0x169   : > { %4242 = vmatpush2.bf16.msra.mxu1 %v5743_v22  ;;  %4202 = vmatprep.subr.bf16.mxu0 %v5608_v24  ;;  %v5951_v24 = vcombine.low %v746_v4, %v750_v5  ;;  %v586_v49 = vld [vmem:[%s6424_s29 + $0x890] sm:$0xff] }
 0x16a   : > { %4243 = vmatprep.subr.bf16.mxu1 %v5736_v25  ;;  %v5816_v25 = vcombine.high %v610_v11, %v614_v13  ;;  %v578_v60 = vld [vmem:[%s6424_s29 + $0x850] sm:$0xff] }
 0x16b   : > { %v570_v5 = vld [vmem:[%s6424_s29 + $0x810] sm:$0xff] }
 0x16c   : > { %4203 = vmatpush2.bf16.msra.mxu0 %v5607_v31  ;;  %v730_v31 = vld [vmem:[%s6424_s29 + $0xd10] sm:$0xff] }
 0x16d   : > { %4244 = vmatpush2.bf16.msra.mxu1 %v5735_v32  ;;  %4204 = vmatprep.subr.bf16.mxu0 %v5600_v33  ;;  %v734_v32 = vld [vmem:[%s6424_s29 + $0xd30] sm:$0xff] }
 0x16e   : > { %4245 = vmatprep.subr.bf16.mxu1 %v5728_v35  ;;  %v5936_v39 = vcombine.high %v730_v31, %v734_v32  ;;  %v5935_v46 = vcombine.low %v730_v31, %v734_v32  ;;  %v690_v16 = vld [vmem:[%s6424_s29 + $0xbd0] sm:$0xff] }
 0x16f   : > { %v694_v19 = vld [vmem:[%s6424_s29 + $0xbf0] sm:$0xff] }
 0x170   : > { %4205 = vmatpush2.bf16.msra.mxu0 %v5599_v41  ;;  %v598_v41 = vld [vmem:[%s6424_s29 + $0x8f0] sm:$0xff] }
 0x171   : > { %4246 = vmatpush2.bf16.msra.mxu1 %v5727_v0  ;;  %4206 = vmatprep.subr.bf16.mxu0 %v5592_v42  ;;  %v722_v0 = vld [vmem:[%s6424_s29 + $0xcd0] sm:$0xff]  ;;  %v5800_v6 = vcombine.high %v594_v40, %v598_v41 }
 0x172   : > { %4247 = vmatprep.subr.bf16.mxu1 %v5720_v43  ;;  %v726_v42 = vld [vmem:[%s6424_s29 + $0xcf0] sm:$0xff]  ;;  %v5807_v43 = vcombine.low %v602_v29, %v606_v30 }
 0x173   : > { %v5928_v48 = vcombine.high %v722_v0, %v726_v42  ;;  %v5927_v55 = vcombine.low %v722_v0, %v726_v42  ;;  %v682_v30 = vld [vmem:[%s6424_s29 + $0xb90] sm:$0xff] }
 0x174   : > { %4207 = vmatpush2.bf16.msra.mxu0 %v5591_v50  ;;  %v590_v50 = vld [vmem:[%s6424_s29 + $0x8b0] sm:$0xff] }
 0x175   : > { %4248 = vmatpush2.bf16.msra.mxu1 %v5719_v51  ;;  %4208 = vmatprep.subr.bf16.mxu0 %v5584_v52  ;;  %v714_v51 = vld [vmem:[%s6424_s29 + $0xc90] sm:$0xff]  ;;  %v5792_v56 = vcombine.high %v586_v49, %v590_v50 }
 0x176   : > { %4249 = vmatprep.subr.bf16.mxu1 %v5712_v53  ;;  %v718_v52 = vld [vmem:[%s6424_s29 + $0xcb0] sm:$0xff]  ;;  %v5799_v53 = vcombine.low %v594_v40, %v598_v41 }
 0x177   : > { %v5920_v57 = vcombine.high %v714_v51, %v718_v52  ;;  %v5919_v7 = vcombine.low %v714_v51, %v718_v52  ;;  %v810_v31 = vld [vmem:[%s6424_s29 + $0xf90] sm:$0xff] }
 0x178   : > { %4209 = vmatpush2.bf16.msra.mxu0 %v5583_v61  ;;  %v582_v61 = vld [vmem:[%s6424_s29 + $0x870] sm:$0xff] }
 0x179   : > { %4250 = vmatpush2.bf16.msra.mxu1 %v5711_v63  ;;  %4260 = vmatprep.subr.bf16.mxu0 %v5832_v1  ;;  %v706_v63 = vld [vmem:[%s6424_s29 + $0xc50] sm:$0xff]  ;;  %v5784_v3 = vcombine.high %v578_v60, %v582_v61 }
 0x17a   : > { %4301 = vmatprep.subr.bf16.mxu1 %v5960_v2  ;;  %v710_v1 = vld [vmem:[%s6424_s29 + $0xc70] sm:$0xff]  ;;  %v5791_v2 = vcombine.low %v586_v49, %v590_v50 }
 0x17b   : > { %v3966_v15 = vpop.f32.mrf.mxu0  ;;  %4211 = vmatmul.mubr.bf16.vlgmr.msra.gmra.mxu0 %v6530_v34  ;;  %v5912_v4 = vcombine.high %v706_v63, %v710_v1  ;;  %v814_v32 = vld [vmem:[%s6424_s29 + $0xfb0] sm:$0xff] }
 0x17c   : > { %v6879_v20 = vadd.f32 %v3966_v15, %v6840_v58  ;;  %4252 = vmatmul.mubr.bf16.vlgmr.msra.gmra.mxu1 %v6538_v38  ;;  %4261 = vmatpush1.bf16.msra.mxu0 %v5831_v26  ;;  %v574_v26 = vld [vmem:[%s6424_s29 + $0x830] sm:$0xff] }
 0x17d   : > { %4302 = vmatpush1.bf16.msra.mxu1 %v5959_v8  ;;  %v3968_v22 = vpop.f32.mrf.mxu0  ;;  %4262 = vmatprep.subr.bf16.mxu0 %v5824_v18  ;;  %v698_v8 = vld [vmem:[%s6424_s29 + $0xc10] sm:$0xff] }
 0x17e   : > { %v6883_v27 = vadd.f32 %v3968_v22, %v6847_v23  ;;  %4303 = vmatprep.subr.bf16.mxu1 %v5952_v10  ;;  %4292 = vmatprep.mubr.bf16.mxu0 %v6542_v44  ;;  %v5815_v23 = vcombine.low %v610_v11, %v614_v13  ;;  %v702_v18 = vld [vmem:[%s6424_s29 + $0xc30] sm:$0xff]  ;;  %v5783_v10 = vcombine.low %v578_v60, %v582_v61 }
 0x17f   : > { %v3970_v58 = vpop.f32.mrf.mxu0  ;;  %4333 = vmatprep.mubr.bf16.mxu1 %v6547_v47  ;;  %v5911_v11 = vcombine.low %v706_v63, %v710_v1  ;;  %v5776_v13 = vcombine.high %v570_v5, %v574_v26  ;;  %v5904_v15 = vcombine.high %v698_v8, %v702_v18  ;;  %v822_v22 = vld [vmem:[%s6424_s29 + $0xff0] sm:$0xff] }
 0x180   : > { %v4596_v33 = vcombine.low %v6879_v20, %v6883_v27  ;;  %4263 = vmatpush1.bf16.msra.mxu0 %v5823_v21  ;;  %v818_v21 = vld [vmem:[%s6424_s29 + $0xfd0] sm:$0xff]  ;;  %v587_v20 = vld [vmem:[%s6424_s29 + $0x898] sm:$0xff] }
 0x181   : > { %4304 = vmatpush1.bf16.msra.mxu1 %v5951_v24  ;;  %v3971_v35 = vpop.f32.mrf.mxu0  ;;  %4264 = vmatprep.subr.bf16.mxu0 %v5816_v25  ;;  %v5775_v24 = vcombine.low %v570_v5, %v574_v26  ;;  %v5903_v25 = vcombine.low %v698_v8, %v702_v18  ;;  %v6024_v29 = vcombine.high %v818_v21, %v822_v22  ;;  %v686_v58 = vld [vmem:[%s6424_s29 + $0xbb0] sm:$0xff]  ;;  %v591_v27 = vld [vmem:[%s6424_s29 + $0x8b8] sm:$0xff] }
 0x182   : > { %4305 = vmatprep.subr.bf16.mxu1 %v5944_v28  ;;  %v5896_v28 = vcombine.high %v690_v16, %v694_v19  ;;  %v6023_v35 = vcombine.low %v818_v21, %v822_v22  ;;  %v678_v40 = vld [vmem:[%s6424_s29 + $0xb70] sm:$0xff] }
 0x183   : > { %v802_v41 = vld [vmem:[%s6424_s29 + $0xf50] sm:$0xff] }
 0x184   : > { %4265 = vmatpush1.bf16.msra.mxu0 %v5815_v23  ;;  %v5895_v23 = vcombine.low %v690_v16, %v694_v19  ;;  %v806_v0 = vld [vmem:[%s6424_s29 + $0xf70] sm:$0xff] }
 0x185   : > { %4306 = vmatpush1.bf16.msra.mxu1 %v5943_v36  ;;  %4266 = vmatprep.subr.bf16.mxu0 %v5808_v37  ;;  %v5888_v36 = vcombine.high %v682_v30, %v686_v58  ;;  %v6016_v37 = vcombine.high %v810_v31, %v814_v32  ;;  %v6008_v49 = vcombine.high %v802_v41, %v806_v0  ;;  %v666_v50 = vld [vmem:[%s6424_s29 + $0xb10] sm:$0xff] }
 0x186   : > { %4307 = vmatprep.subr.bf16.mxu1 %v5936_v39  ;;  %v674_v39 = vld [vmem:[%s6424_s29 + $0xb50] sm:$0xff] }
 0x187   : > { %v670_v51 = vld [vmem:[%s6424_s29 + $0xb30] sm:$0xff] }
 0x188   : > { %4267 = vmatpush1.bf16.msra.mxu0 %v5807_v43  ;;  %v5887_v43 = vcombine.low %v682_v30, %v686_v58  ;;  %v794_v52 = vld [vmem:[%s6424_s29 + $0xf10] sm:$0xff]  ;;  %v5872_v60 = vcombine.high %v666_v50, %v670_v51 }
 0x189   : > { %4308 = vmatpush1.bf16.msra.mxu1 %v5935_v46  ;;  %4268 = vmatprep.subr.bf16.mxu0 %v5800_v6  ;;  %v6015_v46 = vcombine.low %v810_v31, %v814_v32  ;;  %v5880_v6 = vcombine.high %v674_v39, %v678_v40  ;;  %v658_v1 = vld [vmem:[%s6424_s29 + $0xad0] sm:$0xff] }
 0x18a   : > { %4309 = vmatprep.subr.bf16.mxu1 %v5928_v48  ;;  %v650_v18 = vld [vmem:[%s6424_s29 + $0xa90] sm:$0xff] }
 0x18b   : > { %v642_v22 = vld [vmem:[%s6424_s29 + $0xa50] sm:$0xff] }
 0x18c   : > { %4269 = vmatpush1.bf16.msra.mxu0 %v5799_v53  ;;  %v798_v53 = vld [vmem:[%s6424_s29 + $0xf30] sm:$0xff] }
 0x18d   : > { %4310 = vmatpush1.bf16.msra.mxu1 %v5927_v55  ;;  %4270 = vmatprep.subr.bf16.mxu0 %v5792_v56  ;;  %v5879_v56 = vcombine.low %v674_v39, %v678_v40  ;;  %v6000_v63 = vcombine.high %v794_v52, %v798_v53  ;;  %v5999_v5 = vcombine.low %v794_v52, %v798_v53  ;;  %v634_v32 = vld [vmem:[%s6424_s29 + $0xa10] sm:$0xff] }
 0x18e   : > { %4311 = vmatprep.subr.bf16.mxu1 %v5920_v57  ;;  %v6007_v57 = vcombine.low %v802_v41, %v806_v0  ;;  %v882_v0 = vld [vmem:[%s6424_s29 + $0x11d0] sm:$0xff] }
 0x18f   : > { %v874_v53 = vld [vmem:[%s6424_s29 + $0x1190] sm:$0xff] }
 0x190   : > { %4271 = vmatpush1.bf16.msra.mxu0 %v5791_v2  ;;  %v662_v2 = vld [vmem:[%s6424_s29 + $0xaf0] sm:$0xff] }
 0x191   : > { %4312 = vmatpush1.bf16.msra.mxu1 %v5919_v7  ;;  %4272 = vmatprep.subr.bf16.mxu0 %v5784_v3  ;;  %v786_v7 = vld [vmem:[%s6424_s29 + $0xed0] sm:$0xff]  ;;  %v5864_v26 = vcombine.high %v658_v1, %v662_v2 }
 0x192   : > { %4313 = vmatprep.subr.bf16.mxu1 %v5912_v4  ;;  %v790_v3 = vld [vmem:[%s6424_s29 + $0xef0] sm:$0xff]  ;;  %v5871_v4 = vcombine.low %v666_v50, %v670_v51 }
 0x193   : > { %v5992_v8 = vcombine.high %v786_v7, %v790_v3  ;;  %v5991_v16 = vcombine.low %v786_v7, %v790_v3  ;;  %v870_v7 = vld [vmem:[%s6424_s29 + $0x1170] sm:$0xff] }
 0x194   : > { %4273 = vmatpush1.bf16.msra.mxu0 %v5783_v10  ;;  %v654_v10 = vld [vmem:[%s6424_s29 + $0xab0] sm:$0xff] }
 0x195   : > { %4314 = vmatpush1.bf16.msra.mxu1 %v5911_v11  ;;  %4274 = vmatprep.subr.bf16.mxu0 %v5776_v13  ;;  %v778_v11 = vld [vmem:[%s6424_s29 + $0xe90] sm:$0xff]  ;;  %v5856_v19 = vcombine.high %v650_v18, %v654_v10 }
 0x196   : > { %4315 = vmatprep.subr.bf16.mxu1 %v5904_v15  ;;  %v782_v13 = vld [vmem:[%s6424_s29 + $0xeb0] sm:$0xff]  ;;  %v5863_v15 = vcombine.low %v658_v1, %v662_v2 }
 0x197   : > { %v5984_v21 = vcombine.high %v778_v11, %v782_v13  ;;  %v5983_v30 = vcombine.low %v778_v11, %v782_v13  ;;  %v866_v2 = vld [vmem:[%s6424_s29 + $0x1150] sm:$0xff] }
 0x198   : > { %4275 = vmatpush1.bf16.msra.mxu0 %v5775_v24  ;;  %v646_v24 = vld [vmem:[%s6424_s29 + $0xa70] sm:$0xff] }
 0x199   : > { %4316 = vmatpush1.bf16.msra.mxu1 %v5903_v25  ;;  %4276 = vmatprep.subr.bf16.mxu0 %v5896_v28  ;;  %v770_v25 = vld [vmem:[%s6424_s29 + $0xe50] sm:$0xff]  ;;  %v5848_v58 = vcombine.high %v642_v22, %v646_v24 }
 0x19a   : > { %4317 = vmatprep.subr.bf16.mxu1 %v6024_v29  ;;  %v774_v28 = vld [vmem:[%s6424_s29 + $0xe70] sm:$0xff]  ;;  %v5855_v29 = vcombine.low %v650_v18, %v654_v10  ;;  %v6072_v10 = vcombine.high %v866_v2, %v870_v7 }
 0x19b   : > { %v5976_v31 = vcombine.high %v770_v25, %v774_v28  ;;  %v5975_v39 = vcombine.low %v770_v25, %v774_v28  ;;  %v858_v13 = vld [vmem:[%s6424_s29 + $0x1110] sm:$0xff] }
 0x19c   : > { %v6921_v42 = vpop.f32.mrf.mxu1  ;;  %4277 = vmatpush2.bf16.msra.mxu0 %v5895_v23  ;;  %v638_v23 = vld [vmem:[%s6424_s29 + $0xa30] sm:$0xff] }
 0x19d   : > { %4318 = vmatpush2.bf16.msra.mxu1 %v6023_v35  ;;  %4278 = vmatprep.subr.bf16.mxu0 %v5888_v36  ;;  %v762_v35 = vld [vmem:[%s6424_s29 + $0xe10] sm:$0xff]  ;;  %v5840_v40 = vcombine.high %v634_v32, %v638_v23 }
 0x19e   : > { %v6923_v48 = vpop.f32.mrf.mxu1  ;;  %4319 = vmatprep.subr.bf16.mxu1 %v6016_v37  ;;  %v766_v36 = vld [vmem:[%s6424_s29 + $0xe30] sm:$0xff]  ;;  %v5847_v37 = vcombine.low %v642_v22, %v646_v24  ;;  %v6071_v22 = vcombine.low %v866_v2, %v870_v7 }
 0x19f   : > { %v5968_v41 = vcombine.high %v762_v35, %v766_v36  ;;  %v5967_v50 = vcombine.low %v762_v35, %v766_v36 }
 0x1a0   : > { %v4011_v55 = vpop.f32.mrf.mxu1  ;;  %4279 = vmatpush2.bf16.msra.mxu0 %v5887_v43  ;;  %v886_v43 = vld [vmem:[%s6424_s29 + $0x11f0] sm:$0xff] }
 0x1a1   : > { %4320 = vmatpush2.bf16.msra.mxu1 %v6015_v46  ;;  %4280 = vmatprep.subr.bf16.mxu0 %v5880_v6  ;;  %v371_v46 = vld [vmem:[%s6424_s29 + $0x1d8] sm:$0xff]  ;;  %v6088_v51 = vcombine.high %v882_v0, %v886_v43  ;;  %v878_v55 = vld [vmem:[%s6424_s29 + $0x11b0] sm:$0xff] }
 0x1a2   : > { %v4012_v61 = vpop.f32.mrf.mxu1  ;;  %4321 = vmatprep.subr.bf16.mxu1 %v6008_v49  ;;  %v375_v6 = vld [vmem:[%s6424_s29 + $0x1f8] sm:$0xff]  ;;  %v5839_v49 = vcombine.low %v634_v32, %v638_v23 }
 0x1a3   : > { %v5578_v52 = vcombine.high %v371_v46, %v375_v6  ;;  %v5577_v61 = vcombine.low %v371_v46, %v375_v6  ;;  %v343_v32 = vld [vmem:[%s6424_s29 + $0xf8] sm:$0xff] }
 0x1a4   : > { %4281 = vmatpush2.bf16.msra.mxu0 %v5879_v56  ;;  %v363_v56 = vld [vmem:[%s6424_s29 + $0x198] sm:$0xff] }
 0x1a5   : > { %4322 = vmatpush2.bf16.msra.mxu1 %v6007_v57  ;;  %4282 = vmatprep.subr.bf16.mxu0 %v5872_v60  ;;  %v367_v57 = vld [vmem:[%s6424_s29 + $0x1b8] sm:$0xff]  ;;  %v6087_v60 = vcombine.low %v882_v0, %v886_v43 }
 0x1a6   : > { %4323 = vmatprep.subr.bf16.mxu1 %v6000_v63  ;;  %v6080_v63 = vcombine.high %v874_v53, %v878_v55  ;;  %v5570_v1 = vcombine.high %v363_v56, %v367_v57  ;;  %v5569_v18 = vcombine.low %v363_v56, %v367_v57 }
 0x1a8   : > { %4283 = vmatpush2.bf16.msra.mxu0 %v5871_v4  ;;  %v355_v4 = vld [vmem:[%s6424_s29 + $0x158] sm:$0xff] }
 0x1a9   : > { %4324 = vmatpush2.bf16.msra.mxu1 %v5999_v5  ;;  %4284 = vmatprep.subr.bf16.mxu0 %v5864_v26  ;;  %v359_v5 = vld [vmem:[%s6424_s29 + $0x178] sm:$0xff]  ;;  %v6079_v26 = vcombine.low %v874_v53, %v878_v55 }
 0x1aa   : > { %4325 = vmatprep.subr.bf16.mxu1 %v5992_v8  ;;  %v5562_v11 = vcombine.high %v355_v4, %v359_v5  ;;  %v5561_v25 = vcombine.low %v355_v4, %v359_v5 }
 0x1ac   : > { %4285 = vmatpush2.bf16.msra.mxu0 %v5863_v15  ;;  %v862_v15 = vld [vmem:[%s6424_s29 + $0x1130] sm:$0xff] }
 0x1ad   : > { %4326 = vmatpush2.bf16.msra.mxu1 %v5991_v16  ;;  %4286 = vmatprep.subr.bf16.mxu0 %v5856_v19  ;;  %v347_v19 = vld [vmem:[%s6424_s29 + $0x118] sm:$0xff]  ;;  %v6064_v28 = vcombine.high %v858_v13, %v862_v15  ;;  %v6063_v23 = vcombine.low %v858_v13, %v862_v15 }
 0x1ae   : > { %4327 = vmatprep.subr.bf16.mxu1 %v5984_v21  ;;  %v351_v21 = vld [vmem:[%s6424_s29 + $0x138] sm:$0xff] }
 0x1b0   : > { %4287 = vmatpush2.bf16.msra.mxu0 %v5855_v29  ;;  %v5554_v29 = vcombine.high %v347_v19, %v351_v21 }
 0x1b1   : > { %4328 = vmatpush2.bf16.msra.mxu1 %v5983_v30  ;;  %4288 = vmatprep.subr.bf16.mxu0 %v5848_v58  ;;  %v850_v30 = vld [vmem:[%s6424_s29 + $0x10d0] sm:$0xff] }
 0x1b2   : > { %4329 = vmatprep.subr.bf16.mxu1 %v5976_v31  ;;  %v854_v58 = vld [vmem:[%s6424_s29 + $0x10f0] sm:$0xff]  ;;  %v339_v31 = vld [vmem:[%s6424_s29 + $0xd8] sm:$0xff] }
 0x1b3   : > { %v6056_v35 = vcombine.high %v850_v30, %v854_v58  ;;  %v5546_v36 = vcombine.high %v339_v31, %v343_v32  ;;  %v6055_v0 = vcombine.low %v850_v30, %v854_v58  ;;  %v5545_v43 = vcombine.low %v339_v31, %v343_v32  ;;  %v483_v31 = vld [vmem:[%s6424_s29 + $0x558] sm:$0xff] }
 0x1b4   : > { %4289 = vmatpush2.bf16.msra.mxu0 %v5847_v37  ;;  %v842_v37 = vld [vmem:[%s6424_s29 + $0x1090] sm:$0xff]  ;;  %v487_v32 = vld [vmem:[%s6424_s29 + $0x578] sm:$0xff] }
 0x1b5   : > { %4330 = vmatpush2.bf16.msra.mxu1 %v5975_v39  ;;  %4290 = vmatprep.subr.bf16.mxu0 %v5840_v40  ;;  %v846_v39 = vld [vmem:[%s6424_s29 + $0x10b0] sm:$0xff]  ;;  %v331_v40 = vld [vmem:[%s6424_s29 + $0x98] sm:$0xff] }
 0x1b6   : > { %4331 = vmatprep.subr.bf16.mxu1 %v5968_v41  ;;  %v335_v41 = vld [vmem:[%s6424_s29 + $0xb8] sm:$0xff]  ;;  %v6048_v46 = vcombine.high %v842_v37, %v846_v39  ;;  %v6047_v53 = vcombine.low %v842_v37, %v846_v39  ;;  %v5690_v39 = vcombine.high %v483_v31, %v487_v32 }
 0x1b7   : > { %v5538_v6 = vcombine.high %v331_v40, %v335_v41  ;;  %v5537_v55 = vcombine.low %v331_v40, %v335_v41 }
 0x1b8   : > { %4291 = vmatpush2.bf16.msra.mxu0 %v5839_v49  ;;  %v834_v49 = vld [vmem:[%s6424_s29 + $0x1050] sm:$0xff] }
 0x1b9   : > { %4332 = vmatpush2.bf16.msra.mxu1 %v5967_v50  ;;  %4342 = vmatprep.subr.bf16.mxu0 %v6088_v51  ;;  %v838_v50 = vld [vmem:[%s6424_s29 + $0x1070] sm:$0xff]  ;;  %v323_v51 = vld [vmem:[%s6424_s29 + $0x58] sm:$0xff] }
 0x1ba   : > { %4383 = vmatprep.subr.bf16.mxu1 %v5578_v52  ;;  %v327_v52 = vld [vmem:[%s6424_s29 + $0x78] sm:$0xff]  ;;  %v6040_v56 = vcombine.high %v834_v49, %v838_v50  ;;  %v6039_v2 = vcombine.low %v834_v49, %v838_v50  ;;  %v5689_v50 = vcombine.low %v483_v31, %v487_v32 }
 0x1bb   : > { %v6955_v3 = vpop.f32.mrf.mxu0  ;;  %4293 = vmatmul.mubr.bf16.vlgmr.msra.gmra.mxu0 %v6612_v59  ;;  %v5530_v57 = vcombine.high %v323_v51, %v327_v52  ;;  %v5529_v7 = vcombine.low %v323_v51, %v327_v52  ;;  %v383_v31 = vld [vmem:[%s6424_s29 + $0x238] sm:$0xff] }
 0x1bc   : > { %4334 = vmatmul.mubr.bf16.vlgmr.msra.gmra.mxu1 %v6618_v62  ;;  %4343 = vmatpush1.bf16.msra.mxu0 %v6087_v60  ;;  %v826_v60 = vld [vmem:[%s6424_s29 + $0x1010] sm:$0xff] }
 0x1bd   : > { %4384 = vmatpush1.bf16.msra.mxu1 %v5577_v61  ;;  %v6961_v8 = vpop.f32.mrf.mxu0  ;;  %4344 = vmatprep.subr.bf16.mxu0 %v6080_v63  ;;  %v830_v61 = vld [vmem:[%s6424_s29 + $0x1030] sm:$0xff]  ;;  %v315_v63 = vld [vmem:[%s6424_s29 + $0x18] sm:$0xff] }
 0x1be   : > { %4385 = vmatprep.subr.bf16.mxu1 %v5570_v1  ;;  %4374 = vmatprep.mubr.bf16.mxu0 %v6372_v14  ;;  %v319_v1 = vld [vmem:[%s6424_s29 + $0x38] sm:$0xff]  ;;  %v6032_v4 = vcombine.high %v826_v60, %v830_v61  ;;  %v6031_v13 = vcombine.low %v826_v60, %v830_v61 }
 0x1bf   : > { %v4052_v16 = vpop.f32.mrf.mxu0  ;;  %4415 = vmatprep.mubr.bf16.mxu1 %v6475_v12  ;;  %v5553_v12 = vcombine.low %v347_v19, %v351_v21  ;;  %v5522_v5 = vcombine.high %v315_v63, %v319_v1  ;;  %v5521_v15 = vcombine.low %v315_v63, %v319_v1  ;;  %v491_v21 = vld [vmem:[%s6424_s29 + $0x598] sm:$0xff] }
 0x1c0   : > { %4345 = vmatpush1.bf16.msra.mxu0 %v6079_v26  ;;  %v499_v26 = vld [vmem:[%s6424_s29 + $0x5d8] sm:$0xff] }
 0x1c1   : > { %4386 = vmatpush1.bf16.msra.mxu1 %v5569_v18  ;;  %v4053_v24 = vpop.f32.mrf.mxu0  ;;  %4346 = vmatprep.subr.bf16.mxu0 %v6072_v10  ;;  %v503_v18 = vld [vmem:[%s6424_s29 + $0x5f8] sm:$0xff] }
 0x1c2   : > { %4387 = vmatprep.subr.bf16.mxu1 %v5562_v11  ;;  %v435_v10 = vld [vmem:[%s6424_s29 + $0x3d8] sm:$0xff]  ;;  %v5706_v16 = vcombine.high %v499_v26, %v503_v18 }
 0x1c3   : > { %v439_v11 = vld [vmem:[%s6424_s29 + $0x3f8] sm:$0xff] }
 0x1c4   : > { %4347 = vmatpush1.bf16.msra.mxu0 %v6071_v22  ;;  %v5642_v19 = vcombine.high %v435_v10, %v439_v11  ;;  %v495_v22 = vld [vmem:[%s6424_s29 + $0x5b8] sm:$0xff] }
 0x1c5   : > { %4388 = vmatpush1.bf16.msra.mxu1 %v5561_v25  ;;  %4348 = vmatprep.subr.bf16.mxu0 %v6064_v28  ;;  %v427_v24 = vld [vmem:[%s6424_s29 + $0x398] sm:$0xff]  ;;  %v5705_v28 = vcombine.low %v499_v26, %v503_v18  ;;  %v5698_v30 = vcombine.high %v491_v21, %v495_v22 }
 0x1c6   : > { %4389 = vmatprep.subr.bf16.mxu1 %v5554_v29  ;;  %v431_v25 = vld [vmem:[%s6424_s29 + $0x3b8] sm:$0xff]  ;;  %v5641_v29 = vcombine.low %v435_v10, %v439_v11 }
 0x1c7   : > { %v5634_v58 = vcombine.high %v427_v24, %v431_v25  ;;  %v5633_v37 = vcombine.low %v427_v24, %v431_v25  ;;  %v407_v60 = vld [vmem:[%s6424_s29 + $0x2f8] sm:$0xff] }
 0x1c8   : > { %4349 = vmatpush1.bf16.msra.mxu0 %v6063_v23  ;;  %v419_v23 = vld [vmem:[%s6424_s29 + $0x358] sm:$0xff] }
 0x1c9   : > { %4390 = vmatpush1.bf16.msra.mxu1 %v5553_v12  ;;  %4350 = vmatprep.subr.bf16.mxu0 %v6056_v35  ;;  %v423_v12 = vld [vmem:[%s6424_s29 + $0x378] sm:$0xff] }
 0x1ca   : > { %4391 = vmatprep.subr.bf16.mxu1 %v5546_v36  ;;  %v5697_v36 = vcombine.low %v491_v21, %v495_v22  ;;  %v5626_v41 = vcombine.high %v419_v23, %v423_v12  ;;  %v399_v26 = vld [vmem:[%s6424_s29 + $0x2b8] sm:$0xff] }
 0x1cb   : > { %v391_v21 = vld [vmem:[%s6424_s29 + $0x278] sm:$0xff] }
 0x1cc   : > { %4351 = vmatpush1.bf16.msra.mxu0 %v6055_v0  ;;  %v475_v0 = vld [vmem:[%s6424_s29 + $0x518] sm:$0xff] }
 0x1cd   : > { %4392 = vmatpush1.bf16.msra.mxu1 %v5545_v43  ;;  %4352 = vmatprep.subr.bf16.mxu0 %v6048_v46  ;;  %v479_v43 = vld [vmem:[%s6424_s29 + $0x538] sm:$0xff] }
 0x1ce   : > { %4393 = vmatprep.subr.bf16.mxu1 %v5538_v6  ;;  %v411_v46 = vld [vmem:[%s6424_s29 + $0x318] sm:$0xff]  ;;  %v5682_v51 = vcombine.high %v475_v0, %v479_v43  ;;  %v5681_v61 = vcombine.low %v475_v0, %v479_v43 }
 0x1cf   : > { %v415_v6 = vld [vmem:[%s6424_s29 + $0x338] sm:$0xff] }
 0x1d0   : > { %4353 = vmatpush1.bf16.msra.mxu0 %v6047_v53  ;;  %v5618_v53 = vcombine.high %v411_v46, %v415_v6  ;;  %v5617_v63 = vcombine.low %v411_v46, %v415_v6  ;;  %v631_v0 = vld [vmem:[%s6424_s29 + $0x9f8] sm:$0xff] }
 0x1d1   : > { %4394 = vmatpush1.bf16.msra.mxu1 %v5537_v55  ;;  %4354 = vmatprep.subr.bf16.mxu0 %v6040_v56  ;;  %v467_v55 = vld [vmem:[%s6424_s29 + $0x4d8] sm:$0xff] }
 0x1d2   : > { %4395 = vmatprep.subr.bf16.mxu1 %v5530_v57  ;;  %v471_v56 = vld [vmem:[%s6424_s29 + $0x4f8] sm:$0xff] }
 0x1d3   : > { %v403_v57 = vld [vmem:[%s6424_s29 + $0x2d8] sm:$0xff]  ;;  %v5674_v1 = vcombine.high %v467_v55, %v471_v56  ;;  %v5673_v18 = vcombine.low %v467_v55, %v471_v56 }
 0x1d4   : > { %4355 = vmatpush1.bf16.msra.mxu0 %v6039_v2  ;;  %v5610_v2 = vcombine.high %v403_v57, %v407_v60  ;;  %v5609_v10 = vcombine.low %v403_v57, %v407_v60  ;;  %v4051_v60 = vadd.f32 %v6961_v8, %v6923_v48 }
 0x1d5   : > { %4396 = vmatpush1.bf16.msra.mxu1 %v5529_v7  ;;  %4356 = vmatprep.subr.bf16.mxu0 %v6032_v4  ;;  %v459_v7 = vld [vmem:[%s6424_s29 + $0x498] sm:$0xff] }
 0x1d6   : > { %4397 = vmatprep.subr.bf16.mxu1 %v5522_v5  ;;  %v463_v4 = vld [vmem:[%s6424_s29 + $0x4b8] sm:$0xff] }
 0x1d7   : > { %v395_v5 = vld [vmem:[%s6424_s29 + $0x298] sm:$0xff]  ;;  %v5666_v11 = vcombine.high %v459_v7, %v463_v4  ;;  %v5665_v22 = vcombine.low %v459_v7, %v463_v4 }
 0x1d8   : > { %4357 = vmatpush1.bf16.msra.mxu0 %v6031_v13  ;;  %v5602_v13 = vcombine.high %v395_v5, %v399_v26  ;;  %v5601_v24 = vcombine.low %v395_v5, %v399_v26  ;;  %v611_v4 = vld [vmem:[%s6424_s29 + $0x958] sm:$0xff] }
 0x1d9   : > { %4398 = vmatpush1.bf16.msra.mxu1 %v5521_v15  ;;  %4424 = vmatprep.subr.bf16.mxu0 %v5706_v16  ;;  %v451_v15 = vld [vmem:[%s6424_s29 + $0x458] sm:$0xff] }
 0x1da   : > { %4399 = vmatprep.subr.bf16.mxu1 %v5642_v19  ;;  %v455_v16 = vld [vmem:[%s6424_s29 + $0x478] sm:$0xff] }
 0x1db   : > { %4375 = vmatmul.mubr.bf16.vlgmr.msra.gmra.mxu0 %v6655_v9  ;;  %v387_v19 = vld [vmem:[%s6424_s29 + $0x258] sm:$0xff]  ;;  %v5658_v25 = vcombine.high %v451_v15, %v455_v16  ;;  %v5657_v32 = vcombine.low %v451_v15, %v455_v16 }
 0x1dc   : > { %v6998_v35 = vpop.f32.mrf.mxu1  ;;  %4425 = vmatpush1.bf16.msra.mxu0 %v5705_v28  ;;  %4456 = vmatprep.mubr.bf16.mxu0 %v6482_v17  ;;  %v5625_v17 = vcombine.low %v419_v23, %v423_v12  ;;  %v5594_v28 = vcombine.high %v387_v19, %v391_v21  ;;  %v5593_v23 = vcombine.low %v387_v19, %v391_v21  ;;  %v615_v5 = vld [vmem:[%s6424_s29 + $0x978] sm:$0xff] }
 0x1dd   : > { %4400 = vmatpush2.bf16.msra.mxu1 %v5641_v29  ;;  %4426 = vmatprep.subr.bf16.mxu0 %v5698_v30  ;;  %v443_v29 = vld [vmem:[%s6424_s29 + $0x418] sm:$0xff] }
 0x1de   : > { %v7001_v40 = vpop.f32.mrf.mxu1  ;;  %4401 = vmatprep.subr.bf16.mxu1 %v5634_v58  ;;  %v447_v30 = vld [vmem:[%s6424_s29 + $0x438] sm:$0xff] }
 0x1df   : > { %v379_v58 = vld [vmem:[%s6424_s29 + $0x218] sm:$0xff]  ;;  %v5650_v12 = vcombine.high %v443_v29, %v447_v30  ;;  %v5649_v43 = vcombine.low %v443_v29, %v447_v30  ;;  %v5817_v29 = vcombine.low %v611_v4, %v615_v5 }
 0x1e0   : > { %v4093_v49 = vpop.f32.mrf.mxu1  ;;  %4427 = vmatpush1.bf16.msra.mxu0 %v5697_v36  ;;  %v5586_v36 = vcombine.high %v379_v58, %v383_v31  ;;  %v5585_v46 = vcombine.low %v379_v58, %v383_v31  ;;  %v539_v15 = vld [vmem:[%s6424_s29 + $0x718] sm:$0xff] }
 0x1e1   : > { %4402 = vmatpush2.bf16.msra.mxu1 %v5633_v37  ;;  %4428 = vmatprep.subr.bf16.mxu0 %v5690_v39  ;;  %v563_v37 = vld [vmem:[%s6424_s29 + $0x7d8] sm:$0xff] }
 0x1e2   : > { %v4094_v52 = vpop.f32.mrf.mxu1  ;;  %4403 = vmatprep.subr.bf16.mxu1 %v5626_v41  ;;  %v567_v39 = vld [vmem:[%s6424_s29 + $0x7f8] sm:$0xff] }
 0x1e3   : > { %v627_v41 = vld [vmem:[%s6424_s29 + $0x9d8] sm:$0xff]  ;;  %v5770_v6 = vcombine.high %v563_v37, %v567_v39  ;;  %v5769_v55 = vcombine.low %v563_v37, %v567_v39  ;;  %v4604_v37 = vrot.slane %v4596_v33, %v6456_v54 }
 0x1e4   : > { %4429 = vmatpush1.bf16.msra.mxu0 %v5689_v50  ;;  %v5834_v49 = vcombine.high %v627_v41, %v631_v0  ;;  %v555_v50 = vld [vmem:[%s6424_s29 + $0x798] sm:$0xff]  ;;  %v5833_v56 = vcombine.low %v627_v41, %v631_v0  ;;  %v245_v0 = vld [vmem:[#allocation2] sm:$0xff] }
 0x1e5   : > { %4404 = vmatpush2.bf16.msra.mxu1 %v5625_v17  ;;  %4430 = vmatprep.subr.bf16.mxu0 %v5682_v51  ;;  %v559_v17 = vld [vmem:[%s6424_s29 + $0x7b8] sm:$0xff] }
 0x1e6   : > { %4405 = vmatprep.subr.bf16.mxu1 %v5618_v53  ;;  %v619_v51 = vld [vmem:[%s6424_s29 + $0x998] sm:$0xff]  ;;  %v4049_v53 = vadd.f32 %v6955_v3, %v6921_v42  ;;  %v5762_v57 = vcombine.high %v555_v50, %v559_v17  ;;  %v4092_v42 = vadd.f32 %v7001_v40, %v4051_v60  ;;  %v5761_v48 = vcombine.low %v555_v50, %v559_v17 }
 0x1e7   : > { %v623_v52 = vld [vmem:[%s6424_s29 + $0x9b8] sm:$0xff] }
 0x1e8   : > { %4431 = vmatpush1.bf16.msra.mxu0 %v5681_v61  ;;  %v4090_v61 = vadd.f32 %v6998_v35, %v4049_v53  ;;  %v5825_v35 = vcombine.low %v619_v51, %v623_v52  ;;  %v543_v40 = vld [vmem:[%s6424_s29 + $0x738] sm:$0xff] }
 0x1e9   : > { %4406 = vmatpush2.bf16.msra.mxu1 %v5617_v63  ;;  %4432 = vmatprep.subr.bf16.mxu0 %v5674_v1  ;;  %v5826_v63 = vcombine.high %v619_v51, %v623_v52  ;;  %v547_v1 = vld [vmem:[%s6424_s29 + $0x758] sm:$0xff]  ;;  %v5746_v30 = vcombine.high %v539_v15, %v543_v40  ;;  %v5745_v41 = vcombine.low %v539_v15, %v543_v40 }
 0x1ea   : > { %4407 = vmatprep.subr.bf16.mxu1 %v5610_v2  ;;  %v551_v2 = vld [vmem:[%s6424_s29 + $0x778] sm:$0xff] }
 0x1eb   : > { %v603_v19 = vld [vmem:[%s6424_s29 + $0x918] sm:$0xff] }
 0x1ec   : > { %4433 = vmatpush1.bf16.msra.mxu0 %v5673_v18  ;;  %v5754_v18 = vcombine.high %v547_v1, %v551_v2  ;;  %v523_v50 = vld [vmem:[%s6424_s29 + $0x698] sm:$0xff] }
 0x1ed   : > { %4408 = vmatpush2.bf16.msra.mxu1 %v5609_v10  ;;  %4434 = vmatprep.subr.bf16.mxu0 %v5666_v11  ;;  %v527_v17 = vld [vmem:[%s6424_s29 + $0x6b8] sm:$0xff] }
 0x1ee   : > { %4409 = vmatprep.subr.bf16.mxu1 %v5602_v13  ;;  %v5818_v13 = vcombine.high %v611_v4, %v615_v5  ;;  %v5730_v53 = vcombine.high %v523_v50, %v527_v17  ;;  %v579_v60 = vld [vmem:[%s6424_s29 + $0x858] sm:$0xff] }
 0x1ef   : > { %v507_v4 = vld [vmem:[%s6424_s29 + $0x618] sm:$0xff] }
 0x1f0   : > { %4435 = vmatpush1.bf16.msra.mxu0 %v5665_v22  ;;  %v511_v5 = vld [vmem:[%s6424_s29 + $0x638] sm:$0xff] }
 0x1f1   : > { %4410 = vmatpush2.bf16.msra.mxu1 %v5601_v24  ;;  %4436 = vmatprep.subr.bf16.mxu0 %v5658_v25  ;;  %v5753_v25 = vcombine.low %v547_v1, %v551_v2  ;;  %v5793_v1 = vcombine.low %v587_v20, %v591_v27  ;;  %v5713_v15 = vcombine.low %v507_v4, %v511_v5 }
 0x1f2   : > { %4411 = vmatprep.subr.bf16.mxu1 %v5594_v28 }
 0x1f4   : > { %4437 = vmatpush1.bf16.msra.mxu0 %v5657_v32  ;;  %v531_v32 = vld [vmem:[%s6424_s29 + $0x6d8] sm:$0xff] }
 0x1f5   : > { %4412 = vmatpush2.bf16.msra.mxu1 %v5593_v23  ;;  %4438 = vmatprep.subr.bf16.mxu0 %v5650_v12  ;;  %v535_v23 = vld [vmem:[%s6424_s29 + $0x6f8] sm:$0xff] }
 0x1f6   : > { %4413 = vmatprep.subr.bf16.mxu1 %v5586_v36  ;;  %v595_v12 = vld [vmem:[%s6424_s29 + $0x8d8] sm:$0xff]  ;;  %v5737_v51 = vcombine.low %v531_v32, %v535_v23 }
 0x1f7   : > { %v599_v36 = vld [vmem:[%s6424_s29 + $0x8f8] sm:$0xff] }
 0x1f8   : > { %4439 = vmatpush1.bf16.msra.mxu0 %v5649_v43  ;;  %v5801_v52 = vcombine.low %v595_v12, %v599_v36 }
 0x1f9   : > { %4414 = vmatpush2.bf16.msra.mxu1 %v5585_v46  ;;  %4440 = vmatprep.subr.bf16.mxu0 %v5770_v6  ;;  %v5738_v46 = vcombine.high %v531_v32, %v535_v23  ;;  %v679_v32 = vld [vmem:[%s6424_s29 + $0xb78] sm:$0xff] }
 0x1fa   : > { %4465 = vmatprep.subr.bf16.mxu1 %v5834_v49  ;;  %v5802_v49 = vcombine.high %v595_v12, %v599_v36 }
 0x1fb   : > { %v4130_v7 = vpop.f32.mrf.mxu0 }
 0x1fc   : > { %v4131_v3 = vadd.f32 %v4130_v7, %v4090_v61  ;;  %v4171_v26 = vpop.f32.mrf.mxu1  ;;  %4416 = vmatmul.mubr.bf16.vlgmr.msra.gmra.mxu1 %v6530_v34  ;;  %4441 = vmatpush2.bf16.msra.mxu0 %v5769_v55  ;;  %v607_v34 = vld [vmem:[%s6424_s29 + $0x938] sm:$0xff]  ;;  %v5794_v55 = vcombine.high %v587_v20, %v591_v27 }
 0x1fd   : > { %4466 = vmatpush1.bf16.msra.mxu1 %v5833_v56  ;;  %v4132_v8 = vpop.f32.mrf.mxu0  ;;  %4442 = vmatprep.subr.bf16.mxu0 %v5762_v57  ;;  %v5809_v43 = vcombine.low %v603_v19, %v607_v34  ;;  %v515_v56 = vld [vmem:[%s6424_s29 + $0x658] sm:$0xff] }
 0x1fe   : > { %v4133_v10 = vadd.f32 %v4132_v8, %v4092_v42  ;;  %v4173_v11 = vpop.f32.mrf.mxu1  ;;  %4467 = vmatprep.subr.bf16.mxu1 %v5826_v63  ;;  %4497 = vmatprep.mubr.bf16.mxu1 %v6542_v44  ;;  %v4172_v21 = vadd.f32 %v4171_v26, %v4131_v3  ;;  %v5810_v44 = vcombine.high %v603_v19, %v607_v34  ;;  %v519_v57 = vld [vmem:[%s6424_s29 + $0x678] sm:$0xff] }
 0x1ff   : > { %v4134_v16 = vpop.f32.mrf.mxu0  ;;  %v583_v61 = vld [vmem:[%s6424_s29 + $0x878] sm:$0xff]  ;;  %v5729_v63 = vcombine.low %v523_v50, %v527_v17  ;;  %v5722_v2 = vcombine.high %v515_v56, %v519_v57  ;;  %v5721_v26 = vcombine.low %v515_v56, %v519_v57  ;;  %v5714_v8 = vcombine.high %v507_v4, %v511_v5 }
 0x200   : > { %v4174_v22 = vadd.f32 %v4173_v11, %v4133_v10  ;;  %v4175_v24 = vpop.f32.mrf.mxu1  ;;  %4443 = vmatpush2.bf16.msra.mxu0 %v5761_v48  ;;  %v5786_v7 = vcombine.high %v579_v60, %v583_v61  ;;  %v571_v42 = vld [vmem:[%s6424_s29 + $0x818] sm:$0xff]  ;;  %v5785_v48 = vcombine.low %v579_v60, %v583_v61 }
 0x201   : > { %4468 = vmatpush1.bf16.msra.mxu1 %v5825_v35  ;;  %v4135_v28 = vpop.f32.mrf.mxu0  ;;  %4444 = vmatprep.subr.bf16.mxu0 %v5754_v18  ;;  %v575_v3 = vld [vmem:[%s6424_s29 + $0x838] sm:$0xff] }
 0x202   : > { %v4597_v58 = vcombine.low %v4172_v21, %v4174_v22  ;;  %v4176_v31 = vpop.f32.mrf.mxu1  ;;  %4469 = vmatprep.subr.bf16.mxu1 %v5818_v13  ;;  %v5778_v35 = vcombine.high %v571_v42, %v575_v3  ;;  %v755_v18 = vld [vmem:[%s6424_s29 + $0xdd8] sm:$0xff]  ;;  %v5777_v40 = vcombine.low %v571_v42, %v575_v3 }
 0x203   : > { %v759_v10 = vld [vmem:[%s6424_s29 + $0xdf8] sm:$0xff] }
 0x204   : > { %v4611_v39 = vrot.slane %v4597_v58, %v6456_v54  ;;  %4445 = vmatpush2.bf16.msra.mxu0 %v5753_v25  ;;  %v691_v11 = vld [vmem:[%s6424_s29 + $0xbd8] sm:$0xff]  ;;  %v5962_v16 = vcombine.high %v755_v18, %v759_v10  ;;  %v5961_v25 = vcombine.low %v755_v18, %v759_v10 }
 0x205   : > { %4470 = vmatpush1.bf16.msra.mxu1 %v5817_v29  ;;  %4446 = vmatprep.subr.bf16.mxu0 %v5746_v30  ;;  %v695_v13 = vld [vmem:[%s6424_s29 + $0xbf8] sm:$0xff] }
 0x206   : > { %v4612_v6 = vcombine.low %v4604_v37, %v4611_v39  ;;  %4471 = vmatprep.subr.bf16.mxu1 %v5810_v44  ;;  %v5898_v19 = vcombine.high %v691_v11, %v695_v13  ;;  %v747_v34 = vld [vmem:[%s6424_s29 + $0xd98] sm:$0xff]  ;;  %v5897_v28 = vcombine.low %v691_v11, %v695_v13 }
 0x207   : > { %v751_v21 = vld [vmem:[%s6424_s29 + $0xdb8] sm:$0xff] }
 0x208   : > { %v4632_v33 = vadd.f32 %v4612_v6, %v245_v0  ;;  %4447 = vmatpush2.bf16.msra.mxu0 %v5745_v41  ;;  %v683_v22 = vld [vmem:[%s6424_s29 + $0xb98] sm:$0xff]  ;;  %v5954_v29 = vcombine.high %v747_v34, %v751_v21  ;;  %v5953_v23 = vcombine.low %v747_v34, %v751_v21 }
 0x209   : > { %4472 = vmatpush1.bf16.msra.mxu1 %v5809_v43  ;;  %4448 = vmatprep.subr.bf16.mxu0 %v5738_v46  ;;  %v687_v24 = vld [vmem:[%s6424_s29 + $0xbb8] sm:$0xff] }
 0x20a   : > { %4634 = vst [vmem:[#allocation2] sm:$0xff] %v4632_v33  ;;  %4473 = vmatprep.subr.bf16.mxu1 %v5802_v49  ;;  %v5890_v30 = vcombine.high %v683_v22, %v687_v24  ;;  %v739_v58 = vld [vmem:[%s6424_s29 + $0xd58] sm:$0xff]  ;;  %v5889_v12 = vcombine.low %v683_v22, %v687_v24 }
 0x20b   : > { %v743_v31 = vld [vmem:[%s6424_s29 + $0xd78] sm:$0xff] }
 0x20c   : > { %4449 = vmatpush2.bf16.msra.mxu0 %v5737_v51  ;;  %v675_v44 = vld [vmem:[%s6424_s29 + $0xb58] sm:$0xff]  ;;  %v5946_v36 = vcombine.high %v739_v58, %v743_v31  ;;  %v5945_v43 = vcombine.low %v739_v58, %v743_v31 }
 0x20d   : > { %4474 = vmatpush1.bf16.msra.mxu1 %v5801_v52  ;;  %4450 = vmatprep.subr.bf16.mxu0 %v5730_v53  ;;  %v5882_v37 = vcombine.high %v675_v44, %v679_v32  ;;  %v731_v39 = vld [vmem:[%s6424_s29 + $0xd18] sm:$0xff]  ;;  %v5881_v46 = vcombine.low %v675_v44, %v679_v32 }
 0x20e   : > { %4475 = vmatprep.subr.bf16.mxu1 %v5794_v55  ;;  %v735_v41 = vld [vmem:[%s6424_s29 + $0xd38] sm:$0xff] }
 0x20f   : > { %v667_v0 = vld [vmem:[%s6424_s29 + $0xb18] sm:$0xff]  ;;  %v5937_v27 = vcombine.low %v731_v39, %v735_v41 }
 0x210   : > { %4451 = vmatpush2.bf16.msra.mxu0 %v5729_v63  ;;  %v723_v49 = vld [vmem:[%s6424_s29 + $0xcd8] sm:$0xff] }
 0x211   : > { %4476 = vmatpush1.bf16.msra.mxu1 %v5793_v1  ;;  %4452 = vmatprep.subr.bf16.mxu0 %v5722_v2  ;;  %v727_v50 = vld [vmem:[%s6424_s29 + $0xcf8] sm:$0xff] }
 0x212   : > { %4477 = vmatprep.subr.bf16.mxu1 %v5786_v7  ;;  %v659_v17 = vld [vmem:[%s6424_s29 + $0xad8] sm:$0xff]  ;;  %v5930_v51 = vcombine.high %v723_v49, %v727_v50  ;;  %v5929_v60 = vcombine.low %v723_v49, %v727_v50 }
 0x213   : > { %v663_v20 = vld [vmem:[%s6424_s29 + $0xaf8] sm:$0xff] }
 0x214   : > { %4453 = vmatpush2.bf16.msra.mxu0 %v5721_v26  ;;  %v5866_v52 = vcombine.high %v659_v17, %v663_v20  ;;  %v715_v53 = vld [vmem:[%s6424_s29 + $0xc98] sm:$0xff]  ;;  %v5865_v61 = vcombine.low %v659_v17, %v663_v20 }
 0x215   : > { %4478 = vmatpush1.bf16.msra.mxu1 %v5785_v48  ;;  %4454 = vmatprep.subr.bf16.mxu0 %v5714_v8  ;;  %v719_v55 = vld [vmem:[%s6424_s29 + $0xcb8] sm:$0xff] }
 0x216   : > { %4479 = vmatprep.subr.bf16.mxu1 %v5778_v35  ;;  %v651_v56 = vld [vmem:[%s6424_s29 + $0xa98] sm:$0xff]  ;;  %v5922_v63 = vcombine.high %v715_v53, %v719_v55  ;;  %v5921_v42 = vcombine.low %v715_v53, %v719_v55 }
 0x217   : > { %v655_v57 = vld [vmem:[%s6424_s29 + $0xab8] sm:$0xff] }
 0x218   : > { %4455 = vmatpush2.bf16.msra.mxu0 %v5713_v15  ;;  %v5858_v1 = vcombine.high %v651_v56, %v655_v57  ;;  %v707_v2 = vld [vmem:[%s6424_s29 + $0xc58] sm:$0xff]  ;;  %v5857_v3 = vcombine.low %v651_v56, %v655_v57 }
 0x219   : > { %4480 = vmatpush1.bf16.msra.mxu1 %v5777_v40  ;;  %4506 = vmatprep.subr.bf16.mxu0 %v5962_v16  ;;  %v711_v7 = vld [vmem:[%s6424_s29 + $0xc78] sm:$0xff] }
 0x21a   : > { %4481 = vmatprep.subr.bf16.mxu1 %v5898_v19  ;;  %v643_v4 = vld [vmem:[%s6424_s29 + $0xa58] sm:$0xff]  ;;  %v5914_v26 = vcombine.high %v707_v2, %v711_v7  ;;  %v5913_v11 = vcombine.low %v707_v2, %v711_v7 }
 0x21b   : > { %4457 = vmatmul.mubr.bf16.vlgmr.msra.gmra.mxu0 %v6538_v38  ;;  %v671_v38 = vld [vmem:[%s6424_s29 + $0xb38] sm:$0xff] }
 0x21c   : > { %4507 = vmatpush1.bf16.msra.mxu0 %v5961_v25  ;;  %4538 = vmatprep.mubr.bf16.mxu0 %v6547_v47  ;;  %v5938_v47 = vcombine.high %v731_v39, %v735_v41  ;;  %v5874_v6 = vcombine.high %v667_v0, %v671_v38  ;;  %v5873_v33 = vcombine.low %v667_v0, %v671_v38  ;;  %v647_v5 = vld [vmem:[%s6424_s29 + $0xa78] sm:$0xff] }
 0x21d   : > { %4482 = vmatpush2.bf16.msra.mxu1 %v5897_v28  ;;  %4508 = vmatprep.subr.bf16.mxu0 %v5954_v29  ;;  %v5850_v48 = vcombine.high %v643_v4, %v647_v5  ;;  %v699_v8 = vld [vmem:[%s6424_s29 + $0xc18] sm:$0xff]  ;;  %v5849_v13 = vcombine.low %v643_v4, %v647_v5 }
 0x21e   : > { %4483 = vmatprep.subr.bf16.mxu1 %v5890_v30  ;;  %v703_v35 = vld [vmem:[%s6424_s29 + $0xc38] sm:$0xff] }
 0x21f   : > { %v635_v18 = vld [vmem:[%s6424_s29 + $0xa18] sm:$0xff]  ;;  %v5906_v15 = vcombine.high %v699_v8, %v703_v35  ;;  %v5905_v22 = vcombine.low %v699_v8, %v703_v35 }
 0x220   : > { %4509 = vmatpush1.bf16.msra.mxu0 %v5953_v23  ;;  %v639_v10 = vld [vmem:[%s6424_s29 + $0xa38] sm:$0xff] }
 0x221   : > { %4484 = vmatpush2.bf16.msra.mxu1 %v5889_v12  ;;  %4510 = vmatprep.subr.bf16.mxu0 %v5946_v36  ;;  %v5842_v40 = vcombine.high %v635_v18, %v639_v10  ;;  %v819_v16 = vld [vmem:[%s6424_s29 + $0xfd8] sm:$0xff]  ;;  %v5841_v24 = vcombine.low %v635_v18, %v639_v10 }
 0x222   : > { %4485 = vmatprep.subr.bf16.mxu1 %v5882_v37  ;;  %v823_v19 = vld [vmem:[%s6424_s29 + $0xff8] sm:$0xff] }
 0x223   : > { %v883_v34 = vld [vmem:[%s6424_s29 + $0x11d8] sm:$0xff]  ;;  %v6026_v25 = vcombine.high %v819_v16, %v823_v19  ;;  %v6025_v44 = vcombine.low %v819_v16, %v823_v19 }
 0x224   : > { %4511 = vmatpush1.bf16.msra.mxu0 %v5945_v43  ;;  %v887_v21 = vld [vmem:[%s6424_s29 + $0x11f8] sm:$0xff] }
 0x225   : > { %4486 = vmatpush2.bf16.msra.mxu1 %v5881_v46  ;;  %4512 = vmatprep.subr.bf16.mxu0 %v5938_v47  ;;  %v6090_v28 = vcombine.high %v883_v34, %v887_v21  ;;  %v811_v29 = vld [vmem:[%s6424_s29 + $0xf98] sm:$0xff]  ;;  %v6089_v32 = vcombine.low %v883_v34, %v887_v21 }
 0x226   : > { %4487 = vmatprep.subr.bf16.mxu1 %v5874_v6  ;;  %v815_v30 = vld [vmem:[%s6424_s29 + $0xfb8] sm:$0xff] }
 0x227   : > { %v875_v58 = vld [vmem:[%s6424_s29 + $0x1198] sm:$0xff]  ;;  %v6018_v23 = vcombine.high %v811_v29, %v815_v30  ;;  %v6017_v43 = vcombine.low %v811_v29, %v815_v30 }
 0x228   : > { %4513 = vmatpush1.bf16.msra.mxu0 %v5937_v27  ;;  %v879_v31 = vld [vmem:[%s6424_s29 + $0x11b8] sm:$0xff] }
 0x229   : > { %4488 = vmatpush2.bf16.msra.mxu1 %v5873_v33  ;;  %4514 = vmatprep.subr.bf16.mxu0 %v5930_v51  ;;  %v6082_v12 = vcombine.high %v875_v58, %v879_v31  ;;  %v803_v36 = vld [vmem:[%s6424_s29 + $0xf58] sm:$0xff]  ;;  %v6081_v6 = vcombine.low %v875_v58, %v879_v31 }
 0x22a   : > { %4489 = vmatprep.subr.bf16.mxu1 %v5866_v52  ;;  %v807_v37 = vld [vmem:[%s6424_s29 + $0xf78] sm:$0xff] }
 0x22b   : > { %v867_v41 = vld [vmem:[%s6424_s29 + $0x1158] sm:$0xff]  ;;  %v6010_v49 = vcombine.high %v803_v36, %v807_v37  ;;  %v6009_v55 = vcombine.low %v803_v36, %v807_v37 }
 0x22c   : > { %4515 = vmatpush1.bf16.msra.mxu0 %v5929_v60  ;;  %v871_v0 = vld [vmem:[%s6424_s29 + $0x1178] sm:$0xff] }
 0x22d   : > { %4490 = vmatpush2.bf16.msra.mxu1 %v5865_v61  ;;  %4516 = vmatprep.subr.bf16.mxu0 %v5922_v63  ;;  %v6074_v17 = vcombine.high %v867_v41, %v871_v0  ;;  %v795_v20 = vld [vmem:[%s6424_s29 + $0xf18] sm:$0xff]  ;;  %v6073_v57 = vcombine.low %v867_v41, %v871_v0 }
 0x22e   : > { %4491 = vmatprep.subr.bf16.mxu1 %v5858_v1  ;;  %v799_v27 = vld [vmem:[%s6424_s29 + $0xf38] sm:$0xff] }
 0x22f   : > { %v859_v51 = vld [vmem:[%s6424_s29 + $0x1118] sm:$0xff]  ;;  %v6002_v60 = vcombine.high %v795_v20, %v799_v27  ;;  %v6001_v4 = vcombine.low %v795_v20, %v799_v27 }
 0x230   : > { %4517 = vmatpush1.bf16.msra.mxu0 %v5921_v42  ;;  %v863_v52 = vld [vmem:[%s6424_s29 + $0x1138] sm:$0xff] }
 0x231   : > { %4492 = vmatpush2.bf16.msra.mxu1 %v5857_v3  ;;  %4518 = vmatprep.subr.bf16.mxu0 %v5914_v26  ;;  %v787_v63 = vld [vmem:[%s6424_s29 + $0xed8] sm:$0xff]  ;;  %v6065_v5 = vcombine.low %v859_v51, %v863_v52 }
 0x232   : > { %4493 = vmatprep.subr.bf16.mxu1 %v5850_v48  ;;  %v791_v1 = vld [vmem:[%s6424_s29 + $0xef8] sm:$0xff] }
 0x233   : > { %v851_v2 = vld [vmem:[%s6424_s29 + $0x10d8] sm:$0xff]  ;;  %v5994_v42 = vcombine.high %v787_v63, %v791_v1  ;;  %v5993_v18 = vcombine.low %v787_v63, %v791_v1 }
 0x234   : > { %4519 = vmatpush1.bf16.msra.mxu0 %v5913_v11  ;;  %v855_v7 = vld [vmem:[%s6424_s29 + $0x10f8] sm:$0xff] }
 0x235   : > { %4494 = vmatpush2.bf16.msra.mxu1 %v5849_v13  ;;  %4520 = vmatprep.subr.bf16.mxu0 %v5906_v15  ;;  %v6058_v3 = vcombine.high %v851_v2, %v855_v7  ;;  %v779_v26 = vld [vmem:[%s6424_s29 + $0xe98] sm:$0xff]  ;;  %v6057_v10 = vcombine.low %v851_v2, %v855_v7 }
 0x236   : > { %4495 = vmatprep.subr.bf16.mxu1 %v5842_v40  ;;  %v783_v48 = vld [vmem:[%s6424_s29 + $0xeb8] sm:$0xff] }
 0x237   : > { %v843_v8 = vld [vmem:[%s6424_s29 + $0x1098] sm:$0xff]  ;;  %v5986_v11 = vcombine.high %v779_v26, %v783_v48  ;;  %v5985_v34 = vcombine.low %v779_v26, %v783_v48 }
 0x238   : > { %4521 = vmatpush1.bf16.msra.mxu0 %v5905_v22  ;;  %v847_v35 = vld [vmem:[%s6424_s29 + $0x10b8] sm:$0xff] }
 0x239   : > { %4496 = vmatpush2.bf16.msra.mxu1 %v5841_v24  ;;  %4522 = vmatprep.subr.bf16.mxu0 %v6026_v25  ;;  %v6050_v13 = vcombine.high %v843_v8, %v847_v35  ;;  %v771_v15 = vld [vmem:[%s6424_s29 + $0xe58] sm:$0xff]  ;;  %v6049_v21 = vcombine.low %v843_v8, %v847_v35 }
 0x23a   : > { %4547 = vmatprep.subr.bf16.mxu1 %v6090_v28  ;;  %v775_v40 = vld [vmem:[%s6424_s29 + $0xe78] sm:$0xff] }
 0x23b   : > { %v4212_v39 = vpop.f32.mrf.mxu0  ;;  %v835_v16 = vld [vmem:[%s6424_s29 + $0x1058] sm:$0xff]  ;;  %v5978_v22 = vcombine.high %v771_v15, %v775_v40  ;;  %v5977_v58 = vcombine.low %v771_v15, %v775_v40 }
 0x23c   : > { %v4253_v38 = vpop.f32.mrf.mxu1  ;;  %4498 = vmatmul.mubr.bf16.vlgmr.msra.gmra.mxu1 %v6612_v59  ;;  %4523 = vmatpush2.bf16.msra.mxu0 %v6025_v44  ;;  %v839_v19 = vld [vmem:[%s6424_s29 + $0x1078] sm:$0xff] }
 0x23d   : > { %v7115_v46 = vadd.f32 %v4253_v38, %v4212_v39  ;;  %4548 = vmatpush1.bf16.msra.mxu1 %v6089_v32  ;;  %v4214_v47 = vpop.f32.mrf.mxu0  ;;  %4524 = vmatprep.subr.bf16.mxu0 %v6018_v23  ;;  %v6042_v24 = vcombine.high %v835_v16, %v839_v19  ;;  %v763_v25 = vld [vmem:[%s6424_s29 + $0xe18] sm:$0xff]  ;;  %v6041_v31 = vcombine.low %v835_v16, %v839_v19 }
 0x23e   : > { %v4255_v50 = vpop.f32.mrf.mxu1  ;;  %4549 = vmatprep.subr.bf16.mxu1 %v6082_v12  ;;  %4579 = vmatprep.mubr.bf16.mxu1 %v6372_v14  ;;  %v6066_v14 = vcombine.high %v859_v51, %v863_v52  ;;  %v767_v28 = vld [vmem:[%s6424_s29 + $0xe38] sm:$0xff] }
 0x23f   : > { %v7120_v59 = vadd.f32 %v4255_v50, %v4214_v47  ;;  %v4216_v33 = vpop.f32.mrf.mxu0  ;;  %v827_v29 = vld [vmem:[%s6424_s29 + $0x1018] sm:$0xff]  ;;  %v5970_v44 = vcombine.high %v763_v25, %v767_v28  ;;  %v5969_v23 = vcombine.low %v763_v25, %v767_v28 }
 0x240   : > { %v4257_v53 = vpop.f32.mrf.mxu1  ;;  %4525 = vmatpush2.bf16.msra.mxu0 %v6017_v43  ;;  %v831_v30 = vld [vmem:[%s6424_s29 + $0x1038] sm:$0xff] }
 0x241   : > { %4550 = vmatpush1.bf16.msra.mxu1 %v6081_v6  ;;  %v4217_v56 = vpop.f32.mrf.mxu0  ;;  %4526 = vmatprep.subr.bf16.mxu0 %v6010_v49  ;;  %v6034_v32 = vcombine.high %v827_v29, %v831_v30  ;;  %v6033_v12 = vcombine.low %v827_v29, %v831_v30 }
 0x242   : > { %v4258_v61 = vpop.f32.mrf.mxu1  ;;  %4551 = vmatprep.subr.bf16.mxu1 %v6074_v17 }
 0x244   : > { %4527 = vmatpush2.bf16.msra.mxu0 %v6009_v55 }
 0x245   : > { %4552 = vmatpush1.bf16.msra.mxu1 %v6073_v57  ;;  %4528 = vmatprep.subr.bf16.mxu0 %v6002_v60 }
 0x246   : > { %4553 = vmatprep.subr.bf16.mxu1 %v6066_v14 }
 0x248   : > { %4529 = vmatpush2.bf16.msra.mxu0 %v6001_v4 }
 0x249   : > { %4554 = vmatpush1.bf16.msra.mxu1 %v6065_v5  ;;  %4530 = vmatprep.subr.bf16.mxu0 %v5994_v42 }
 0x24a   : > { %4555 = vmatprep.subr.bf16.mxu1 %v6058_v3 }
 0x24c   : > { %4531 = vmatpush2.bf16.msra.mxu0 %v5993_v18 }
 0x24d   : > { %4556 = vmatpush1.bf16.msra.mxu1 %v6057_v10  ;;  %4532 = vmatprep.subr.bf16.mxu0 %v5986_v11 }
 0x24e   : > { %4557 = vmatprep.subr.bf16.mxu1 %v6050_v13 }
 0x250   : > { %4533 = vmatpush2.bf16.msra.mxu0 %v5985_v34 }
 0x251   : > { %4558 = vmatpush1.bf16.msra.mxu1 %v6049_v21  ;;  %4534 = vmatprep.subr.bf16.mxu0 %v5978_v22  ;;  %v246_v22 = vld [vmem:[#allocation2 + $0x8] sm:$0xff] }
 0x252   : > { %4559 = vmatprep.subr.bf16.mxu1 %v6042_v24 }
 0x254   : > { %4535 = vmatpush2.bf16.msra.mxu0 %v5977_v58 }
 0x255   : > { %4560 = vmatpush1.bf16.msra.mxu1 %v6041_v31  ;;  %4536 = vmatprep.subr.bf16.mxu0 %v5970_v44 }
 0x256   : > { %4561 = vmatprep.subr.bf16.mxu1 %v6034_v32 }
 0x258   : > { %4537 = vmatpush2.bf16.msra.mxu0 %v5969_v23 }
 0x259   : > { %4562 = vmatpush1.bf16.msra.mxu1 %v6033_v12 }
 0x25b   : > { %4539 = vmatmul.mubr.bf16.vlgmr.msra.gmra.mxu0 %v6618_v62 }
 0x25c   : > { %4580 = vmatmul.mubr.bf16.vlgmr.msra.gmra.mxu1 %v6655_v9 }
 0x27b   : > { %v4294_v36 = vpop.f32.mrf.mxu0 }
 0x27c   : > { %v4295_v37 = vadd.f32 %v4294_v36, %v7115_v46  ;;  %v4335_v39 = vpop.f32.mrf.mxu1 }
 0x27d   : > { %v4296_v41 = vpop.f32.mrf.mxu0 }
 0x27e   : > { %v4336_v0 = vadd.f32 %v4335_v39, %v4295_v37  ;;  %v4297_v38 = vadd.f32 %v4296_v41, %v7120_v59  ;;  %v4337_v43 = vpop.f32.mrf.mxu1 }
 0x27f   : > { %v4298_v47 = vpop.f32.mrf.mxu0 }
 0x280   : > { %v4338_v6 = vadd.f32 %v4337_v43, %v4297_v38  ;;  %v4339_v49 = vpop.f32.mrf.mxu1 }
 0x281   : > { %v4299_v50 = vpop.f32.mrf.mxu0 }
 0x282   : > { %v4340_v17 = vpop.f32.mrf.mxu1 }
 0x29b   : > { %v4376_v20 = vpop.f32.mrf.mxu0 }
 0x29c   : > { %v4377_v27 = vadd.f32 %v4376_v20, %v4336_v0 }
 0x29d   : > { %v4378_v33 = vpop.f32.mrf.mxu0 }
 0x29e   : > { %v4379_v62 = vadd.f32 %v4378_v33, %v4338_v6 }
 0x29f   : > { %v4380_v51 = vpop.f32.mrf.mxu0 }
 0x2a0   : > { %v4613_v9 = vcombine.low %v4377_v27, %v4379_v62 }
 0x2a1   : > { %v4381_v52 = vpop.f32.mrf.mxu0 }
 0x2a2   : > { %v4621_v34 = vrot.slane %v4613_v9, %v6456_v54 }
 0x2bc   : > { %v4417_v53 = vpop.f32.mrf.mxu1 }
 0x2be   : > { %v4419_v46 = vpop.f32.mrf.mxu1 }
 0x2c0   : > { %v4421_v55 = vpop.f32.mrf.mxu1 }
 0x2c2   : > { %v4422_v56 = vpop.f32.mrf.mxu1 }
 0x2db   : > { %v4458_v57 = vpop.f32.mrf.mxu0 }
 0x2dc   : > { %v4459_v7 = vadd.f32 %v4458_v57, %v4417_v53 }
 0x2dd   : > { %v4460_v60 = vpop.f32.mrf.mxu0 }
 0x2de   : > { %v4461_v4 = vadd.f32 %v4460_v60, %v4419_v46 }
 0x2df   : > { %v4462_v59 = vpop.f32.mrf.mxu0 }
 0x2e1   : > { %v4463_v61 = vpop.f32.mrf.mxu0 }
 0x2fc   : > { %v4499_v14 = vpop.f32.mrf.mxu1 }
 0x2fd   : > { %v4500_v5 = vadd.f32 %v4499_v14, %v4459_v7 }
 0x2fe   : > { %v4501_v63 = vpop.f32.mrf.mxu1 }
 0x2ff   : > { %v4502_v3 = vadd.f32 %v4501_v63, %v4461_v4 }
 0x300   : > { %v4503_v1 = vpop.f32.mrf.mxu1 }
 0x302   : > { %v4504_v2 = vpop.f32.mrf.mxu1 }
 0x31b   : > { %v4540_v42 = vpop.f32.mrf.mxu0 }
 0x31c   : > { %v4541_v26 = vadd.f32 %v4540_v42, %v4500_v5  ;;  %v4581_v48 = vpop.f32.mrf.mxu1 }
 0x31d   : > { %v4542_v8 = vpop.f32.mrf.mxu0 }
 0x31e   : > { %v4543_v35 = vadd.f32 %v4542_v8, %v4502_v3  ;;  %v4583_v18 = vpop.f32.mrf.mxu1  ;;  %v4582_v11 = vadd.f32 %v4581_v48, %v4541_v26 }
 0x31f   : > { %v4544_v10 = vpop.f32.mrf.mxu0 }
 0x320   : > { %v4584_v13 = vadd.f32 %v4583_v18, %v4543_v35  ;;  %v4585_v15 = vpop.f32.mrf.mxu1 }
 0x321   : > { %v4545_v40 = vpop.f32.mrf.mxu0 }
 0x322   : > { %v4614_v16 = vcombine.low %v4582_v11, %v4584_v13  ;;  %v4586_v19 = vpop.f32.mrf.mxu1 }
 0x324   : > { %v4628_v21 = vrot.slane %v4614_v16, %v6456_v54 }
 0x326   : > { %v4629_v24 = vcombine.low %v4621_v34, %v4628_v21  ;;  %4639 = sbr.rel (%p6091_p6) target bundleno = 1079 (0x437), region = 48 }
 0x328   : > { %v4633_v25 = vadd.f32 %v4629_v24, %v246_v22 }
 0x32a   : > { %4635 = vst [vmem:[#allocation2 + $0x8] sm:$0xff] %v4633_v25 }
 0x32b   : > { %v6270_v28 = vld [vmem:[%s7379_s3 + $0x78] sm:$0xff]   ;;  %v6274_v31 = vld [vmem:[%s7379_s3 + $0x70] sm:$0xff]   ;;  %v6278_v12 = vld [vmem:[%s7379_s3 + $0x68] sm:$0xff]   ;;  %v4646_v52 = vsub.s32 0, %v6449_v45  ;;  %v4650_v46 = vsub.s32 1, %v6449_v45  ;;  %v4654_v56 = vsub.s32 2, %v6449_v45 }
 0x32c   : > { %v6271_v29 = vld [vmem:[%s7379_s3 + $0xf8] sm:$0xff]   ;;  %6162 = vmatprep.subr.bf16.mxu0 %v6270_v28  ;;  %v6275_v44 = vld [vmem:[%s7379_s3 + $0xf0] sm:$0xff]   ;;  %v6279_v36 = vld [vmem:[%s7379_s3 + $0xe8] sm:$0xff]   ;;  %v4658_v60 = vsub.s32 3, %v6449_v45  ;;  %v4662_v11 = vsub.s32 4, %v6449_v45  ;;  %v4666_v13 = vsub.s32 5, %v6449_v45 }
 0x32d   : > { %v6272_v30 = vld [vmem:[%s7379_s3 + $0x38] sm:$0xff]   ;;  %6184 = vmatprep.subr.bf16.mxu1 %v6271_v29  ;;  %v6276_v32 = vld [vmem:[%s7379_s3 + $0x30] sm:$0xff]   ;;  %v6280_v37 = vld [vmem:[%s7379_s3 + $0x28] sm:$0xff]   ;;  %v4670_v16 = vsub.s32 6, %v6449_v45  ;;  %v4674_v19 = vsub.s32 7, %v6449_v45 }
 0x32e   : > { %v6273_v58 = vld [vmem:[%s7379_s3 + $0xb8] sm:$0xff]   ;;  %6163 = vmatpush3.bf16.msra.mxu0 %v6272_v30  ;;  %v6277_v23 = vld [vmem:[%s7379_s3 + $0xb0] sm:$0xff]   ;;  %v6281_v39 = vld [vmem:[%s7379_s3 + $0xa8] sm:$0xff]  }
 0x32f   : > { %6185 = vmatpush3.bf16.msra.mxu1 %v6273_v58  ;;  %6164 = vmatprep.subr.bf16.mxu0 %v6274_v31  ;;  %v6282_v41 = vld [vmem:[%s7379_s3 + $0x60] sm:$0xff]   ;;  %v6286_v47 = vld [vmem:[%s7379_s3 + $0x58] sm:$0xff]   ;;  %v6290_v17 = vld [vmem:[%s7379_s3 + $0x50] sm:$0xff]  }
 0x330   : > { %6186 = vmatprep.subr.bf16.mxu1 %v6275_v44  ;;  %v6283_v0 = vld [vmem:[%s7379_s3 + $0xe0] sm:$0xff]   ;;  %v6287_v6 = vld [vmem:[%s7379_s3 + $0xd8] sm:$0xff]   ;;  %v6291_v20 = vld [vmem:[%s7379_s3 + $0xd0] sm:$0xff]  }
 0x331   : > { %v6284_v38 = vld [vmem:[%s7379_s3 + $0x20] sm:$0xff]   ;;  %v6288_v49 = vld [vmem:[%s7379_s3 + $0x18] sm:$0xff]   ;;  %v6292_v27 = vld [vmem:[%s7379_s3 + $0x10] sm:$0xff]  }
 0x332   : > { %6165 = vmatpush3.bf16.msra.mxu0 %v6276_v32  ;;  %v6285_v43 = vld [vmem:[%s7379_s3 + $0xa0] sm:$0xff]   ;;  %v6289_v50 = vld [vmem:[%s7379_s3 + $0x98] sm:$0xff]   ;;  %v6293_v33 = vld [vmem:[%s7379_s3 + $0x90] sm:$0xff]  }
 0x333   : > { %6187 = vmatpush3.bf16.msra.mxu1 %v6277_v23  ;;  %6166 = vmatprep.subr.bf16.mxu0 %v6278_v12  ;;  %v6294_v62 = vld [vmem:[%s7379_s3 + $0x48] sm:$0xff]   ;;  %v6298_v55 = vld [vmem:[%s7379_s3 + $0x40] sm:$0xff]   ;;  %v6302_v4 = vld [vmem:[%s7379_s3 + $0x178] sm:$0xff]  }
 0x334   : > { %6188 = vmatprep.subr.bf16.mxu1 %v6279_v36  ;;  %v6295_v51 = vld [vmem:[%s7379_s3 + $0xc8] sm:$0xff]   ;;  %v6299_v57 = vld [vmem:[%s7379_s3 + $0xc0] sm:$0xff]   ;;  %v6303_v5 = vld [vmem:[%s7379_s3 + $0x1f8] sm:$0xff]  }
 0x335   : > { %v6296_v9 = vld [vmem:[%s7379_s3 + $0x8] sm:$0xff]   ;;  %v6300_v59 = vld [vmem:[%s7379_s3] sm:$0xff]   ;;  %v6304_v30 = vld [vmem:[%s7379_s3 + $0x138] sm:$0xff]  }
 0x336   : > { %6167 = vmatpush3.bf16.msra.mxu0 %v6280_v37  ;;  %v6297_v53 = vld [vmem:[%s7379_s3 + $0x88] sm:$0xff]   ;;  %v6301_v61 = vld [vmem:[%s7379_s3 + $0x80] sm:$0xff]   ;;  %v6306_v32 = vld [vmem:[%s7379_s3 + $0x170] sm:$0xff]  }
 0x337   : > { %6189 = vmatpush3.bf16.msra.mxu1 %v6281_v39  ;;  %6168 = vmatprep.subr.bf16.mxu0 %v6282_v41  ;;  %v4642_v14 = vld [vmem:[%s7378_s2] sm:$0xff]  ;;  %v6305_v23 = vld [vmem:[%s7379_s3 + $0x1b8] sm:$0xff]   ;;  %v6307_v12 = vld [vmem:[%s7379_s3 + $0x1f0] sm:$0xff]  }
 0x338   : > { %6190 = vmatprep.subr.bf16.mxu1 %v6283_v0  ;;  %v4647_v63 = vrot.slane %v4642_v14, %v4646_v52  ;;  %v4651_v1 = vrot.slane %v4642_v14, %v4650_v46  ;;  %v4655_v2 = vrot.slane %v4642_v14, %v4654_v56  ;;  %v4659_v7 = vrot.slane %v4642_v14, %v4658_v60  ;;  %v4640_v8 = vld [vmem:[#allocation2] sm:$0xff]  ;;  %v6308_v36 = vld [vmem:[%s7379_s3 + $0x130] sm:$0xff]   ;;  %v6310_v41 = vld [vmem:[%s7379_s3 + $0x168] sm:$0xff]  }
 0x339   : > { %v4663_v24 = vrot.slane %v4642_v14, %v4662_v11  ;;  %v4667_v25 = vrot.slane %v4642_v14, %v4666_v13  ;;  %v4671_v58 = vrot.slane %v4642_v14, %v4670_v16  ;;  %v4675_v31 = vrot.slane %v4642_v14, %v4674_v19  ;;  %v6309_v0 = vld [vmem:[%s7379_s3 + $0x1b0] sm:$0xff]   ;;  %v6320_v52 = vld [vmem:[%s7379_s3 + $0x118] sm:$0xff]   ;;  %v6326_v14 = vld [vmem:[%s7379_s3 + $0x148] sm:$0xff]  }
 0x33a   : > { %6169 = vmatpush3.bf16.msra.mxu0 %v6284_v38  ;;  %v4676_v42 = vcombine.low %v4647_v63, %v4651_v1  ;;  %v4677_v3 = vcombine.low %v4655_v2, %v4659_v7  ;;  %v6311_v38 = vld [vmem:[%s7379_s3 + $0x1e8] sm:$0xff]   ;;  %v6322_v46 = vld [vmem:[%s7379_s3 + $0x150] sm:$0xff]  }
 0x33b   : > { %6191 = vmatpush3.bf16.msra.mxu1 %v6285_v43  ;;  %6170 = vmatprep.subr.bf16.mxu0 %v6286_v47  ;;  %v4693_v37 = vcombine.low %v4663_v24, %v4667_v25  ;;  %v4694_v39 = vcombine.low %v4671_v58, %v4675_v31  ;;  %v6312_v43 = vld [vmem:[%s7379_s3 + $0x128] sm:$0xff]   ;;  %v6324_v60 = vld [vmem:[%s7379_s3 + $0x110] sm:$0xff]   ;;  %v6092_v24 = vld [vmem:[%s7380_s4] ss:$0 sm:$0xff] }
 0x33c   : > { %6192 = vmatprep.subr.bf16.mxu1 %v6287_v6  ;;  %v4684_v26 = vrot.slane %v4676_v42, %v6456_v54  ;;  %v4691_v48 = vrot.slane %v4677_v3, %v6456_v54  ;;  %v6325_v63 = vld [vmem:[%s7379_s3 + $0x190] sm:$0xff]   ;;  %v6327_v7 = vld [vmem:[%s7379_s3 + $0x1c8] sm:$0xff]   ;;  %v6330_v3 = vld [vmem:[%s7379_s3 + $0x140] sm:$0xff]  }
 0x33d   : > { %v4701_v47 = vrot.slane %v4693_v37, %v6456_v54  ;;  %v4708_v6 = vrot.slane %v4694_v39, %v6456_v54 }
 0x33e   : > { %6171 = vmatpush3.bf16.msra.mxu0 %v6288_v49  ;;  %v4692_v35 = vcombine.low %v4684_v26, %v4691_v48  ;;  %v6314_v49 = vld [vmem:[%s7379_s3 + $0x160] sm:$0xff]  }
 0x33f   : > { %6193 = vmatpush3.bf16.msra.mxu1 %v6289_v50  ;;  %6172 = vmatprep.subr.bf16.mxu0 %v6290_v17  ;;  %v6313_v50 = vld [vmem:[%s7379_s3 + $0x1a8] sm:$0xff]   ;;  %v6315_v17 = vld [vmem:[%s7379_s3 + $0x1e0] sm:$0xff]  }
 0x340   : > { %6194 = vmatprep.subr.bf16.mxu1 %v6291_v20  ;;  %v4712_v18 = vadd.f32 %v4692_v35, %v4640_v8  ;;  %v6316_v20 = vld [vmem:[%s7379_s3 + $0x120] sm:$0xff]  }
 0x341   : > { %v6331_v48 = vld [vmem:[%s7379_s3 + $0x1c0] sm:$0xff]  }
 0x342   : > { %6173 = vmatpush3.bf16.msra.mxu0 %v6292_v27  ;;  %v4714_v10 = vmax.f32 %v4712_v18, 0.0  ;;  %v4709_v27 = vcombine.low %v4701_v47, %v4708_v6  ;;  %v6332_v8 = vld [vmem:[%s7379_s3 + $0x100] sm:$0xff]  }
 0x343   : > { %6195 = vmatpush3.bf16.msra.mxu1 %v6293_v33  ;;  %6174 = vmatprep.subr.bf16.mxu0 %v6294_v62  ;;  %v6318_v33 = vld [vmem:[%s7379_s3 + $0x158] sm:$0xff]   ;;  %v6317_v62 = vld [vmem:[%s7379_s3 + $0x1a0] sm:$0xff]  }
 0x344   : > { %6196 = vmatprep.subr.bf16.mxu1 %v6295_v51  ;;  %v4725_v15 = vrot.slane %v4714_v10, %v6456_v54  ;;  %v4718_v40 = vcombine.high %v4714_v10, %v4714_v10  ;;  %v6319_v51 = vld [vmem:[%s7379_s3 + $0x1d8] sm:$0xff]   ;;  %v6333_v35 = vld [vmem:[%s7379_s3 + $0x180] sm:$0xff]  }
 0x346   : > { %6175 = vmatpush3.bf16.msra.mxu0 %v6296_v9  ;;  %v4733_v34 = vcombine.high %v4725_v15, %v4725_v15  ;;  %v4732_v21 = vrot.slane %v4718_v40, %v6456_v54  ;;  %v4760_v22 = vpack.c.bf16 %v4725_v15, %v4725_v15  ;;  %v4641_v9 = vld [vmem:[#allocation2 + $0x8] sm:$0xff] }
 0x347   : > { %6197 = vmatpush3.bf16.msra.mxu1 %v6297_v53  ;;  %6176 = vmatprep.subr.bf16.mxu0 %v6298_v55  ;;  %v4713_v53 = vadd.f32 %v4709_v27, %v4641_v9  ;;  %v6321_v55 = vld [vmem:[%s7379_s3 + $0x198] sm:$0xff]  }
 0x348   : > { %6198 = vmatprep.subr.bf16.mxu1 %v6299_v57  ;;  %v4761_v28 = vpack.c.bf16 %v4733_v34, %v4733_v34  ;;  %v4734_v29 = vcombine.high %v4732_v21, %v4732_v21  ;;  %v4762_v44 = vpack.c.bf16 %v4732_v21, %v4732_v21  ;;  %v6323_v57 = vld [vmem:[%s7379_s3 + $0x1d0] sm:$0xff]  }
 0x349   : > { %v4715_v56 = vmax.f32 %v4713_v53, 0.0 }
 0x34a   : > { %6177 = vmatpush3.bf16.msra.mxu0 %v6300_v59  ;;  %5319 = vmatprep.mubr.bf16.mxu0 %v4761_v28  ;;  %v4763_v45 = vpack.c.bf16 %v4734_v29, %v4734_v29 }
 0x34b   : > { %6199 = vmatpush3.bf16.msra.mxu1 %v6301_v61  ;;  %6206 = vmatprep.subr.bf16.mxu0 %v6302_v4  ;;  %v4742_v59 = vrot.slane %v4715_v56, %v6456_v54  ;;  %v4735_v61 = vcombine.high %v4715_v56, %v4715_v56  ;;  %v6328_v4 = vld [vmem:[%s7379_s3 + $0x108] sm:$0xff]  }
 0x34c   : > { %6228 = vmatprep.subr.bf16.mxu1 %v6303_v5  ;;  %5359 = vmatprep.mubr.bf16.mxu1 %v4763_v45 }
 0x34d   : > { %5320 = vmatmul.mubr.bf16.vlgmr.msra.gmra.mxu0 %v4760_v22  ;;  %v4750_v1 = vcombine.high %v4742_v59, %v4742_v59  ;;  %v4749_v2 = vrot.slane %v4735_v61, %v6456_v54  ;;  %v6329_v54 = vld [vmem:[%s7379_s3 + $0x188] sm:$0xff]   ;;  %v4764_v18 = vpack.c.bf16 %v4742_v59, %v4742_v59 }
 0x34e   : > { %6207 = vmatpush3.bf16.msra.mxu0 %v6304_v30  ;;  %5360 = vmatmul.mubr.bf16.vlgmr.msra.gmra.mxu1 %v4762_v44 }
 0x34f   : > { %6208 = vmatprep.subr.bf16.mxu0 %v6306_v32  ;;  %6229 = vmatpush3.bf16.msra.mxu1 %v6305_v23  ;;  %v4765_v5 = vpack.c.bf16 %v4750_v1, %v4750_v1  ;;  %v4751_v42 = vcombine.high %v4749_v2, %v4749_v2  ;;  %v4766_v10 = vpack.c.bf16 %v4749_v2, %v4749_v2 }
 0x350   : > { %6230 = vmatprep.subr.bf16.mxu1 %v6307_v12 }
 0x351   : > { %5399 = vmatprep.mubr.bf16.mxu0 %v4765_v5  ;;  %v4767_v26 = vpack.c.bf16 %v4751_v42, %v4751_v42 }
 0x352   : > { %6209 = vmatpush3.bf16.msra.mxu0 %v6308_v36 }
 0x353   : > { %6210 = vmatprep.subr.bf16.mxu0 %v6310_v41  ;;  %6231 = vmatpush3.bf16.msra.mxu1 %v6309_v0 }
 0x354   : > { %6232 = vmatprep.subr.bf16.mxu1 %v6311_v38  ;;  %5439 = vmatprep.mubr.bf16.mxu1 %v4767_v26 }
 0x356   : > { %6211 = vmatpush3.bf16.msra.mxu0 %v6312_v43 }
 0x357   : > { %6212 = vmatprep.subr.bf16.mxu0 %v6314_v49  ;;  %6233 = vmatpush3.bf16.msra.mxu1 %v6313_v50 }
 0x358   : > { %6234 = vmatprep.subr.bf16.mxu1 %v6315_v17 }
 0x35a   : > { %6213 = vmatpush3.bf16.msra.mxu0 %v6316_v20 }
 0x35b   : > { %6214 = vmatprep.subr.bf16.mxu0 %v6318_v33  ;;  %6235 = vmatpush3.bf16.msra.mxu1 %v6317_v62 }
 0x35c   : > { %6236 = vmatprep.subr.bf16.mxu1 %v6319_v51 }
 0x35e   : > { %6215 = vmatpush3.bf16.msra.mxu0 %v6320_v52 }
 0x35f   : > { %6216 = vmatprep.subr.bf16.mxu0 %v6322_v46  ;;  %6237 = vmatpush3.bf16.msra.mxu1 %v6321_v55 }
 0x360   : > { %6238 = vmatprep.subr.bf16.mxu1 %v6323_v57 }
 0x362   : > { %6217 = vmatpush3.bf16.msra.mxu0 %v6324_v60 }
 0x363   : > { %6218 = vmatprep.subr.bf16.mxu0 %v6326_v14  ;;  %6239 = vmatpush3.bf16.msra.mxu1 %v6325_v63 }
 0x364   : > { %6240 = vmatprep.subr.bf16.mxu1 %v6327_v7 }
 0x366   : > { %6219 = vmatpush3.bf16.msra.mxu0 %v6328_v4 }
 0x367   : > { %6220 = vmatprep.subr.bf16.mxu0 %v6330_v3  ;;  %6241 = vmatpush3.bf16.msra.mxu1 %v6329_v54 }
 0x368   : > { %6242 = vmatprep.subr.bf16.mxu1 %v6331_v48 }
 0x36a   : > { %6221 = vmatpush3.bf16.msra.mxu0 %v6332_v8 }
 0x36b   : > { %6243 = vmatpush3.bf16.msra.mxu1 %v6333_v35 }
 0x36d   : > { %5400 = vmatmul.mubr.bf16.vlgmr.msra.gmra.mxu0 %v4764_v18 }
 0x36e   : > { %5440 = vmatmul.mubr.bf16.vlgmr.msra.gmra.mxu1 %v4766_v10 }
 0x40d   : > { %v6178_v11 = vpop.f32.mrf.mxu0 }
 0x40e   : > { %v6200_v13 = vpop.f32.mrf.mxu1 }
 0x40f   : > { %v6179_v15 = vpop.f32.mrf.mxu0 }
 0x410   : > { %v6201_v40 = vpop.f32.mrf.mxu1  ;;  %v6180_v22 = vadd.f32 %v6179_v15, %v6178_v11 }
 0x411   : > { %v6181_v16 = vpop.f32.mrf.mxu0  ;;  %v6202_v28 = vadd.f32 %v6201_v40, %v6200_v13 }
 0x412   : > { %v6203_v19 = vpop.f32.mrf.mxu1  ;;  %v5322_v25 = vadd.f32 %v6180_v22, %v6092_v24 }
 0x413   : > { %v6182_v34 = vpop.f32.mrf.mxu0 }
 0x414   : > { %v6204_v21 = vpop.f32.mrf.mxu1  ;;  %v5362_v31 = vadd.f32 %v6202_v28, %v5322_v25 }
 0x42d   : > { %v6222_v29 = vpop.f32.mrf.mxu0 }
 0x42e   : > { %v6244_v30 = vpop.f32.mrf.mxu1 }
 0x42f   : > { %v6223_v58 = vpop.f32.mrf.mxu0 }
 0x430   : > { %v6224_v44 = vadd.f32 %v6223_v58, %v6222_v29  ;;  %v6245_v32 = vpop.f32.mrf.mxu1 }
 0x431   : > { %v6225_v45 = vpop.f32.mrf.mxu0  ;;  %v6246_v12 = vadd.f32 %v6245_v32, %v6244_v30 }
 0x432   : > { %v5402_v23 = vadd.f32 %v6224_v44, %v5362_v31  ;;  %v6247_v36 = vpop.f32.mrf.mxu1 }
 0x433   : > { %v6226_v37 = vpop.f32.mrf.mxu0 }
 0x434   : > { %v5442_v39 = vadd.f32 %v6246_v12, %v5402_v23  ;;  %v6248_v41 = vpop.f32.mrf.mxu1 }
 0x436   : > { %5447 = vst [vmem:[#allocation3] sm:$0x3] %v5442_v39 }
 0x437 PF: > { %p6254_p7 = scmp.eq.s32.totalorder %s6410_s19, 3  ;;  %s6373_s24 = smov [#allocation3]  }
 0x438   : > { %s5455_s25 = sshll.u32 %s6373_s24, 4  ;;  %s5456_s25 = int_to_ptr.vmem [resolvable:$true] %s5455_s25 }
 0x439   : > { %s6334_s26 = scalar_lea.vmem %s5456_s25, 32  ;;  %p6341_p11 = scmp.lt.s32.totalorder %s5456_s25, %s5456_s25 }
 0x43a   : > { %p6335_p8 = scmp.ne.s32.totalorder %s5456_s25, %s6334_s26  ;;  %p6342_p12 = scmp.lt.s32.totalorder %s6334_s26, %s6334_s26 }
 0x43c   : > { %p6336_p9 = pnand %p6335_p8, %p6254_p7  ;;  %p6343_p13 = por %p6342_p12, %p6341_p11 }
 0x43e   : > { %p6337_p10 = pneg %p6336_p9 }
 0x440   : > { %p6344_p0 = pnand %p6343_p13, %p6337_p10 }
 0x442   : > { %6347 = shalt.err (!%p6344_p0)
}
 0x443   : > { %6251 = dma.vmem_to_hbm [thread:$0]  (%p6254_p7), %s5456_s25, 32, %s7381_s5, [#allocation4]  }
 0x444   : > { %6363 = dma.done.wait (%p6254_p7), [#allocation4], 32  }
 0x445   : > { %6365 = vsyncadd (%p6254_p7), [#allocation4], 4294967264 }
 0x446 PF: > { %s16_s18 = sadd.s32 1, %s6368_s18  }
 0x447   : > { %p13_p1 = scmp.ge.s32.totalorder %s16_s18, 6  }
 0x449   :  { %15 = sbr.rel (!%p13_p1) target bundleno = 1 (0x1), region = 78 }
 0x44e   :  { %5468 = vsyncpa [#allocation4], 1 }
 0x44f   :  { %5470 = vsyncpa [#allocation4 + $0x1], 1 }

</bundles_post_ra>
